<compile_context>
chip_gen: v7x
topology: tpu7x:2x2x1
jax: 0.10.0
libtpu: 0.0.40
codegen_flags: <defaults>
</compile_context>

<pallas_src>
import functools

import jax
import jax.numpy as jnp
from jax.experimental import pallas as pl
from jax.experimental.pallas import tpu as pltpu

LANE = 128                        # TPU lane width: every matmul K/N padded to this
CP = 128                          # physical channel width of ASPP/decoder activations


def _default_vmem_limit():
    """Generation-aware scoped-VMEM budget: ~half of physical on big-VMEM chips
    (v5e/v6e: 128 MiB), a conservative 24 MiB on v7x (64 MiB / TensorCore)."""
    cap = None
    try:
        info = pltpu.get_tpu_info()
        cap = getattr(info, "vmem_capacity_bytes", None)
    except Exception:
        cap = None
    if cap is None:
        return 32 * 1024 * 1024
    if cap >= 96 * 1024 * 1024:
        return 64 * 1024 * 1024
    return 24 * 1024 * 1024


VMEM_LIMIT = _default_vmem_limit()


def _round_up(x, m):
    return (x + m - 1) // m * m


def _pick_tile(dim, candidates):
    for c in candidates:
        if dim % c == 0:
            return c
    return dim


# --------------------------------------------------------------------------
# Kernel 1: tiled matmul + bias + optional ReLU  (the MXU workhorse)
# --------------------------------------------------------------------------
def _mm_kernel(x_ref, w_ref, b_ref, o_ref, acc_ref, *, relu):
    @pl.when(pl.program_id(2) == 0)
    def _init():
        acc_ref[...] = jnp.zeros_like(acc_ref)

    acc_ref[...] += jnp.dot(x_ref[...], w_ref[...],
                            preferred_element_type=jnp.float32)

    @pl.when(pl.program_id(2) == pl.num_programs(2) - 1)
    def _flush():
        r = acc_ref[...] + b_ref[...]
        if relu:
            r = jnp.maximum(r, 0.0)
        o_ref[...] = r.astype(o_ref.dtype)


def pallas_matmul(a, b, bias=None, *, relu=False, out_dtype=jnp.float32):
    """out = act(a @ b + bias).  K/N padded to 128 lanes only when needed."""
    M, K = a.shape
    K2, N = b.shape
    assert K == K2
    Mp, Kp, Np = _round_up(M, LANE), _round_up(K, LANE), _round_up(N, LANE)

    ap = a if (Mp == M and Kp == K) else jnp.pad(a, ((0, Mp - M), (0, Kp - K)))
    bp = b if (Kp == K and Np == N) else jnp.pad(b, ((0, Kp - K), (0, Np - N)))
    if bias is None:
        biasp = jnp.zeros((1, Np), jnp.float32)
    else:
        bias2 = bias.reshape(1, N).astype(jnp.float32)
        biasp = bias2 if Np == N else jnp.pad(bias2, ((0, 0), (0, Np - N)))

    tm = _pick_tile(Mp, (512, 256, 128))
    tn = _pick_tile(Np, (512, 256, 128))
    tk = _pick_tile(Kp, (1024, 512, 256, 128))
    grid = (Mp // tm, Np // tn, Kp // tk)

    b_spec = pl.BlockSpec((tk, tn), lambda i, j, k: (k, j))
    if grid[2] >= 4:
        # deeper buffering on the B operand for long-K grids (cheap insurance
        # against exposed DMA waits; only one extra tk x tn bf16 tile of VMEM).
        b_spec = pl.BlockSpec((tk, tn), lambda i, j, k: (k, j),
                              pipeline_mode=pl.Buffered(3))

    bytes_acc = int(ap.size * ap.dtype.itemsize + bp.size * bp.dtype.itemsize
                    + Mp * Np * jnp.dtype(out_dtype).itemsize)
    out = pl.pallas_call(
        functools.partial(_mm_kernel, relu=relu),
        out_shape=jax.ShapeDtypeStruct((Mp, Np), out_dtype),
        grid=grid,
        in_specs=[
            pl.BlockSpec((tm, tk), lambda i, j, k: (i, k)),
            b_spec,
            pl.BlockSpec((1, tn), lambda i, j, k: (0, j)),
        ],
        out_specs=pl.BlockSpec((tm, tn), lambda i, j, k: (i, j)),
        scratch_shapes=[pltpu.VMEM((tm, tn), jnp.float32)],
        compiler_params=pltpu.CompilerParams(
            dimension_semantics=("parallel", "parallel", "arbitrary"),
            vmem_limit_bytes=VMEM_LIMIT),
        cost_estimate=pl.CostEstimate(flops=2 * Mp * Np * Kp, transcendentals=0,
                                      bytes_accessed=bytes_acc),
    )(ap, bp, biasp)
    if Mp == M and Np == N:
        return out
    return out[:M, :N]


# --------------------------------------------------------------------------
# Weight-packing helpers (all weights/biases zero-padded to 128 lanes so the
# padded activation lanes stay exactly zero through every kernel).
# --------------------------------------------------------------------------
def _pack_w3x3_rows(w):
    """(3,3,Cin,Cout) -> (3, 3*CP, CP): per kernel-row i, the three column taps
    are stacked along K to match the in-kernel lane-concatenated LHS."""
    cin, cout = w.shape[2], w.shape[3]
    wp = jnp.zeros((3, 3, CP, CP), jnp.bfloat16).at[:, :, :cin, :cout].set(
        w.astype(jnp.bfloat16))
    return wp.reshape(3, 3 * CP, CP)


def _pad_w1x1(w):
    cin, cout = w.shape[2], w.shape[3]
    return jnp.zeros((CP, CP), jnp.bfloat16).at[:cin, :cout].set(
        w.reshape(cin, cout).astype(jnp.bfloat16))


def _pad_bias(b):
    return jnp.zeros((1, CP), jnp.float32).at[0, :b.shape[0]].set(
        b.astype(jnp.float32))


# --------------------------------------------------------------------------
# Kernel 2: fully fused ASPP
#   (1x1 branch + 3 dilated 3x3 branches + GAP branch + concat + projection)
# --------------------------------------------------------------------------
def _aspp_kernel(xp_ref, w1_ref, wd_ref, wpool_ref, wproj_ref, bbr_ref,
                 bproj_ref, o_ref, pacc_ref, bacc_ref, *, rb, H, W, D, rates):
    r = pl.program_id(1)
    row0 = r * rb                 # first output row of this block
    M = rb * W
    Cp = xp_ref.shape[-1]

    # ---- branch 0: 1x1 conv + ReLU, projected ----
    center = xp_ref[0, pl.ds(row0 + D, rb), D:D + W, :]          # (rb, W, Cp)
    a0 = jnp.maximum(
        jnp.dot(center.reshape(M, Cp), w1_ref[...],
                preferred_element_type=jnp.float32) + bbr_ref[0:1, :], 0.0)
    pacc_ref[...] = jnp.dot(a0.astype(jnp.bfloat16), wproj_ref[0],
                            preferred_element_type=jnp.float32)

    # ---- branches 1..3: dilated 3x3 convs (3 dots of K = 3*Cp per branch) ----
    for k, dil in enumerate(rates):
        for i in range(3):
            slab = xp_ref[0, pl.ds(row0 + D + (i - 1) * dil, rb), :, :]
            lhs = jnp.concatenate(
                [slab[:, D + (j - 1) * dil: D + (j - 1) * dil + W, :]
                 for j in range(3)], axis=-1).reshape(M, 3 * Cp)
            contrib = jnp.dot(lhs, wd_ref[k * 3 + i],
                              preferred_element_type=jnp.float32)
            if i == 0:
                bacc_ref[...] = contrib
            else:
                bacc_ref[...] += contrib
        ak = jnp.maximum(bacc_ref[...] + bbr_ref[k + 1:k + 2, :], 0.0)
        pacc_ref[...] += jnp.dot(ak.astype(jnp.bfloat16), wproj_ref[k + 1],
                                 preferred_element_type=jnp.float32)

    # ---- branch 4: GAP -> 1x1 -> ReLU (spatially constant rank-1 term) ----
    xin = xp_ref[0, D:D + H, D:D + W, :].astype(jnp.float32)
    g = jnp.sum(jnp.sum(xin, axis=0), axis=0, keepdims=True) * (1.0 / (H * W))
    gp = jnp.maximum(
        jnp.dot(g.astype(jnp.bfloat16), wpool_ref[...],
                preferred_element_type=jnp.float32) + bbr_ref[4:5, :], 0.0)
    pooled = jnp.dot(gp.astype(jnp.bfloat16), wproj_ref[4],
                     preferred_element_type=jnp.float32)          # (1, CP)

    out = jnp.maximum(pacc_ref[...] + pooled + bproj_ref[...], 0.0)
    o_ref[0] = out.reshape(rb, W, CP).astype(o_ref.dtype)


def aspp_fused(h, params):
    """h: (N,H,W,CP) bf16 lane-padded encoder features -> (N,H,W,CP) bf16."""
    N, H, W, Cp = h.shape
    D = max(ASPP_RATES)
    hp = jnp.pad(h, ((0, 0), (D, D), (D, D), (0, 0)))
    Hp, Wp = H + 2 * D, W + 2 * D

    w1 = _pad_w1x1(params["aspp0"][0])
    wd = jnp.concatenate([_pack_w3x3_rows(params["aspp1"][0]),
                          _pack_w3x3_rows(params["aspp2"][0]),
                          _pack_w3x3_rows(params["aspp3"][0])], axis=0)
    wpool = _pad_w1x1(params["aspp_pool"][0])
    wproj_raw = params["aspp_proj"][0]
    nin, cout = wproj_raw.shape[2], wproj_raw.shape[3]
    ch = nin // 5
    wproj = jnp.zeros((5, CP, CP), jnp.bfloat16).at[:, :ch, :cout].set(
        wproj_raw.reshape(5, ch, cout).astype(jnp.bfloat16))
    bbr = jnp.concatenate([_pad_bias(params["aspp0"][1]),
                           _pad_bias(params["aspp1"][1]),
                           _pad_bias(params["aspp2"][1]),
                           _pad_bias(params["aspp3"][1]),
                           _pad_bias(params["aspp_pool"][1])], axis=0)
    bproj = _pad_bias(params["aspp_proj"][1])

    rb = _pick_tile(H, (16, 8, 4, 2, 1))
    grid = (N, H // rb)
    kernel = functools.partial(_aspp_kernel, rb=rb, H=H, W=W, D=D,
                               rates=ASPP_RATES)
    return pl.pallas_call(
        kernel,
        out_shape=jax.ShapeDtypeStruct((N, H, W, CP), jnp.bfloat16),
        grid=grid,
        in_specs=[
            pl.BlockSpec((1, Hp, Wp, Cp), lambda n, r: (n, 0, 0, 0)),
            pl.BlockSpec((CP, CP), lambda n, r: (0, 0)),
            pl.BlockSpec((9, 3 * CP, CP), lambda n, r: (0, 0, 0)),
            pl.BlockSpec((CP, CP), lambda n, r: (0, 0)),
            pl.BlockSpec((5, CP, CP), lambda n, r: (0, 0, 0)),
            pl.BlockSpec((5, CP), lambda n, r: (0, 0)),
            pl.BlockSpec((1, CP), lambda n, r: (0, 0)),
        ],
        out_specs=pl.BlockSpec((1, rb, W, CP), lambda n, r: (n, r, 0, 0)),
        scratch_shapes=[pltpu.VMEM((rb * W, CP), jnp.float32),
                        pltpu.VMEM((rb * W, CP), jnp.float32)],
        compiler_params=pltpu.CompilerParams(
            dimension_semantics=("parallel", "parallel"),
            vmem_limit_bytes=VMEM_LIMIT),
    )(hp, w1, wd, wpool, wproj, bbr, bproj)


# --------------------------------------------------------------------------
# Kernel 3: decoder 3x3 conv + ReLU fused with the segmentation-head 1x1 conv
# --------------------------------------------------------------------------
def _dec_head_kernel(xp_ref, wd_ref, bd_ref, wh_ref, bh_ref, o_ref, bacc_ref,
                     *, rb, W):
    r = pl.program_id(1)
    row0 = r * rb
    M = rb * W
    Cp = xp_ref.shape[-1]
    for i in range(3):
        slab = xp_ref[0, pl.ds(row0 + i, rb), :, :]               # (rb, Wp, Cp)
        lhs = jnp.concatenate([slab[:, j:j + W, :] for j in range(3)],
                              axis=-1).reshape(M, 3 * Cp)
        contrib = jnp.dot(lhs, wd_ref[i], preferred_element_type=jnp.float32)
        if i == 0:
            bacc_ref[...] = contrib
        else:
            bacc_ref[...] += contrib
    dec = jnp.maximum(bacc_ref[...] + bd_ref[...], 0.0)
    logits = jnp.dot(dec.astype(jnp.bfloat16), wh_ref[...],
                     preferred_element_type=jnp.float32) + bh_ref[...]
    o_ref[0] = logits.reshape(rb, W, CP).astype(o_ref.dtype)


def decoder_head(x, dec_w, dec_b, head_w, head_b):
    """x: (N,H,W,CP) bf16 -> logits (N,H,W,CP) bf16 (lanes >= num_classes = 0)."""
    N, H, W, Cp = x.shape
    xp = jnp.pad(x, ((0, 0), (1, 1), (1, 1), (0, 0)))
    Hp, Wp = H + 2, W + 2
    wd = _pack_w3x3_rows(dec_w)
    bd = _pad_bias(dec_b)
    wh = _pad_w1x1(head_w)
    bh = _pad_bias(head_b)
    rb = _pick_tile(H, (16, 8, 4, 2, 1))
    grid = (N, H // rb)
    return pl.pallas_call(
        functools.partial(_dec_head_kernel, rb=rb, W=W),
        out_shape=jax.ShapeDtypeStruct((N, H, W, CP), jnp.bfloat16),
        grid=grid,
        in_specs=[
            pl.BlockSpec((1, Hp, Wp, Cp), lambda n, r: (n, 0, 0, 0)),
            pl.BlockSpec((3, 3 * CP, CP), lambda n, r: (0, 0, 0)),
            pl.BlockSpec((1, CP), lambda n, r: (0, 0)),
            pl.BlockSpec((CP, CP), lambda n, r: (0, 0)),
            pl.BlockSpec((1, CP), lambda n, r: (0, 0)),
        ],
        out_specs=pl.BlockSpec((1, rb, W, CP), lambda n, r: (n, r, 0, 0)),
        scratch_shapes=[pltpu.VMEM((rb * W, CP), jnp.float32)],
        compiler_params=pltpu.CompilerParams(
            dimension_semantics=("parallel", "parallel"),
            vmem_limit_bytes=VMEM_LIMIT),
    )(xp, wd, bd, wh, bh)


# --------------------------------------------------------------------------
# Stem conv wrappers (stride-2 3x3 convs via bf16 im2col + the tiled matmul)
# --------------------------------------------------------------------------
def _extract_patches(x_nhwc, kh, kw, stride, dilation, padding):
    x = jnp.pad(x_nhwc, ((0, 0), (padding, padding), (padding, padding), (0, 0)))
    N, Hp, Wp, C = x.shape
    Ho = (Hp - (kh - 1) * dilation - 1) // stride + 1
    Wo = (Wp - (kw - 1) * dilation - 1) // stride + 1
    cols = []
    for i in range(kh):
        for j in range(kw):
            sl = x[:, i * dilation: i * dilation + (Ho - 1) * stride + 1: stride,
                   j * dilation: j * dilation + (Wo - 1) * stride + 1: stride, :]
            cols.append(sl)
    patches = jnp.concatenate(cols, axis=-1)
    return patches.reshape(N * Ho * Wo, kh * kw * C), (N, Ho, Wo)


def conv2d_im2col(x_nhwc, w, b, *, stride, padding, relu, out_pad=None):
    KH, KW, Cin, Cout = w.shape
    patches, (N, Ho, Wo) = _extract_patches(x_nhwc.astype(jnp.bfloat16),
                                            KH, KW, stride, 1, padding)
    if out_pad is not None and out_pad > Cout:
        wm = jnp.zeros((KH * KW * Cin, out_pad), jnp.bfloat16).at[:, :Cout].set(
            w.reshape(KH * KW * Cin, Cout).astype(jnp.bfloat16))
        bm = jnp.zeros((out_pad,), jnp.float32).at[:Cout].set(b.astype(jnp.float32))
        Cout = out_pad
    else:
        wm = w.reshape(KH * KW * Cin, Cout).astype(jnp.bfloat16)
        bm = b
    out = pallas_matmul(patches, wm, bm, relu=relu, out_dtype=jnp.bfloat16)
    return out.reshape(N, Ho, Wo, Cout)


# --------------------------------------------------------------------------
# Separable bilinear upsample (align_corners=True), bf16 lane-dense matmuls
# --------------------------------------------------------------------------
def _bilinear_matrix(out_size, in_size):
    if in_size == 1 or out_size == 1:
        return jnp.full((out_size, in_size), 1.0 / in_size, jnp.float32)
    src = jnp.arange(out_size, dtype=jnp.float32) * (in_size - 1) / (out_size - 1)
    lo = jnp.floor(src).astype(jnp.int32)
    hi = jnp.minimum(lo + 1, in_size - 1)
    frac = src - lo.astype(jnp.float32)
    m = jnp.zeros((out_size, in_size), jnp.float32)
    rows = jnp.arange(out_size)
    m = m.at[rows, lo].add(1.0 - frac)
    m = m.at[rows, hi].add(frac)
    return m


def bilinear_upsample(x, out_h, out_w):
    """x: (N,h,w,C) -> (N,out_h,out_w,C) f32.  bf16 operands, f32 accumulation."""
    N, h, w, C = x.shape
    Uh = _bilinear_matrix(out_h, h).astype(jnp.bfloat16)
    Uw = _bilinear_matrix(out_w, w).astype(jnp.bfloat16)
    xb = x.astype(jnp.bfloat16)
    # height pass: (out_h, h) @ (h, w*N*C)
    x1 = jnp.transpose(xb, (1, 2, 0, 3)).reshape(h, w * N * C)
    t = pallas_matmul(Uh, x1, out_dtype=jnp.bfloat16)
    # width pass: (out_w, w) @ (w, out_h*N*C)
    t = jnp.transpose(t.reshape(out_h, w, N, C), (1, 0, 2, 3))
    t = t.reshape(w, out_h * N * C)
    s = pallas_matmul(Uw, t, out_dtype=jnp.float32)
    s = s.reshape(out_w, out_h, N, C)
    return jnp.transpose(s, (2, 1, 0, 3))          # (N, out_h, out_w, C)


# --------------------------------------------------------------------------
# DeepLabV3 model (small synthetic configuration)
# --------------------------------------------------------------------------
IN_CHANNELS = 3
NUM_CLASSES = 11
ENC_CH = (8, 16, 32)          # stride-8 encoder stem
ASPP_CH = 24
ASPP_RATES = (1, 2, 3)        # scaled-down analogue of (12, 24, 36)


def _init_conv(key, kh, kw, cin, cout):
    fan_in = kh * kw * cin
    w = jax.random.normal(key, (kh, kw, cin, cout), jnp.float32) * jnp.sqrt(2.0 / fan_in)
    b = jnp.zeros((cout,), jnp.float32)
    return w, b


def build_params(key):
    keys = jax.random.split(key, 11)
    p = {}
    p["enc1"] = _init_conv(keys[0], 3, 3, IN_CHANNELS, ENC_CH[0])
    p["enc2"] = _init_conv(keys[1], 3, 3, ENC_CH[0], ENC_CH[1])
    p["enc3"] = _init_conv(keys[2], 3, 3, ENC_CH[1], ENC_CH[2])
    p["aspp0"] = _init_conv(keys[3], 1, 1, ENC_CH[2], ASPP_CH)
    p["aspp1"] = _init_conv(keys[4], 3, 3, ENC_CH[2], ASPP_CH)
    p["aspp2"] = _init_conv(keys[5], 3, 3, ENC_CH[2], ASPP_CH)
    p["aspp3"] = _init_conv(keys[6], 3, 3, ENC_CH[2], ASPP_CH)
    p["aspp_pool"] = _init_conv(keys[7], 1, 1, ENC_CH[2], ASPP_CH)
    p["aspp_proj"] = _init_conv(keys[8], 1, 1, 5 * ASPP_CH, ASPP_CH)
    p["dec"] = _init_conv(keys[9], 3, 3, ASPP_CH, ASPP_CH)
    p["head"] = _init_conv(keys[10], 1, 1, ASPP_CH, NUM_CLASSES)
    return p


def deeplabv3_forward(params, x_nchw):
    # NCHW (PyTorch convention) -> NHWC (kernel layout)
    x = jnp.transpose(x_nchw, (0, 2, 3, 1)).astype(jnp.float32)
    in_h, in_w = x.shape[1], x.shape[2]

    # ---- encoder stem (output stride 8): bf16 im2col + tiled MXU matmul ----
    h = conv2d_im2col(x, *params["enc1"], stride=2, padding=1, relu=True)
    h = conv2d_im2col(h, *params["enc2"], stride=2, padding=1, relu=True)
    # last stem conv emits the 128-lane-padded layout directly (no re-pad copy)
    h = conv2d_im2col(h, *params["enc3"], stride=2, padding=1, relu=True,
                      out_pad=CP)

    # ---- fused ASPP (1x1 + 3 dilated 3x3 + GAP branch + concat + projection) ----
    proj = aspp_fused(h, params)

    # ---- decoder 3x3 conv + ReLU fused with the segmentation head 1x1 ----
    logits = decoder_head(proj, *params["dec"], *params["head"])

    # slice to the real class channels BEFORE the x8 upsample (10x less work)
    logits = logits[..., :NUM_CLASSES]
    up = bilinear_upsample(logits, in_h, in_w)       # (N, H, W, NUM_CLASSES) f32

    # back to NCHW to match the PyTorch module's output
    return jnp.transpose(up, (0, 3, 1, 2))


# --------------------------------------------------------------------------
if __name__ == "__main__":
    key = jax.random.PRNGKey(0)
    pkey, xkey = jax.random.split(key)
    params = build_params(pkey)

    # PyTorch forward input: NCHW, in_channels=3
    x = jax.random.normal(xkey, (2, IN_CHANNELS, 16, 16), jnp.float32)

    out = jax.jit(deeplabv3_forward)(params, x)
    out = jax.block_until_ready(out)

    assert out.shape == (2, NUM_CLASSES, 16, 16), out.shape
    assert out.dtype == jnp.float32
    assert bool(jnp.all(jnp.isfinite(out)))
    print("KERNEL_OK")
</pallas_src>

<mosaic_0001>
module attributes {stable_mosaic.version = 11 : i64} {
  func.func private @main(%arg0: i32) attributes {dimension_semantics = [#tpu.dimension_semantics<core_parallel>], iteration_bounds = array<i64: 2>, tpu.core_type = #tpu.core_type<sc_scalar_subcore>, window_params = []} {
    return
  }
}

module attributes {stable_mosaic.version = 11 : i64} {
  func.func private @main(%arg0: i32) attributes {dimension_semantics = [#tpu.dimension_semantics<core_parallel>], iteration_bounds = array<i64: 2>, tpu.core_type = #tpu.core_type<sc_scalar_subcore>, window_params = []} {
    return
  }
}

module attributes {stable_mosaic.version = 11 : i64} {
  func.func @_mm_kernel(%arg0: i32, %arg1: i32, %arg2: i32, %arg3: memref<128x128xbf16, #tpu.memory_space<vmem>>, %arg4: memref<128x128xbf16, #tpu.memory_space<vmem>>, %arg5: memref<1x128xf32, #tpu.memory_space<vmem>>, %arg6: memref<128x128xbf16, #tpu.memory_space<vmem>>, %arg7: memref<128x128xf32, #tpu.memory_space<vmem>>) attributes {dimension_semantics = [#tpu.dimension_semantics<parallel>, #tpu.dimension_semantics<parallel>, #tpu.dimension_semantics<arbitrary>], iteration_bounds = array<i64: 1, 1, 1>, scalar_prefetch = 0 : i64, scratch_operands = 1 : i64, tpu.core_type = #tpu.core_type<tc>, window_params = [{transform_indices = @transform_0, window_bounds = array<i64: 128, 128>}, {transform_indices = @transform_1, window_bounds = array<i64: 128, 128>}, {transform_indices = @transform_2, window_bounds = array<i64: 1, 128>}, {transform_indices = @transform_3, window_bounds = array<i64: 128, 128>}]} {
    %c0_i32 = arith.constant 0 : i32
    %0 = arith.cmpi eq, %arg2, %c0_i32 : i32
    %1 = arith.extui %0 : i1 to i32
    %c0_i32_0 = arith.constant 0 : i32
    %2 = arith.cmpi ne, %1, %c0_i32_0 : i32
    scf.if %2 {
      %cst_10 = arith.constant 0.000000e+00 : f32
      %12 = vector.broadcast %cst_10 : f32 to vector<128x128xf32>
      %c0_11 = arith.constant 0 : index
      %c0_12 = arith.constant 0 : index
      %13 = vector.load %arg7[%c0_11, %c0_12] : memref<128x128xf32, #tpu.memory_space<vmem>>, vector<128x128xf32>
      tpu.vector_store %arg7[%c0_11, %c0_12], %12 {strides = array<i32>} : memref<128x128xf32, #tpu.memory_space<vmem>>, vector<128x128xf32>,
    } else {
    }
    %c0 = arith.constant 0 : index
    %c0_1 = arith.constant 0 : index
    %3 = vector.load %arg7[%c0, %c0_1] : memref<128x128xf32, #tpu.memory_space<vmem>>, vector<128x128xf32>
    %c0_2 = arith.constant 0 : index
    %c0_3 = arith.constant 0 : index
    %4 = vector.load %arg3[%c0_2, %c0_3] : memref<128x128xbf16, #tpu.memory_space<vmem>>, vector<128x128xbf16>
    %c0_4 = arith.constant 0 : index
    %c0_5 = arith.constant 0 : index
    %5 = vector.load %arg4[%c0_4, %c0_5] : memref<128x128xbf16, #tpu.memory_space<vmem>>, vector<128x128xbf16>
    %cst = arith.constant dense<0.000000e+00> : vector<128x128xf32>
    %6 = tpu.matmul %4, %5, %cst {dimension_numbers = #tpu.dot_dimension_numbers<[1], [0], [0], [1], [0, 0, 1, 1], [], []>} : vector<128x128xbf16>, vector<128x128xbf16>, vector<128x128xf32> -> vector<128x128xf32>
    %7 = arith.addf %3, %6 : vector<128x128xf32>
    %c0_6 = arith.constant 0 : index
    %c0_7 = arith.constant 0 : index
    %8 = vector.load %arg7[%c0_6, %c0_7] : memref<128x128xf32, #tpu.memory_space<vmem>>, vector<128x128xf32>
    tpu.vector_store %arg7[%c0_6, %c0_7], %7 {strides = array<i32>} : memref<128x128xf32, #tpu.memory_space<vmem>>, vector<128x128xf32>,
    %c0_i32_8 = arith.constant 0 : i32
    %9 = arith.cmpi eq, %arg2, %c0_i32_8 : i32
    %10 = arith.extui %9 : i1 to i32
    %c0_i32_9 = arith.constant 0 : i32
    %11 = arith.cmpi ne, %10, %c0_i32_9 : i32
    scf.if %11 {
      %c0_10 = arith.constant 0 : index
      %c0_11 = arith.constant 0 : index
      %12 = vector.load %arg7[%c0_10, %c0_11] : memref<128x128xf32, #tpu.memory_space<vmem>>, vector<128x128xf32>
      %c0_12 = arith.constant 0 : index
      %c0_13 = arith.constant 0 : index
      %13 = vector.load %arg5[%c0_12, %c0_13] : memref<1x128xf32, #tpu.memory_space<vmem>>, vector<1x128xf32>
      %14 = vector.broadcast %13 : vector<1x128xf32> to vector<128x128xf32>
      %15 = arith.addf %12, %14 : vector<128x128xf32>
      %cst_14 = arith.constant 0.000000e+00 : f32
      %16 = vector.broadcast %cst_14 : f32 to vector<128x128xf32>
      %17 = arith.maximumf %15, %16 : vector<128x128xf32>
      %18 = arith.truncf %17 : vector<128x128xf32> to vector<128x128xbf16>
      %c0_15 = arith.constant 0 : index
      %c0_16 = arith.constant 0 : index
      %19 = vector.load %arg6[%c0_15, %c0_16] : memref<128x128xbf16, #tpu.memory_space<vmem>>, vector<128x128xbf16>
      tpu.vector_store %arg6[%c0_15, %c0_16], %18 {strides = array<i32>} : memref<128x128xbf16, #tpu.memory_space<vmem>>, vector<128x128xbf16>,
    } else {
    }
    return
  }
  func.func @transform_0(%arg0: i32, %arg1: i32, %arg2: i32) -> (i32, i32) {
    %c0_i32 = arith.constant 0 : i32
    return %arg0, %arg2 : i32, i32
  }
  func.func @transform_1(%arg0: i32, %arg1: i32, %arg2: i32) -> (i32, i32) {
    %c0_i32 = arith.constant 0 : i32
    return %arg2, %arg1 : i32, i32
  }
  func.func @transform_2(%arg0: i32, %arg1: i32, %arg2: i32) -> (i32, i32) {
    %c0_i32 = arith.constant 0 : i32
    %c0_i32_0 = arith.constant 0 : i32
    return %c0_i32, %arg1 : i32, i32
  }
  func.func @transform_3(%arg0: i32, %arg1: i32, %arg2: i32) -> (i32, i32) {
    %c0_i32 = arith.constant 0 : i32
    return %arg0, %arg1 : i32, i32
  }
}

module attributes {stable_mosaic.version = 11 : i64} {
  func.func @_mm_kernel(%arg0: i32, %arg1: i32, %arg2: i32, %arg3: memref<128x256xbf16, #tpu.memory_space<vmem>>, %arg4: memref<256x128xbf16, #tpu.memory_space<vmem>>, %arg5: memref<1x128xf32, #tpu.memory_space<vmem>>, %arg6: memref<128x128xbf16, #tpu.memory_space<vmem>>, %arg7: memref<128x128xf32, #tpu.memory_space<vmem>>) attributes {dimension_semantics = [#tpu.dimension_semantics<parallel>, #tpu.dimension_semantics<parallel>, #tpu.dimension_semantics<arbitrary>], iteration_bounds = array<i64: 1, 1, 1>, scalar_prefetch = 0 : i64, scratch_operands = 1 : i64, tpu.core_type = #tpu.core_type<tc>, window_params = [{transform_indices = @transform_0, window_bounds = array<i64: 128, 256>}, {transform_indices = @transform_1, window_bounds = array<i64: 256, 128>}, {transform_indices = @transform_2, window_bounds = array<i64: 1, 128>}, {transform_indices = @transform_3, window_bounds = array<i64: 128, 128>}]} {
    %c0_i32 = arith.constant 0 : i32
    %0 = arith.cmpi eq, %arg2, %c0_i32 : i32
    %1 = arith.extui %0 : i1 to i32
    %c0_i32_0 = arith.constant 0 : i32
    %2 = arith.cmpi ne, %1, %c0_i32_0 : i32
    scf.if %2 {
      %cst_10 = arith.constant 0.000000e+00 : f32
      %12 = vector.broadcast %cst_10 : f32 to vector<128x128xf32>
      %c0_11 = arith.constant 0 : index
      %c0_12 = arith.constant 0 : index
      %13 = vector.load %arg7[%c0_11, %c0_12] : memref<128x128xf32, #tpu.memory_space<vmem>>, vector<128x128xf32>
      tpu.vector_store %arg7[%c0_11, %c0_12], %12 {strides = array<i32>} : memref<128x128xf32, #tpu.memory_space<vmem>>, vector<128x128xf32>,
    } else {
    }
    %c0 = arith.constant 0 : index
    %c0_1 = arith.constant 0 : index
    %3 = vector.load %arg7[%c0, %c0_1] : memref<128x128xf32, #tpu.memory_space<vmem>>, vector<128x128xf32>
    %c0_2 = arith.constant 0 : index
    %c0_3 = arith.constant 0 : index
    %4 = vector.load %arg3[%c0_2, %c0_3] : memref<128x256xbf16, #tpu.memory_space<vmem>>, vector<128x256xbf16>
    %c0_4 = arith.constant 0 : index
    %c0_5 = arith.constant 0 : index
    %5 = vector.load %arg4[%c0_4, %c0_5] : memref<256x128xbf16, #tpu.memory_space<vmem>>, vector<256x128xbf16>
    %cst = arith.constant dense<0.000000e+00> : vector<128x128xf32>
    %6 = tpu.matmul %4, %5, %cst {dimension_numbers = #tpu.dot_dimension_numbers<[1], [0], [0], [1], [0, 0, 1, 1], [], []>} : vector<128x256xbf16>, vector<256x128xbf16>, vector<128x128xf32> -> vector<128x128xf32>
    %7 = arith.addf %3, %6 : vector<128x128xf32>
    %c0_6 = arith.constant 0 : index
    %c0_7 = arith.constant 0 : index
    %8 = vector.load %arg7[%c0_6, %c0_7] : memref<128x128xf32, #tpu.memory_space<vmem>>, vector<128x128xf32>
    tpu.vector_store %arg7[%c0_6, %c0_7], %7 {strides = array<i32>} : memref<128x128xf32, #tpu.memory_space<vmem>>, vector<128x128xf32>,
    %c0_i32_8 = arith.constant 0 : i32
    %9 = arith.cmpi eq, %arg2, %c0_i32_8 : i32
    %10 = arith.extui %9 : i1 to i32
    %c0_i32_9 = arith.constant 0 : i32
    %11 = arith.cmpi ne, %10, %c0_i32_9 : i32
    scf.if %11 {
      %c0_10 = arith.constant 0 : index
      %c0_11 = arith.constant 0 : index
      %12 = vector.load %arg7[%c0_10, %c0_11] : memref<128x128xf32, #tpu.memory_space<vmem>>, vector<128x128xf32>
      %c0_12 = arith.constant 0 : index
      %c0_13 = arith.constant 0 : index
      %13 = vector.load %arg5[%c0_12, %c0_13] : memref<1x128xf32, #tpu.memory_space<vmem>>, vector<1x128xf32>
      %14 = vector.broadcast %13 : vector<1x128xf32> to vector<128x128xf32>
      %15 = arith.addf %12, %14 : vector<128x128xf32>
      %cst_14 = arith.constant 0.000000e+00 : f32
      %16 = vector.broadcast %cst_14 : f32 to vector<128x128xf32>
      %17 = arith.maximumf %15, %16 : vector<128x128xf32>
      %18 = arith.truncf %17 : vector<128x128xf32> to vector<128x128xbf16>
      %c0_15 = arith.constant 0 : index
      %c0_16 = arith.constant 0 : index
      %19 = vector.load %arg6[%c0_15, %c0_16] : memref<128x128xbf16, #tpu.memory_space<vmem>>, vector<128x128xbf16>
      tpu.vector_store %arg6[%c0_15, %c0_16], %18 {strides = array<i32>} : memref<128x128xbf16, #tpu.memory_space<vmem>>, vector<128x128xbf16>,
    } else {
    }
    return
  }
  func.func @transform_0(%arg0: i32, %arg1: i32, %arg2: i32) -> (i32, i32) {
    %c0_i32 = arith.constant 0 : i32
    return %arg0, %arg2 : i32, i32
  }
  func.func @transform_1(%arg0: i32, %arg1: i32, %arg2: i32) -> (i32, i32) {
    %c0_i32 = arith.constant 0 : i32
    return %arg2, %arg1 : i32, i32
  }
  func.func @transform_2(%arg0: i32, %arg1: i32, %arg2: i32) -> (i32, i32) {
    %c0_i32 = arith.constant 0 : i32
    %c0_i32_0 = arith.constant 0 : i32
    return %c0_i32, %arg1 : i32, i32
  }
  func.func @transform_3(%arg0: i32, %arg1: i32, %arg2: i32) -> (i32, i32) {
    %c0_i32 = arith.constant 0 : i32
    return %arg0, %arg1 : i32, i32
  }
}

module attributes {stable_mosaic.version = 11 : i64} {
  func.func @_aspp_kernel(%arg0: i32, %arg1: i32, %arg2: memref<1x8x8x128xbf16, #tpu.memory_space<vmem>>, %arg3: memref<128x128xbf16, #tpu.memory_space<vmem>>, %arg4: memref<9x384x128xbf16, #tpu.memory_space<vmem>>, %arg5: memref<128x128xbf16, #tpu.memory_space<vmem>>, %arg6: memref<5x128x128xbf16, #tpu.memory_space<vmem>>, %arg7: memref<5x128xf32, #tpu.memory_space<vmem>>, %arg8: memref<1x128xf32, #tpu.memory_space<vmem>>, %arg9: memref<1x2x2x128xbf16, #tpu.memory_space<vmem>>, %arg10: memref<4x128xf32, #tpu.memory_space<vmem>>, %arg11: memref<4x128xf32, #tpu.memory_space<vmem>>) attributes {dimension_semantics = [#tpu.dimension_semantics<parallel>, #tpu.dimension_semantics<parallel>], iteration_bounds = array<i64: 2, 1>, scalar_prefetch = 0 : i64, scratch_operands = 2 : i64, tpu.core_type = #tpu.core_type<tc>, window_params = [{transform_indices = @transform_0, window_bounds = array<i64: 1, 8, 8, 128>}, {pipeline_mode = #tpu.pipeline_mode<synchronous>, transform_indices = @transform_1, window_bounds = array<i64: 128, 128>}, {pipeline_mode = #tpu.pipeline_mode<synchronous>, transform_indices = @transform_2, window_bounds = array<i64: 9, 384, 128>}, {pipeline_mode = #tpu.pipeline_mode<synchronous>, transform_indices = @transform_3, window_bounds = array<i64: 128, 128>}, {pipeline_mode = #tpu.pipeline_mode<synchronous>, transform_indices = @transform_4, window_bounds = array<i64: 5, 128, 128>}, {pipeline_mode = #tpu.pipeline_mode<synchronous>, transform_indices = @transform_5, window_bounds = array<i64: 5, 128>}, {pipeline_mode = #tpu.pipeline_mode<synchronous>, transform_indices = @transform_6, window_bounds = array<i64: 1, 128>}, {transform_indices = @transform_7, window_bounds = array<i64: 1, 2, 2, 128>}]} {
    %c2_i32 = arith.constant 2 : i32
    %0 = arith.muli %arg1, %c2_i32 : i32
    %c3_i32 = arith.constant 3 : i32
    %1 = arith.addi %0, %c3_i32 : i32
    %c0 = arith.constant 0 : index
    %2 = arith.index_cast %1 : i32 to index
    %c3 = arith.constant 3 : index
    %c0_0 = arith.constant 0 : index
    %3 = vector.load %arg2[%c0, %2, %c3, %c0_0] : memref<1x8x8x128xbf16, #tpu.memory_space<vmem>>, vector<1x2x2x128xbf16>
    %4 = vector.shape_cast %3 : vector<1x2x2x128xbf16> to vector<2x2x128xbf16>
    %5 = vector.shape_cast %4 : vector<2x2x128xbf16> to vector<4x128xbf16>
    %c0_1 = arith.constant 0 : index
    %c0_2 = arith.constant 0 : index
    %6 = vector.load %arg3[%c0_1, %c0_2] : memref<128x128xbf16, #tpu.memory_space<vmem>>, vector<128x128xbf16>
    %cst = arith.constant dense<0.000000e+00> : vector<4x128xf32>
    %7 = tpu.matmul %5, %6, %cst {dimension_numbers = #tpu.dot_dimension_numbers<[1], [0], [0], [1], [0, 0, 1, 1], [], []>} : vector<4x128xbf16>, vector<128x128xbf16>, vector<4x128xf32> -> vector<4x128xf32>
    %c0_3 = arith.constant 0 : index
    %c0_4 = arith.constant 0 : index
    %8 = vector.load %arg7[%c0_3, %c0_4] : memref<5x128xf32, #tpu.memory_space<vmem>>, vector<1x128xf32>
    %9 = vector.broadcast %8 : vector<1x128xf32> to vector<4x128xf32>
    %10 = arith.addf %7, %9 : vector<4x128xf32>
    %cst_5 = arith.constant 0.000000e+00 : f32
    %11 = vector.broadcast %cst_5 : f32 to vector<4x128xf32>
    %12 = arith.maximumf %10, %11 : vector<4x128xf32>
    %13 = arith.truncf %12 : vector<4x128xf32> to vector<4x128xbf16>
    %c0_6 = arith.constant 0 : index
    %c0_7 = arith.constant 0 : index
    %c0_8 = arith.constant 0 : index
    %14 = vector.load %arg6[%c0_6, %c0_7, %c0_8] : memref<5x128x128xbf16, #tpu.memory_space<vmem>>, vector<1x128x128xbf16>
    %15 = vector.shape_cast %14 : vector<1x128x128xbf16> to vector<128x128xbf16>
    %cst_9 = arith.constant dense<0.000000e+00> : vector<4x128xf32>
    %16 = tpu.matmul %13, %15, %cst_9 {dimension_numbers = #tpu.dot_dimension_numbers<[1], [0], [0], [1], [0, 0, 1, 1], [], []>} : vector<4x128xbf16>, vector<128x128xbf16>, vector<4x128xf32> -> vector<4x128xf32>
    %c0_10 = arith.constant 0 : index
    %c0_11 = arith.constant 0 : index
    %17 = vector.load %arg10[%c0_10, %c0_11] : memref<4x128xf32, #tpu.memory_space<vmem>>, vector<4x128xf32>
    tpu.vector_store %arg10[%c0_10, %c0_11], %16 {strides = array<i32>} : memref<4x128xf32, #tpu.memory_space<vmem>>, vector<4x128xf32>,
    %c3_i32_12 = arith.constant 3 : i32
    %18 = arith.addi %0, %c3_i32_12 : i32
    %c-1_i32 = arith.constant -1 : i32
    %19 = arith.addi %18, %c-1_i32 : i32
    %c0_13 = arith.constant 0 : index
    %20 = arith.index_cast %19 : i32 to index
    %c0_14 = arith.constant 0 : index
    %c0_15 = arith.constant 0 : index
    %21 = vector.load %arg2[%c0_13, %20, %c0_14, %c0_15] : memref<1x8x8x128xbf16, #tpu.memory_space<vmem>>, vector<1x2x8x128xbf16>
    %22 = vector.shape_cast %21 : vector<1x2x8x128xbf16> to vector<2x8x128xbf16>
    %23 = vector.extract_strided_slice %22 {offsets = [0, 2, 0], sizes = [2, 2, 128], strides = [1, 1, 1]} : vector<2x8x128xbf16> to vector<2x2x128xbf16>
    %24 = vector.extract_strided_slice %22 {offsets = [0, 3, 0], sizes = [2, 2, 128], strides = [1, 1, 1]} : vector<2x8x128xbf16> to vector<2x2x128xbf16>
    %25 = vector.extract_strided_slice %22 {offsets = [0, 4, 0], sizes = [2, 2, 128], strides = [1, 1, 1]} : vector<2x8x128xbf16> to vector<2x2x128xbf16>
    %26 = tpu.concatenate %23, %24, %25 in 2 : vector<2x2x128xbf16>, vector<2x2x128xbf16>, vector<2x2x128xbf16> -> vector<2x2x384xbf16>
    %27 = vector.shape_cast %26 : vector<2x2x384xbf16> to vector<4x384xbf16>
    %c0_16 = arith.constant 0 : index
    %c0_17 = arith.constant 0 : index
    %c0_18 = arith.constant 0 : index
    %28 = vector.load %arg4[%c0_16, %c0_17, %c0_18] : memref<9x384x128xbf16, #tpu.memory_space<vmem>>, vector<1x384x128xbf16>
    %29 = vector.shape_cast %28 : vector<1x384x128xbf16> to vector<384x128xbf16>
    %cst_19 = arith.constant dense<0.000000e+00> : vector<4x128xf32>
    %30 = tpu.matmul %27, %29, %cst_19 {dimension_numbers = #tpu.dot_dimension_numbers<[1], [0], [0], [1], [0, 0, 1, 1], [], []>} : vector<4x384xbf16>, vector<384x128xbf16>, vector<4x128xf32> -> vector<4x128xf32>
    %c0_20 = arith.constant 0 : index
    %c0_21 = arith.constant 0 : index
    %31 = vector.load %arg11[%c0_20, %c0_21] : memref<4x128xf32, #tpu.memory_space<vmem>>, vector<4x128xf32>
    tpu.vector_store %arg11[%c0_20, %c0_21], %30 {strides = array<i32>} : memref<4x128xf32, #tpu.memory_space<vmem>>, vector<4x128xf32>,
    %c3_i32_22 = arith.constant 3 : i32
    %32 = arith.addi %0, %c3_i32_22 : i32
    %c0_i32 = arith.constant 0 : i32
    %33 = arith.addi %32, %c0_i32 : i32
    %c0_23 = arith.constant 0 : index
    %34 = arith.index_cast %33 : i32 to index
    %c0_24 = arith.constant 0 : index
    %c0_25 = arith.constant 0 : index
    %35 = vector.load %arg2[%c0_23, %34, %c0_24, %c0_25] : memref<1x8x8x128xbf16, #tpu.memory_space<vmem>>, vector<1x2x8x128xbf16>
    %36 = vector.shape_cast %35 : vector<1x2x8x128xbf16> to vector<2x8x128xbf16>
    %37 = vector.extract_strided_slice %36 {offsets = [0, 2, 0], sizes = [2, 2, 128], strides = [1, 1, 1]} : vector<2x8x128xbf16> to vector<2x2x128xbf16>
    %38 = vector.extract_strided_slice %36 {offsets = [0, 3, 0], sizes = [2, 2, 128], strides = [1, 1, 1]} : vector<2x8x128xbf16> to vector<2x2x128xbf16>
    %39 = vector.extract_strided_slice %36 {offsets = [0, 4, 0], sizes = [2, 2, 128], strides = [1, 1, 1]} : vector<2x8x128xbf16> to vector<2x2x128xbf16>
    %40 = tpu.concatenate %37, %38, %39 in 2 : vector<2x2x128xbf16>, vector<2x2x128xbf16>, vector<2x2x128xbf16> -> vector<2x2x384xbf16>
    %41 = vector.shape_cast %40 : vector<2x2x384xbf16> to vector<4x384xbf16>
    %c1 = arith.constant 1 : index
    %c0_26 = arith.constant 0 : index
    %c0_27 = arith.constant 0 : index
    %42 = vector.load %arg4[%c1, %c0_26, %c0_27] : memref<9x384x128xbf16, #tpu.memory_space<vmem>>, vector<1x384x128xbf16>
    %43 = vector.shape_cast %42 : vector<1x384x128xbf16> to vector<384x128xbf16>
    %cst_28 = arith.constant dense<0.000000e+00> : vector<4x128xf32>
    %44 = tpu.matmul %41, %43, %cst_28 {dimension_numbers = #tpu.dot_dimension_numbers<[1], [0], [0], [1], [0, 0, 1, 1], [], []>} : vector<4x384xbf16>, vector<384x128xbf16>, vector<4x128xf32> -> vector<4x128xf32>
    %c0_29 = arith.constant 0 : index
    %c0_30 = arith.constant 0 : index
    %45 = vector.load %arg11[%c0_29, %c0_30] : memref<4x128xf32, #tpu.memory_space<vmem>>, vector<4x128xf32>
    %46 = arith.addf %45, %44 : vector<4x128xf32>
    %c0_31 = arith.constant 0 : index
    %c0_32 = arith.constant 0 : index
    %47 = vector.load %arg11[%c0_31, %c0_32] : memref<4x128xf32, #tpu.memory_space<vmem>>, vector<4x128xf32>
    tpu.vector_store %arg11[%c0_31, %c0_32], %46 {strides = array<i32>} : memref<4x128xf32, #tpu.memory_space<vmem>>, vector<4x128xf32>,
    %c3_i32_33 = arith.constant 3 : i32
    %48 = arith.addi %0, %c3_i32_33 : i32
    %c1_i32 = arith.constant 1 : i32
    %49 = arith.addi %48, %c1_i32 : i32
    %c0_34 = arith.constant 0 : index
    %50 = arith.index_cast %49 : i32 to index
    %c0_35 = arith.constant 0 : index
    %c0_36 = arith.constant 0 : index
    %51 = vector.load %arg2[%c0_34, %50, %c0_35, %c0_36] : memref<1x8x8x128xbf16, #tpu.memory_space<vmem>>, vector<1x2x8x128xbf16>
    %52 = vector.shape_cast %51 : vector<1x2x8x128xbf16> to vector<2x8x128xbf16>
    %53 = vector.extract_strided_slice %52 {offsets = [0, 2, 0], sizes = [2, 2, 128], strides = [1, 1, 1]} : vector<2x8x128xbf16> to vector<2x2x128xbf16>
    %54 = vector.extract_strided_slice %52 {offsets = [0, 3, 0], sizes = [2, 2, 128], strides = [1, 1, 1]} : vector<2x8x128xbf16> to vector<2x2x128xbf16>
    %55 = vector.extract_strided_slice %52 {offsets = [0, 4, 0], sizes = [2, 2, 128], strides = [1, 1, 1]} : vector<2x8x128xbf16> to vector<2x2x128xbf16>
    %56 = tpu.concatenate %53, %54, %55 in 2 : vector<2x2x128xbf16>, vector<2x2x128xbf16>, vector<2x2x128xbf16> -> vector<2x2x384xbf16>
    %57 = vector.shape_cast %56 : vector<2x2x384xbf16> to vector<4x384xbf16>
    %c2 = arith.constant 2 : index
    %c0_37 = arith.constant 0 : index
    %c0_38 = arith.constant 0 : index
    %58 = vector.load %arg4[%c2, %c0_37, %c0_38] : memref<9x384x128xbf16, #tpu.memory_space<vmem>>, vector<1x384x128xbf16>
    %59 = vector.shape_cast %58 : vector<1x384x128xbf16> to vector<384x128xbf16>
    %cst_39 = arith.constant dense<0.000000e+00> : vector<4x128xf32>
    %60 = tpu.matmul %57, %59, %cst_39 {dimension_numbers = #tpu.dot_dimension_numbers<[1], [0], [0], [1], [0, 0, 1, 1], [], []>} : vector<4x384xbf16>, vector<384x128xbf16>, vector<4x128xf32> -> vector<4x128xf32>
    %c0_40 = arith.constant 0 : index
    %c0_41 = arith.constant 0 : index
    %61 = vector.load %arg11[%c0_40, %c0_41] : memref<4x128xf32, #tpu.memory_space<vmem>>, vector<4x128xf32>
    %62 = arith.addf %61, %60 : vector<4x128xf32>
    %c0_42 = arith.constant 0 : index
    %c0_43 = arith.constant 0 : index
    %63 = vector.load %arg11[%c0_42, %c0_43] : memref<4x128xf32, #tpu.memory_space<vmem>>, vector<4x128xf32>
    tpu.vector_store %arg11[%c0_42, %c0_43], %62 {strides = array<i32>} : memref<4x128xf32, #tpu.memory_space<vmem>>, vector<4x128xf32>,
    %c0_44 = arith.constant 0 : index
    %c0_45 = arith.constant 0 : index
    %64 = vector.load %arg11[%c0_44, %c0_45] : memref<4x128xf32, #tpu.memory_space<vmem>>, vector<4x128xf32>
    %c1_46 = arith.constant 1 : index
    %c0_47 = arith.constant 0 : index
    %65 = vector.load %arg7[%c1_46, %c0_47] : memref<5x128xf32, #tpu.memory_space<vmem>>, vector<1x128xf32>
    %66 = vector.broadcast %65 : vector<1x128xf32> to vector<4x128xf32>
    %67 = arith.addf %64, %66 : vector<4x128xf32>
    %cst_48 = arith.constant 0.000000e+00 : f32
    %68 = vector.broadcast %cst_48 : f32 to vector<4x128xf32>
    %69 = arith.maximumf %67, %68 : vector<4x128xf32>
    %c0_49 = arith.constant 0 : index
    %c0_50 = arith.constant 0 : index
    %70 = vector.load %arg10[%c0_49, %c0_50] : memref<4x128xf32, #tpu.memory_space<vmem>>, vector<4x128xf32>
    %71 = arith.truncf %69 : vector<4x128xf32> to vector<4x128xbf16>
    %c1_51 = arith.constant 1 : index
    %c0_52 = arith.constant 0 : index
    %c0_53 = arith.constant 0 : index
    %72 = vector.load %arg6[%c1_51, %c0_52, %c0_53] : memref<5x128x128xbf16, #tpu.memory_space<vmem>>, vector<1x128x128xbf16>
    %73 = vector.shape_cast %72 : vector<1x128x128xbf16> to vector<128x128xbf16>
    %cst_54 = arith.constant dense<0.000000e+00> : vector<4x128xf32>
    %74 = tpu.matmul %71, %73, %cst_54 {dimension_numbers = #tpu.dot_dimension_numbers<[1], [0], [0], [1], [0, 0, 1, 1], [], []>} : vector<4x128xbf16>, vector<128x128xbf16>, vector<4x128xf32> -> vector<4x128xf32>
    %75 = arith.addf %70, %74 : vector<4x128xf32>
    %c0_55 = arith.constant 0 : index
    %c0_56 = arith.constant 0 : index
    %76 = vector.load %arg10[%c0_55, %c0_56] : memref<4x128xf32, #tpu.memory_space<vmem>>, vector<4x128xf32>
    tpu.vector_store %arg10[%c0_55, %c0_56], %75 {strides = array<i32>} : memref<4x128xf32, #tpu.memory_space<vmem>>, vector<4x128xf32>,
    %c3_i32_57 = arith.constant 3 : i32
    %77 = arith.addi %0, %c3_i32_57 : i32
    %c-2_i32 = arith.constant -2 : i32
    %78 = arith.addi %77, %c-2_i32 : i32
    %c0_58 = arith.constant 0 : index
    %79 = arith.index_cast %78 : i32 to index
    %c0_59 = arith.constant 0 : index
    %c0_60 = arith.constant 0 : index
    %80 = vector.load %arg2[%c0_58, %79, %c0_59, %c0_60] : memref<1x8x8x128xbf16, #tpu.memory_space<vmem>>, vector<1x2x8x128xbf16>
    %81 = vector.shape_cast %80 : vector<1x2x8x128xbf16> to vector<2x8x128xbf16>
    %82 = vector.extract_strided_slice %81 {offsets = [0, 1, 0], sizes = [2, 2, 128], strides = [1, 1, 1]} : vector<2x8x128xbf16> to vector<2x2x128xbf16>
    %83 = vector.extract_strided_slice %81 {offsets = [0, 3, 0], sizes = [2, 2, 128], strides = [1, 1, 1]} : vector<2x8x128xbf16> to vector<2x2x128xbf16>
    %84 = vector.extract_strided_slice %81 {offsets = [0, 5, 0], sizes = [2, 2, 128], strides = [1, 1, 1]} : vector<2x8x128xbf16> to vector<2x2x128xbf16>
    %85 = tpu.concatenate %82, %83, %84 in 2 : vector<2x2x128xbf16>, vector<2x2x128xbf16>, vector<2x2x128xbf16> -> vector<2x2x384xbf16>
    %86 = vector.shape_cast %85 : vector<2x2x384xbf16> to vector<4x384xbf16>
    %c3_61 = arith.constant 3 : index
    %c0_62 = arith.constant 0 : index
    %c0_63 = arith.constant 0 : index
    %87 = vector.load %arg4[%c3_61, %c0_62, %c0_63] : memref<9x384x128xbf16, #tpu.memory_space<vmem>>, vector<1x384x128xbf16>
    %88 = vector.shape_cast %87 : vector<1x384x128xbf16> to vector<384x128xbf16>
    %cst_64 = arith.constant dense<0.000000e+00> : vector<4x128xf32>
    %89 = tpu.matmul %86, %88, %cst_64 {dimension_numbers = #tpu.dot_dimension_numbers<[1], [0], [0], [1], [0, 0, 1, 1], [], []>} : vector<4x384xbf16>, vector<384x128xbf16>, vector<4x128xf32> -> vector<4x128xf32>
    %c0_65 = arith.constant 0 : index
    %c0_66 = arith.constant 0 : index
    %90 = vector.load %arg11[%c0_65, %c0_66] : memref<4x128xf32, #tpu.memory_space<vmem>>, vector<4x128xf32>
    tpu.vector_store %arg11[%c0_65, %c0_66], %89 {strides = array<i32>} : memref<4x128xf32, #tpu.memory_space<vmem>>, vector<4x128xf32>,
    %c3_i32_67 = arith.constant 3 : i32
    %91 = arith.addi %0, %c3_i32_67 : i32
    %c0_i32_68 = arith.constant 0 : i32
    %92 = arith.addi %91, %c0_i32_68 : i32
    %c0_69 = arith.constant 0 : index
    %93 = arith.index_cast %92 : i32 to index
    %c0_70 = arith.constant 0 : index
    %c0_71 = arith.constant 0 : index
    %94 = vector.load %arg2[%c0_69, %93, %c0_70, %c0_71] : memref<1x8x8x128xbf16, #tpu.memory_space<vmem>>, vector<1x2x8x128xbf16>
    %95 = vector.shape_cast %94 : vector<1x2x8x128xbf16> to vector<2x8x128xbf16>
    %96 = vector.extract_strided_slice %95 {offsets = [0, 1, 0], sizes = [2, 2, 128], strides = [1, 1, 1]} : vector<2x8x128xbf16> to vector<2x2x128xbf16>
    %97 = vector.extract_strided_slice %95 {offsets = [0, 3, 0], sizes = [2, 2, 128], strides = [1, 1, 1]} : vector<2x8x128xbf16> to vector<2x2x128xbf16>
    %98 = vector.extract_strided_slice %95 {offsets = [0, 5, 0], sizes = [2, 2, 128], strides = [1, 1, 1]} : vector<2x8x128xbf16> to vector<2x2x128xbf16>
    %99 = tpu.concatenate %96, %97, %98 in 2 : vector<2x2x128xbf16>, vector<2x2x128xbf16>, vector<2x2x128xbf16> -> vector<2x2x384xbf16>
    %100 = vector.shape_cast %99 : vector<2x2x384xbf16> to vector<4x384xbf16>
    %c4 = arith.constant 4 : index
    %c0_72 = arith.constant 0 : index
    %c0_73 = arith.constant 0 : index
    %101 = vector.load %arg4[%c4, %c0_72, %c0_73] : memref<9x384x128xbf16, #tpu.memory_space<vmem>>, vector<1x384x128xbf16>
    %102 = vector.shape_cast %101 : vector<1x384x128xbf16> to vector<384x128xbf16>
    %cst_74 = arith.constant dense<0.000000e+00> : vector<4x128xf32>
    %103 = tpu.matmul %100, %102, %cst_74 {dimension_numbers = #tpu.dot_dimension_numbers<[1], [0], [0], [1], [0, 0, 1, 1], [], []>} : vector<4x384xbf16>, vector<384x128xbf16>, vector<4x128xf32> -> vector<4x128xf32>
    %c0_75 = arith.constant 0 : index
    %c0_76 = arith.constant 0 : index
    %104 = vector.load %arg11[%c0_75, %c0_76] : memref<4x128xf32, #tpu.memory_space<vmem>>, vector<4x128xf32>
    %105 = arith.addf %104, %103 : vector<4x128xf32>
    %c0_77 = arith.constant 0 : index
    %c0_78 = arith.constant 0 : index
    %106 = vector.load %arg11[%c0_77, %c0_78] : memref<4x128xf32, #tpu.memory_space<vmem>>, vector<4x128xf32>
    tpu.vector_store %arg11[%c0_77, %c0_78], %105 {strides = array<i32>} : memref<4x128xf32, #tpu.memory_space<vmem>>, vector<4x128xf32>,
    %c3_i32_79 = arith.constant 3 : i32
    %107 = arith.addi %0, %c3_i32_79 : i32
    %c2_i32_80 = arith.constant 2 : i32
    %108 = arith.addi %107, %c2_i32_80 : i32
    %c0_81 = arith.constant 0 : index
    %109 = arith.index_cast %108 : i32 to index
    %c0_82 = arith.constant 0 : index
    %c0_83 = arith.constant 0 : index
    %110 = vector.load %arg2[%c0_81, %109, %c0_82, %c0_83] : memref<1x8x8x128xbf16, #tpu.memory_space<vmem>>, vector<1x2x8x128xbf16>
    %111 = vector.shape_cast %110 : vector<1x2x8x128xbf16> to vector<2x8x128xbf16>
    %112 = vector.extract_strided_slice %111 {offsets = [0, 1, 0], sizes = [2, 2, 128], strides = [1, 1, 1]} : vector<2x8x128xbf16> to vector<2x2x128xbf16>
    %113 = vector.extract_strided_slice %111 {offsets = [0, 3, 0], sizes = [2, 2, 128], strides = [1, 1, 1]} : vector<2x8x128xbf16> to vector<2x2x128xbf16>
    %114 = vector.extract_strided_slice %111 {offsets = [0, 5, 0], sizes = [2, 2, 128], strides = [1, 1, 1]} : vector<2x8x128xbf16> to vector<2x2x128xbf16>
    %115 = tpu.concatenate %112, %113, %114 in 2 : vector<2x2x128xbf16>, vector<2x2x128xbf16>, vector<2x2x128xbf16> -> vector<2x2x384xbf16>
    %116 = vector.shape_cast %115 : vector<2x2x384xbf16> to vector<4x384xbf16>
    %c5 = arith.constant 5 : index
    %c0_84 = arith.constant 0 : index
    %c0_85 = arith.constant 0 : index
    %117 = vector.load %arg4[%c5, %c0_84, %c0_85] : memref<9x384x128xbf16, #tpu.memory_space<vmem>>, vector<1x384x128xbf16>
    %118 = vector.shape_cast %117 : vector<1x384x128xbf16> to vector<384x128xbf16>
    %cst_86 = arith.constant dense<0.000000e+00> : vector<4x128xf32>
    %119 = tpu.matmul %116, %118, %cst_86 {dimension_numbers = #tpu.dot_dimension_numbers<[1], [0], [0], [1], [0, 0, 1, 1], [], []>} : vector<4x384xbf16>, vector<384x128xbf16>, vector<4x128xf32> -> vector<4x128xf32>
    %c0_87 = arith.constant 0 : index
    %c0_88 = arith.constant 0 : index
    %120 = vector.load %arg11[%c0_87, %c0_88] : memref<4x128xf32, #tpu.memory_space<vmem>>, vector<4x128xf32>
    %121 = arith.addf %120, %119 : vector<4x128xf32>
    %c0_89 = arith.constant 0 : index
    %c0_90 = arith.constant 0 : index
    %122 = vector.load %arg11[%c0_89, %c0_90] : memref<4x128xf32, #tpu.memory_space<vmem>>, vector<4x128xf32>
    tpu.vector_store %arg11[%c0_89, %c0_90], %121 {strides = array<i32>} : memref<4x128xf32, #tpu.memory_space<vmem>>, vector<4x128xf32>,
    %c0_91 = arith.constant 0 : index
    %c0_92 = arith.constant 0 : index
    %123 = vector.load %arg11[%c0_91, %c0_92] : memref<4x128xf32, #tpu.memory_space<vmem>>, vector<4x128xf32>
    %c2_93 = arith.constant 2 : index
    %c0_94 = arith.constant 0 : index
    %124 = vector.load %arg7[%c2_93, %c0_94] : memref<5x128xf32, #tpu.memory_space<vmem>>, vector<1x128xf32>
    %125 = vector.broadcast %124 : vector<1x128xf32> to vector<4x128xf32>
    %126 = arith.addf %123, %125 : vector<4x128xf32>
    %cst_95 = arith.constant 0.000000e+00 : f32
    %127 = vector.broadcast %cst_95 : f32 to vector<4x128xf32>
    %128 = arith.maximumf %126, %127 : vector<4x128xf32>
    %c0_96 = arith.constant 0 : index
    %c0_97 = arith.constant 0 : index
    %129 = vector.load %arg10[%c0_96, %c0_97] : memref<4x128xf32, #tpu.memory_space<vmem>>, vector<4x128xf32>
    %130 = arith.truncf %128 : vector<4x128xf32> to vector<4x128xbf16>
    %c2_98 = arith.constant 2 : index
    %c0_99 = arith.constant 0 : index
    %c0_100 = arith.constant 0 : index
    %131 = vector.load %arg6[%c2_98, %c0_99, %c0_100] : memref<5x128x128xbf16, #tpu.memory_space<vmem>>, vector<1x128x128xbf16>
    %132 = vector.shape_cast %131 : vector<1x128x128xbf16> to vector<128x128xbf16>
    %cst_101 = arith.constant dense<0.000000e+00> : vector<4x128xf32>
    %133 = tpu.matmul %130, %132, %cst_101 {dimension_numbers = #tpu.dot_dimension_numbers<[1], [0], [0], [1], [0, 0, 1, 1], [], []>} : vector<4x128xbf16>, vector<128x128xbf16>, vector<4x128xf32> -> vector<4x128xf32>
    %134 = arith.addf %129, %133 : vector<4x128xf32>
    %c0_102 = arith.constant 0 : index
    %c0_103 = arith.constant 0 : index
    %135 = vector.load %arg10[%c0_102, %c0_103] : memref<4x128xf32, #tpu.memory_space<vmem>>, vector<4x128xf32>
    tpu.vector_store %arg10[%c0_102, %c0_103], %134 {strides = array<i32>} : memref<4x128xf32, #tpu.memory_space<vmem>>, vector<4x128xf32>,
    %c3_i32_104 = arith.constant 3 : i32
    %136 = arith.addi %0, %c3_i32_104 : i32
    %c-3_i32 = arith.constant -3 : i32
    %137 = arith.addi %136, %c-3_i32 : i32
    %c0_105 = arith.constant 0 : index
    %138 = arith.index_cast %137 : i32 to index
    %c0_106 = arith.constant 0 : index
    %c0_107 = arith.constant 0 : index
    %139 = vector.load %arg2[%c0_105, %138, %c0_106, %c0_107] : memref<1x8x8x128xbf16, #tpu.memory_space<vmem>>, vector<1x2x8x128xbf16>
    %140 = vector.shape_cast %139 : vector<1x2x8x128xbf16> to vector<2x8x128xbf16>
    %141 = vector.extract_strided_slice %140 {offsets = [0, 0, 0], sizes = [2, 2, 128], strides = [1, 1, 1]} : vector<2x8x128xbf16> to vector<2x2x128xbf16>
    %142 = vector.extract_strided_slice %140 {offsets = [0, 3, 0], sizes = [2, 2, 128], strides = [1, 1, 1]} : vector<2x8x128xbf16> to vector<2x2x128xbf16>
    %143 = vector.extract_strided_slice %140 {offsets = [0, 6, 0], sizes = [2, 2, 128], strides = [1, 1, 1]} : vector<2x8x128xbf16> to vector<2x2x128xbf16>
    %144 = tpu.concatenate %141, %142, %143 in 2 : vector<2x2x128xbf16>, vector<2x2x128xbf16>, vector<2x2x128xbf16> -> vector<2x2x384xbf16>
    %145 = vector.shape_cast %144 : vector<2x2x384xbf16> to vector<4x384xbf16>
    %c6 = arith.constant 6 : index
    %c0_108 = arith.constant 0 : index
    %c0_109 = arith.constant 0 : index
    %146 = vector.load %arg4[%c6, %c0_108, %c0_109] : memref<9x384x128xbf16, #tpu.memory_space<vmem>>, vector<1x384x128xbf16>
    %147 = vector.shape_cast %146 : vector<1x384x128xbf16> to vector<384x128xbf16>
    %cst_110 = arith.constant dense<0.000000e+00> : vector<4x128xf32>
    %148 = tpu.matmul %145, %147, %cst_110 {dimension_numbers = #tpu.dot_dimension_numbers<[1], [0], [0], [1], [0, 0, 1, 1], [], []>} : vector<4x384xbf16>, vector<384x128xbf16>, vector<4x128xf32> -> vector<4x128xf32>
    %c0_111 = arith.constant 0 : index
    %c0_112 = arith.constant 0 : index
    %149 = vector.load %arg11[%c0_111, %c0_112] : memref<4x128xf32, #tpu.memory_space<vmem>>, vector<4x128xf32>
    tpu.vector_store %arg11[%c0_111, %c0_112], %148 {strides = array<i32>} : memref<4x128xf32, #tpu.memory_space<vmem>>, vector<4x128xf32>,
    %c3_i32_113 = arith.constant 3 : i32
    %150 = arith.addi %0, %c3_i32_113 : i32
    %c0_i32_114 = arith.constant 0 : i32
    %151 = arith.addi %150, %c0_i32_114 : i32
    %c0_115 = arith.constant 0 : index
    %152 = arith.index_cast %151 : i32 to index
    %c0_116 = arith.constant 0 : index
    %c0_117 = arith.constant 0 : index
    %153 = vector.load %arg2[%c0_115, %152, %c0_116, %c0_117] : memref<1x8x8x128xbf16, #tpu.memory_space<vmem>>, vector<1x2x8x128xbf16>
    %154 = vector.shape_cast %153 : vector<1x2x8x128xbf16> to vector<2x8x128xbf16>
    %155 = vector.extract_strided_slice %154 {offsets = [0, 0, 0], sizes = [2, 2, 128], strides = [1, 1, 1]} : vector<2x8x128xbf16> to vector<2x2x128xbf16>
    %156 = vector.extract_strided_slice %154 {offsets = [0, 3, 0], sizes = [2, 2, 128], strides = [1, 1, 1]} : vector<2x8x128xbf16> to vector<2x2x128xbf16>
    %157 = vector.extract_strided_slice %154 {offsets = [0, 6, 0], sizes = [2, 2, 128], strides = [1, 1, 1]} : vector<2x8x128xbf16> to vector<2x2x128xbf16>
    %158 = tpu.concatenate %155, %156, %157 in 2 : vector<2x2x128xbf16>, vector<2x2x128xbf16>, vector<2x2x128xbf16> -> vector<2x2x384xbf16>
    %159 = vector.shape_cast %158 : vector<2x2x384xbf16> to vector<4x384xbf16>
    %c7 = arith.constant 7 : index
    %c0_118 = arith.constant 0 : index
    %c0_119 = arith.constant 0 : index
    %160 = vector.load %arg4[%c7, %c0_118, %c0_119] : memref<9x384x128xbf16, #tpu.memory_space<vmem>>, vector<1x384x128xbf16>
    %161 = vector.shape_cast %160 : vector<1x384x128xbf16> to vector<384x128xbf16>
    %cst_120 = arith.constant dense<0.000000e+00> : vector<4x128xf32>
    %162 = tpu.matmul %159, %161, %cst_120 {dimension_numbers = #tpu.dot_dimension_numbers<[1], [0], [0], [1], [0, 0, 1, 1], [], []>} : vector<4x384xbf16>, vector<384x128xbf16>, vector<4x128xf32> -> vector<4x128xf32>
    %c0_121 = arith.constant 0 : index
    %c0_122 = arith.constant 0 : index
    %163 = vector.load %arg11[%c0_121, %c0_122] : memref<4x128xf32, #tpu.memory_space<vmem>>, vector<4x128xf32>
    %164 = arith.addf %163, %162 : vector<4x128xf32>
    %c0_123 = arith.constant 0 : index
    %c0_124 = arith.constant 0 : index
    %165 = vector.load %arg11[%c0_123, %c0_124] : memref<4x128xf32, #tpu.memory_space<vmem>>, vector<4x128xf32>
    tpu.vector_store %arg11[%c0_123, %c0_124], %164 {strides = array<i32>} : memref<4x128xf32, #tpu.memory_space<vmem>>, vector<4x128xf32>,
    %c3_i32_125 = arith.constant 3 : i32
    %166 = arith.addi %0, %c3_i32_125 : i32
    %c3_i32_126 = arith.constant 3 : i32
    %167 = arith.addi %166, %c3_i32_126 : i32
    %c0_127 = arith.constant 0 : index
    %168 = arith.index_cast %167 : i32 to index
    %c0_128 = arith.constant 0 : index
    %c0_129 = arith.constant 0 : index
    %169 = vector.load %arg2[%c0_127, %168, %c0_128, %c0_129] : memref<1x8x8x128xbf16, #tpu.memory_space<vmem>>, vector<1x2x8x128xbf16>
    %170 = vector.shape_cast %169 : vector<1x2x8x128xbf16> to vector<2x8x128xbf16>
    %171 = vector.extract_strided_slice %170 {offsets = [0, 0, 0], sizes = [2, 2, 128], strides = [1, 1, 1]} : vector<2x8x128xbf16> to vector<2x2x128xbf16>
    %172 = vector.extract_strided_slice %170 {offsets = [0, 3, 0], sizes = [2, 2, 128], strides = [1, 1, 1]} : vector<2x8x128xbf16> to vector<2x2x128xbf16>
    %173 = vector.extract_strided_slice %170 {offsets = [0, 6, 0], sizes = [2, 2, 128], strides = [1, 1, 1]} : vector<2x8x128xbf16> to vector<2x2x128xbf16>
    %174 = tpu.concatenate %171, %172, %173 in 2 : vector<2x2x128xbf16>, vector<2x2x128xbf16>, vector<2x2x128xbf16> -> vector<2x2x384xbf16>
    %175 = vector.shape_cast %174 : vector<2x2x384xbf16> to vector<4x384xbf16>
    %c8 = arith.constant 8 : index
    %c0_130 = arith.constant 0 : index
    %c0_131 = arith.constant 0 : index
    %176 = vector.load %arg4[%c8, %c0_130, %c0_131] : memref<9x384x128xbf16, #tpu.memory_space<vmem>>, vector<1x384x128xbf16>
    %177 = vector.shape_cast %176 : vector<1x384x128xbf16> to vector<384x128xbf16>
    %cst_132 = arith.constant dense<0.000000e+00> : vector<4x128xf32>
    %178 = tpu.matmul %175, %177, %cst_132 {dimension_numbers = #tpu.dot_dimension_numbers<[1], [0], [0], [1], [0, 0, 1, 1], [], []>} : vector<4x384xbf16>, vector<384x128xbf16>, vector<4x128xf32> -> vector<4x128xf32>
    %c0_133 = arith.constant 0 : index
    %c0_134 = arith.constant 0 : index
    %179 = vector.load %arg11[%c0_133, %c0_134] : memref<4x128xf32, #tpu.memory_space<vmem>>, vector<4x128xf32>
    %180 = arith.addf %179, %178 : vector<4x128xf32>
    %c0_135 = arith.constant 0 : index
    %c0_136 = arith.constant 0 : index
    %181 = vector.load %arg11[%c0_135, %c0_136] : memref<4x128xf32, #tpu.memory_space<vmem>>, vector<4x128xf32>
    tpu.vector_store %arg11[%c0_135, %c0_136], %180 {strides = array<i32>} : memref<4x128xf32, #tpu.memory_space<vmem>>, vector<4x128xf32>,
    %c0_137 = arith.constant 0 : index
    %c0_138 = arith.constant 0 : index
    %182 = vector.load %arg11[%c0_137, %c0_138] : memref<4x128xf32, #tpu.memory_space<vmem>>, vector<4x128xf32>
    %c3_139 = arith.constant 3 : index
    %c0_140 = arith.constant 0 : index
    %183 = vector.load %arg7[%c3_139, %c0_140] : memref<5x128xf32, #tpu.memory_space<vmem>>, vector<1x128xf32>
    %184 = vector.broadcast %183 : vector<1x128xf32> to vector<4x128xf32>
    %185 = arith.addf %182, %184 : vector<4x128xf32>
    %cst_141 = arith.constant 0.000000e+00 : f32
    %186 = vector.broadcast %cst_141 : f32 to vector<4x128xf32>
    %187 = arith.maximumf %185, %186 : vector<4x128xf32>
    %c0_142 = arith.constant 0 : index
    %c0_143 = arith.constant 0 : index
    %188 = vector.load %arg10[%c0_142, %c0_143] : memref<4x128xf32, #tpu.memory_space<vmem>>, vector<4x128xf32>
    %189 = arith.truncf %187 : vector<4x128xf32> to vector<4x128xbf16>
    %c3_144 = arith.constant 3 : index
    %c0_145 = arith.constant 0 : index
    %c0_146 = arith.constant 0 : index
    %190 = vector.load %arg6[%c3_144, %c0_145, %c0_146] : memref<5x128x128xbf16, #tpu.memory_space<vmem>>, vector<1x128x128xbf16>
    %191 = vector.shape_cast %190 : vector<1x128x128xbf16> to vector<128x128xbf16>
    %cst_147 = arith.constant dense<0.000000e+00> : vector<4x128xf32>
    %192 = tpu.matmul %189, %191, %cst_147 {dimension_numbers = #tpu.dot_dimension_numbers<[1], [0], [0], [1], [0, 0, 1, 1], [], []>} : vector<4x128xbf16>, vector<128x128xbf16>, vector<4x128xf32> -> vector<4x128xf32>
    %193 = arith.addf %188, %192 : vector<4x128xf32>
    %c0_148 = arith.constant 0 : index
    %c0_149 = arith.constant 0 : index
    %194 = vector.load %arg10[%c0_148, %c0_149] : memref<4x128xf32, #tpu.memory_space<vmem>>, vector<4x128xf32>
    tpu.vector_store %arg10[%c0_148, %c0_149], %193 {strides = array<i32>} : memref<4x128xf32, #tpu.memory_space<vmem>>, vector<4x128xf32>,
    %c0_150 = arith.constant 0 : index
    %c3_151 = arith.constant 3 : index
    %c3_152 = arith.constant 3 : index
    %c0_153 = arith.constant 0 : index
    %195 = vector.load %arg2[%c0_150, %c3_151, %c3_152, %c0_153] : memref<1x8x8x128xbf16, #tpu.memory_space<vmem>>, vector<1x2x2x128xbf16>
    %196 = vector.shape_cast %195 : vector<1x2x2x128xbf16> to vector<2x2x128xbf16>
    %197 = arith.extf %196 : vector<2x2x128xbf16> to vector<2x2x128xf32>
    %cst_154 = arith.constant dense<0.000000e+00> : vector<2x128xf32>
    %198 = vector.multi_reduction <add>, %197, %cst_154 [0] : vector<2x2x128xf32> to vector<2x128xf32>
    %cst_155 = arith.constant dense<0.000000e+00> : vector<128xf32>
    %199 = vector.multi_reduction <add>, %198, %cst_155 [0] : vector<2x128xf32> to vector<128xf32>
    %200 = vector.shape_cast %199 : vector<128xf32> to vector<1x128xf32>
    %cst_156 = arith.constant 2.500000e-01 : f32
    %201 = vector.broadcast %cst_156 : f32 to vector<1x128xf32>
    %202 = arith.mulf %200, %201 : vector<1x128xf32>
    %203 = arith.truncf %202 : vector<1x128xf32> to vector<1x128xbf16>
    %c0_157 = arith.constant 0 : index
    %c0_158 = arith.constant 0 : index
    %204 = vector.load %arg5[%c0_157, %c0_158] : memref<128x128xbf16, #tpu.memory_space<vmem>>, vector<128x128xbf16>
    %cst_159 = arith.constant dense<0.000000e+00> : vector<1x128xf32>
    %205 = tpu.matmul %203, %204, %cst_159 {dimension_numbers = #tpu.dot_dimension_numbers<[1], [0], [0], [1], [0, 0, 1, 1], [], []>} : vector<1x128xbf16>, vector<128x128xbf16>, vector<1x128xf32> -> vector<1x128xf32>
    %c4_160 = arith.constant 4 : index
    %c0_161 = arith.constant 0 : index
    %206 = vector.load %arg7[%c4_160, %c0_161] : memref<5x128xf32, #tpu.memory_space<vmem>>, vector<1x128xf32>
    %207 = arith.addf %205, %206 : vector<1x128xf32>
    %cst_162 = arith.constant 0.000000e+00 : f32
    %208 = vector.broadcast %cst_162 : f32 to vector<1x128xf32>
    %209 = arith.maximumf %207, %208 : vector<1x128xf32>
    %210 = arith.truncf %209 : vector<1x128xf32> to vector<1x128xbf16>
    %c4_163 = arith.constant 4 : index
    %c0_164 = arith.constant 0 : index
    %c0_165 = arith.constant 0 : index
    %211 = vector.load %arg6[%c4_163, %c0_164, %c0_165] : memref<5x128x128xbf16, #tpu.memory_space<vmem>>, vector<1x128x128xbf16>
    %212 = vector.shape_cast %211 : vector<1x128x128xbf16> to vector<128x128xbf16>
    %cst_166 = arith.constant dense<0.000000e+00> : vector<1x128xf32>
    %213 = tpu.matmul %210, %212, %cst_166 {dimension_numbers = #tpu.dot_dimension_numbers<[1], [0], [0], [1], [0, 0, 1, 1], [], []>} : vector<1x128xbf16>, vector<128x128xbf16>, vector<1x128xf32> -> vector<1x128xf32>
    %c0_167 = arith.constant 0 : index
    %c0_168 = arith.constant 0 : index
    %214 = vector.load %arg10[%c0_167, %c0_168] : memref<4x128xf32, #tpu.memory_space<vmem>>, vector<4x128xf32>
    %215 = vector.broadcast %213 : vector<1x128xf32> to vector<4x128xf32>
    %216 = arith.addf %214, %215 : vector<4x128xf32>
    %c0_169 = arith.constant 0 : index
    %c0_170 = arith.constant 0 : index
    %217 = vector.load %arg8[%c0_169, %c0_170] : memref<1x128xf32, #tpu.memory_space<vmem>>, vector<1x128xf32>
    %218 = vector.broadcast %217 : vector<1x128xf32> to vector<4x128xf32>
    %219 = arith.addf %216, %218 : vector<4x128xf32>
    %cst_171 = arith.constant 0.000000e+00 : f32
    %220 = vector.broadcast %cst_171 : f32 to vector<4x128xf32>
    %221 = arith.maximumf %219, %220 : vector<4x128xf32>
    %222 = vector.shape_cast %221 : vector<4x128xf32> to vector<2x2x128xf32>
    %223 = arith.truncf %222 : vector<2x2x128xf32> to vector<2x2x128xbf16>
    %c0_172 = arith.constant 0 : index
    %c0_173 = arith.constant 0 : index
    %c0_174 = arith.constant 0 : index
    %c0_175 = arith.constant 0 : index
    %224 = vector.load %arg9[%c0_172, %c0_173, %c0_174, %c0_175] : memref<1x2x2x128xbf16, #tpu.memory_space<vmem>>, vector<1x2x2x128xbf16>
    %225 = vector.shape_cast %224 : vector<1x2x2x128xbf16> to vector<2x2x128xbf16>
    %226 = vector.shape_cast %223 : vector<2x2x128xbf16> to vector<1x2x2x128xbf16>
    tpu.vector_store %arg9[%c0_172, %c0_173, %c0_174, %c0_175], %226 {strides = array<i32>} : memref<1x2x2x128xbf16, #tpu.memory_space<vmem>>, vector<1x2x2x128xbf16>,
    return
  }
  func.func @transform_0(%arg0: i32, %arg1: i32) -> (i32, i32, i32, i32) {
    %c0_i32 = arith.constant 0 : i32
    %c0_i32_0 = arith.constant 0 : i32
    %c0_i32_1 = arith.constant 0 : i32
    %c0_i32_2 = arith.constant 0 : i32
    return %arg0, %c0_i32, %c0_i32_0, %c0_i32_1 : i32, i32, i32, i32
  }
  func.func @transform_1(%arg0: i32, %arg1: i32) -> (i32, i32) {
    %c0_i32 = arith.constant 0 : i32
    %c0_i32_0 = arith.constant 0 : i32
    %c0_i32_1 = arith.constant 0 : i32
    return %c0_i32, %c0_i32_0 : i32, i32
  }
  func.func @transform_2(%arg0: i32, %arg1: i32) -> (i32, i32, i32) {
    %c0_i32 = arith.constant 0 : i32
    %c0_i32_0 = arith.constant 0 : i32
    %c0_i32_1 = arith.constant 0 : i32
    %c0_i32_2 = arith.constant 0 : i32
    return %c0_i32, %c0_i32_0, %c0_i32_1 : i32, i32, i32
  }
  func.func @transform_3(%arg0: i32, %arg1: i32) -> (i32, i32) {
    %c0_i32 = arith.constant 0 : i32
    %c0_i32_0 = arith.constant 0 : i32
    %c0_i32_1 = arith.constant 0 : i32
    return %c0_i32, %c0_i32_0 : i32, i32
  }
  func.func @transform_4(%arg0: i32, %arg1: i32) -> (i32, i32, i32) {
    %c0_i32 = arith.constant 0 : i32
    %c0_i32_0 = arith.constant 0 : i32
    %c0_i32_1 = arith.constant 0 : i32
    %c0_i32_2 = arith.constant 0 : i32
    return %c0_i32, %c0_i32_0, %c0_i32_1 : i32, i32, i32
  }
  func.func @transform_5(%arg0: i32, %arg1: i32) -> (i32, i32) {
    %c0_i32 = arith.constant 0 : i32
    %c0_i32_0 = arith.constant 0 : i32
    %c0_i32_1 = arith.constant 0 : i32
    return %c0_i32, %c0_i32_0 : i32, i32
  }
  func.func @transform_6(%arg0: i32, %arg1: i32) -> (i32, i32) {
    %c0_i32 = arith.constant 0 : i32
    %c0_i32_0 = arith.constant 0 : i32
    %c0_i32_1 = arith.constant 0 : i32
    return %c0_i32, %c0_i32_0 : i32, i32
  }
  func.func @transform_7(%arg0: i32, %arg1: i32) -> (i32, i32, i32, i32) {
    %c0_i32 = arith.constant 0 : i32
    %c0_i32_0 = arith.constant 0 : i32
    %c0_i32_1 = arith.constant 0 : i32
    return %arg0, %arg1, %c0_i32, %c0_i32_0 : i32, i32, i32, i32
  }
}

module attributes {stable_mosaic.version = 11 : i64} {
  func.func @_dec_head_kernel(%arg0: i32, %arg1: i32, %arg2: memref<1x4x4x128xbf16, #tpu.memory_space<vmem>>, %arg3: memref<3x384x128xbf16, #tpu.memory_space<vmem>>, %arg4: memref<1x128xf32, #tpu.memory_space<vmem>>, %arg5: memref<128x128xbf16, #tpu.memory_space<vmem>>, %arg6: memref<1x128xf32, #tpu.memory_space<vmem>>, %arg7: memref<1x2x2x128xbf16, #tpu.memory_space<vmem>>, %arg8: memref<4x128xf32, #tpu.memory_space<vmem>>) attributes {dimension_semantics = [#tpu.dimension_semantics<parallel>, #tpu.dimension_semantics<parallel>], iteration_bounds = array<i64: 2, 1>, scalar_prefetch = 0 : i64, scratch_operands = 1 : i64, tpu.core_type = #tpu.core_type<tc>, window_params = [{transform_indices = @transform_0, window_bounds = array<i64: 1, 4, 4, 128>}, {pipeline_mode = #tpu.pipeline_mode<synchronous>, transform_indices = @transform_1, window_bounds = array<i64: 3, 384, 128>}, {pipeline_mode = #tpu.pipeline_mode<synchronous>, transform_indices = @transform_2, window_bounds = array<i64: 1, 128>}, {pipeline_mode = #tpu.pipeline_mode<synchronous>, transform_indices = @transform_3, window_bounds = array<i64: 128, 128>}, {pipeline_mode = #tpu.pipeline_mode<synchronous>, transform_indices = @transform_4, window_bounds = array<i64: 1, 128>}, {transform_indices = @transform_5, window_bounds = array<i64: 1, 2, 2, 128>}]} {
    %c2_i32 = arith.constant 2 : i32
    %0 = arith.muli %arg1, %c2_i32 : i32
    %c0_i32 = arith.constant 0 : i32
    %1 = arith.addi %0, %c0_i32 : i32
    %c0 = arith.constant 0 : index
    %2 = arith.index_cast %1 : i32 to index
    %c0_0 = arith.constant 0 : index
    %c0_1 = arith.constant 0 : index
    %3 = vector.load %arg2[%c0, %2, %c0_0, %c0_1] : memref<1x4x4x128xbf16, #tpu.memory_space<vmem>>, vector<1x2x4x128xbf16>
    %4 = vector.shape_cast %3 : vector<1x2x4x128xbf16> to vector<2x4x128xbf16>
    %5 = vector.extract_strided_slice %4 {offsets = [0, 0, 0], sizes = [2, 2, 128], strides = [1, 1, 1]} : vector<2x4x128xbf16> to vector<2x2x128xbf16>
    %6 = vector.extract_strided_slice %4 {offsets = [0, 1, 0], sizes = [2, 2, 128], strides = [1, 1, 1]} : vector<2x4x128xbf16> to vector<2x2x128xbf16>
    %7 = vector.extract_strided_slice %4 {offsets = [0, 2, 0], sizes = [2, 2, 128], strides = [1, 1, 1]} : vector<2x4x128xbf16> to vector<2x2x128xbf16>
    %8 = tpu.concatenate %5, %6, %7 in 2 : vector<2x2x128xbf16>, vector<2x2x128xbf16>, vector<2x2x128xbf16> -> vector<2x2x384xbf16>
    %9 = vector.shape_cast %8 : vector<2x2x384xbf16> to vector<4x384xbf16>
    %c0_2 = arith.constant 0 : index
    %c0_3 = arith.constant 0 : index
    %c0_4 = arith.constant 0 : index
    %10 = vector.load %arg3[%c0_2, %c0_3, %c0_4] : memref<3x384x128xbf16, #tpu.memory_space<vmem>>, vector<1x384x128xbf16>
    %11 = vector.shape_cast %10 : vector<1x384x128xbf16> to vector<384x128xbf16>
    %cst = arith.constant dense<0.000000e+00> : vector<4x128xf32>
    %12 = tpu.matmul %9, %11, %cst {dimension_numbers = #tpu.dot_dimension_numbers<[1], [0], [0], [1], [0, 0, 1, 1], [], []>} : vector<4x384xbf16>, vector<384x128xbf16>, vector<4x128xf32> -> vector<4x128xf32>
    %c0_5 = arith.constant 0 : index
    %c0_6 = arith.constant 0 : index
    %13 = vector.load %arg8[%c0_5, %c0_6] : memref<4x128xf32, #tpu.memory_space<vmem>>, vector<4x128xf32>
    tpu.vector_store %arg8[%c0_5, %c0_6], %12 {strides = array<i32>} : memref<4x128xf32, #tpu.memory_space<vmem>>, vector<4x128xf32>,
    %c1_i32 = arith.constant 1 : i32
    %14 = arith.addi %0, %c1_i32 : i32
    %c0_7 = arith.constant 0 : index
    %15 = arith.index_cast %14 : i32 to index
    %c0_8 = arith.constant 0 : index
    %c0_9 = arith.constant 0 : index
    %16 = vector.load %arg2[%c0_7, %15, %c0_8, %c0_9] : memref<1x4x4x128xbf16, #tpu.memory_space<vmem>>, vector<1x2x4x128xbf16>
    %17 = vector.shape_cast %16 : vector<1x2x4x128xbf16> to vector<2x4x128xbf16>
    %18 = vector.extract_strided_slice %17 {offsets = [0, 0, 0], sizes = [2, 2, 128], strides = [1, 1, 1]} : vector<2x4x128xbf16> to vector<2x2x128xbf16>
    %19 = vector.extract_strided_slice %17 {offsets = [0, 1, 0], sizes = [2, 2, 128], strides = [1, 1, 1]} : vector<2x4x128xbf16> to vector<2x2x128xbf16>
    %20 = vector.extract_strided_slice %17 {offsets = [0, 2, 0], sizes = [2, 2, 128], strides = [1, 1, 1]} : vector<2x4x128xbf16> to vector<2x2x128xbf16>
    %21 = tpu.concatenate %18, %19, %20 in 2 : vector<2x2x128xbf16>, vector<2x2x128xbf16>, vector<2x2x128xbf16> -> vector<2x2x384xbf16>
    %22 = vector.shape_cast %21 : vector<2x2x384xbf16> to vector<4x384xbf16>
    %c1 = arith.constant 1 : index
    %c0_10 = arith.constant 0 : index
    %c0_11 = arith.constant 0 : index
    %23 = vector.load %arg3[%c1, %c0_10, %c0_11] : memref<3x384x128xbf16, #tpu.memory_space<vmem>>, vector<1x384x128xbf16>
    %24 = vector.shape_cast %23 : vector<1x384x128xbf16> to vector<384x128xbf16>
    %cst_12 = arith.constant dense<0.000000e+00> : vector<4x128xf32>
    %25 = tpu.matmul %22, %24, %cst_12 {dimension_numbers = #tpu.dot_dimension_numbers<[1], [0], [0], [1], [0, 0, 1, 1], [], []>} : vector<4x384xbf16>, vector<384x128xbf16>, vector<4x128xf32> -> vector<4x128xf32>
    %c0_13 = arith.constant 0 : index
    %c0_14 = arith.constant 0 : index
    %26 = vector.load %arg8[%c0_13, %c0_14] : memref<4x128xf32, #tpu.memory_space<vmem>>, vector<4x128xf32>
    %27 = arith.addf %26, %25 : vector<4x128xf32>
    %c0_15 = arith.constant 0 : index
    %c0_16 = arith.constant 0 : index
    %28 = vector.load %arg8[%c0_15, %c0_16] : memref<4x128xf32, #tpu.memory_space<vmem>>, vector<4x128xf32>
    tpu.vector_store %arg8[%c0_15, %c0_16], %27 {strides = array<i32>} : memref<4x128xf32, #tpu.memory_space<vmem>>, vector<4x128xf32>,
    %c2_i32_17 = arith.constant 2 : i32
    %29 = arith.addi %0, %c2_i32_17 : i32
    %c0_18 = arith.constant 0 : index
    %30 = arith.index_cast %29 : i32 to index
    %c0_19 = arith.constant 0 : index
    %c0_20 = arith.constant 0 : index
    %31 = vector.load %arg2[%c0_18, %30, %c0_19, %c0_20] : memref<1x4x4x128xbf16, #tpu.memory_space<vmem>>, vector<1x2x4x128xbf16>
    %32 = vector.shape_cast %31 : vector<1x2x4x128xbf16> to vector<2x4x128xbf16>
    %33 = vector.extract_strided_slice %32 {offsets = [0, 0, 0], sizes = [2, 2, 128], strides = [1, 1, 1]} : vector<2x4x128xbf16> to vector<2x2x128xbf16>
    %34 = vector.extract_strided_slice %32 {offsets = [0, 1, 0], sizes = [2, 2, 128], strides = [1, 1, 1]} : vector<2x4x128xbf16> to vector<2x2x128xbf16>
    %35 = vector.extract_strided_slice %32 {offsets = [0, 2, 0], sizes = [2, 2, 128], strides = [1, 1, 1]} : vector<2x4x128xbf16> to vector<2x2x128xbf16>
    %36 = tpu.concatenate %33, %34, %35 in 2 : vector<2x2x128xbf16>, vector<2x2x128xbf16>, vector<2x2x128xbf16> -> vector<2x2x384xbf16>
    %37 = vector.shape_cast %36 : vector<2x2x384xbf16> to vector<4x384xbf16>
    %c2 = arith.constant 2 : index
    %c0_21 = arith.constant 0 : index
    %c0_22 = arith.constant 0 : index
    %38 = vector.load %arg3[%c2, %c0_21, %c0_22] : memref<3x384x128xbf16, #tpu.memory_space<vmem>>, vector<1x384x128xbf16>
    %39 = vector.shape_cast %38 : vector<1x384x128xbf16> to vector<384x128xbf16>
    %cst_23 = arith.constant dense<0.000000e+00> : vector<4x128xf32>
    %40 = tpu.matmul %37, %39, %cst_23 {dimension_numbers = #tpu.dot_dimension_numbers<[1], [0], [0], [1], [0, 0, 1, 1], [], []>} : vector<4x384xbf16>, vector<384x128xbf16>, vector<4x128xf32> -> vector<4x128xf32>
    %c0_24 = arith.constant 0 : index
    %c0_25 = arith.constant 0 : index
    %41 = vector.load %arg8[%c0_24, %c0_25] : memref<4x128xf32, #tpu.memory_space<vmem>>, vector<4x128xf32>
    %42 = arith.addf %41, %40 : vector<4x128xf32>
    %c0_26 = arith.constant 0 : index
    %c0_27 = arith.constant 0 : index
    %43 = vector.load %arg8[%c0_26, %c0_27] : memref<4x128xf32, #tpu.memory_space<vmem>>, vector<4x128xf32>
    tpu.vector_store %arg8[%c0_26, %c0_27], %42 {strides = array<i32>} : memref<4x128xf32, #tpu.memory_space<vmem>>, vector<4x128xf32>,
    %c0_28 = arith.constant 0 : index
    %c0_29 = arith.constant 0 : index
    %44 = vector.load %arg8[%c0_28, %c0_29] : memref<4x128xf32, #tpu.memory_space<vmem>>, vector<4x128xf32>
    %c0_30 = arith.constant 0 : index
    %c0_31 = arith.constant 0 : index
    %45 = vector.load %arg4[%c0_30, %c0_31] : memref<1x128xf32, #tpu.memory_space<vmem>>, vector<1x128xf32>
    %46 = vector.broadcast %45 : vector<1x128xf32> to vector<4x128xf32>
    %47 = arith.addf %44, %46 : vector<4x128xf32>
    %cst_32 = arith.constant 0.000000e+00 : f32
    %48 = vector.broadcast %cst_32 : f32 to vector<4x128xf32>
    %49 = arith.maximumf %47, %48 : vector<4x128xf32>
    %50 = arith.truncf %49 : vector<4x128xf32> to vector<4x128xbf16>
    %c0_33 = arith.constant 0 : index
    %c0_34 = arith.constant 0 : index
    %51 = vector.load %arg5[%c0_33, %c0_34] : memref<128x128xbf16, #tpu.memory_space<vmem>>, vector<128x128xbf16>
    %cst_35 = arith.constant dense<0.000000e+00> : vector<4x128xf32>
    %52 = tpu.matmul %50, %51, %cst_35 {dimension_numbers = #tpu.dot_dimension_numbers<[1], [0], [0], [1], [0, 0, 1, 1], [], []>} : vector<4x128xbf16>, vector<128x128xbf16>, vector<4x128xf32> -> vector<4x128xf32>
    %c0_36 = arith.constant 0 : index
    %c0_37 = arith.constant 0 : index
    %53 = vector.load %arg6[%c0_36, %c0_37] : memref<1x128xf32, #tpu.memory_space<vmem>>, vector<1x128xf32>
    %54 = vector.broadcast %53 : vector<1x128xf32> to vector<4x128xf32>
    %55 = arith.addf %52, %54 : vector<4x128xf32>
    %56 = vector.shape_cast %55 : vector<4x128xf32> to vector<2x2x128xf32>
    %57 = arith.truncf %56 : vector<2x2x128xf32> to vector<2x2x128xbf16>
    %c0_38 = arith.constant 0 : index
    %c0_39 = arith.constant 0 : index
    %c0_40 = arith.constant 0 : index
    %c0_41 = arith.constant 0 : index
    %58 = vector.load %arg7[%c0_38, %c0_39, %c0_40, %c0_41] : memref<1x2x2x128xbf16, #tpu.memory_space<vmem>>, vector<1x2x2x128xbf16>
    %59 = vector.shape_cast %58 : vector<1x2x2x128xbf16> to vector<2x2x128xbf16>
    %60 = vector.shape_cast %57 : vector<2x2x128xbf16> to vector<1x2x2x128xbf16>
    tpu.vector_store %arg7[%c0_38, %c0_39, %c0_40, %c0_41], %60 {strides = array<i32>} : memref<1x2x2x128xbf16, #tpu.memory_space<vmem>>, vector<1x2x2x128xbf16>,
    return
  }
  func.func @transform_0(%arg0: i32, %arg1: i32) -> (i32, i32, i32, i32) {
    %c0_i32 = arith.constant 0 : i32
    %c0_i32_0 = arith.constant 0 : i32
    %c0_i32_1 = arith.constant 0 : i32
    %c0_i32_2 = arith.constant 0 : i32
    return %arg0, %c0_i32, %c0_i32_0, %c0_i32_1 : i32, i32, i32, i32
  }
  func.func @transform_1(%arg0: i32, %arg1: i32) -> (i32, i32, i32) {
    %c0_i32 = arith.constant 0 : i32
    %c0_i32_0 = arith.constant 0 : i32
    %c0_i32_1 = arith.constant 0 : i32
    %c0_i32_2 = arith.constant 0 : i32
    return %c0_i32, %c0_i32_0, %c0_i32_1 : i32, i32, i32
  }
  func.func @transform_2(%arg0: i32, %arg1: i32) -> (i32, i32) {
    %c0_i32 = arith.constant 0 : i32
    %c0_i32_0 = arith.constant 0 : i32
    %c0_i32_1 = arith.constant 0 : i32
    return %c0_i32, %c0_i32_0 : i32, i32
  }
  func.func @transform_3(%arg0: i32, %arg1: i32) -> (i32, i32) {
    %c0_i32 = arith.constant 0 : i32
    %c0_i32_0 = arith.constant 0 : i32
    %c0_i32_1 = arith.constant 0 : i32
    return %c0_i32, %c0_i32_0 : i32, i32
  }
  func.func @transform_4(%arg0: i32, %arg1: i32) -> (i32, i32) {
    %c0_i32 = arith.constant 0 : i32
    %c0_i32_0 = arith.constant 0 : i32
    %c0_i32_1 = arith.constant 0 : i32
    return %c0_i32, %c0_i32_0 : i32, i32
  }
  func.func @transform_5(%arg0: i32, %arg1: i32) -> (i32, i32, i32, i32) {
    %c0_i32 = arith.constant 0 : i32
    %c0_i32_0 = arith.constant 0 : i32
    %c0_i32_1 = arith.constant 0 : i32
    return %arg0, %arg1, %c0_i32, %c0_i32_0 : i32, i32, i32, i32
  }
}

module attributes {stable_mosaic.version = 11 : i64} {
  func.func @_mm_kernel(%arg0: i32, %arg1: i32, %arg2: i32, %arg3: memref<128x128xbf16, #tpu.memory_space<vmem>>, %arg4: memref<128x128xbf16, #tpu.memory_space<vmem>>, %arg5: memref<1x128xf32, #tpu.memory_space<vmem>>, %arg6: memref<128x128xbf16, #tpu.memory_space<vmem>>, %arg7: memref<128x128xf32, #tpu.memory_space<vmem>>) attributes {dimension_semantics = [#tpu.dimension_semantics<parallel>, #tpu.dimension_semantics<parallel>, #tpu.dimension_semantics<arbitrary>], iteration_bounds = array<i64: 1, 1, 1>, scalar_prefetch = 0 : i64, scratch_operands = 1 : i64, tpu.core_type = #tpu.core_type<tc>, window_params = [{transform_indices = @transform_0, window_bounds = array<i64: 128, 128>}, {transform_indices = @transform_1, window_bounds = array<i64: 128, 128>}, {transform_indices = @transform_2, window_bounds = array<i64: 1, 128>}, {transform_indices = @transform_3, window_bounds = array<i64: 128, 128>}]} {
    %c0_i32 = arith.constant 0 : i32
    %0 = arith.cmpi eq, %arg2, %c0_i32 : i32
    %1 = arith.extui %0 : i1 to i32
    %c0_i32_0 = arith.constant 0 : i32
    %2 = arith.cmpi ne, %1, %c0_i32_0 : i32
    scf.if %2 {
      %cst_10 = arith.constant 0.000000e+00 : f32
      %12 = vector.broadcast %cst_10 : f32 to vector<128x128xf32>
      %c0_11 = arith.constant 0 : index
      %c0_12 = arith.constant 0 : index
      %13 = vector.load %arg7[%c0_11, %c0_12] : memref<128x128xf32, #tpu.memory_space<vmem>>, vector<128x128xf32>
      tpu.vector_store %arg7[%c0_11, %c0_12], %12 {strides = array<i32>} : memref<128x128xf32, #tpu.memory_space<vmem>>, vector<128x128xf32>,
    } else {
    }
    %c0 = arith.constant 0 : index
    %c0_1 = arith.constant 0 : index
    %3 = vector.load %arg7[%c0, %c0_1] : memref<128x128xf32, #tpu.memory_space<vmem>>, vector<128x128xf32>
    %c0_2 = arith.constant 0 : index
    %c0_3 = arith.constant 0 : index
    %4 = vector.load %arg3[%c0_2, %c0_3] : memref<128x128xbf16, #tpu.memory_space<vmem>>, vector<128x128xbf16>
    %c0_4 = arith.constant 0 : index
    %c0_5 = arith.constant 0 : index
    %5 = vector.load %arg4[%c0_4, %c0_5] : memref<128x128xbf16, #tpu.memory_space<vmem>>, vector<128x128xbf16>
    %cst = arith.constant dense<0.000000e+00> : vector<128x128xf32>
    %6 = tpu.matmul %4, %5, %cst {dimension_numbers = #tpu.dot_dimension_numbers<[1], [0], [0], [1], [0, 0, 1, 1], [], []>} : vector<128x128xbf16>, vector<128x128xbf16>, vector<128x128xf32> -> vector<128x128xf32>
    %7 = arith.addf %3, %6 : vector<128x128xf32>
    %c0_6 = arith.constant 0 : index
    %c0_7 = arith.constant 0 : index
    %8 = vector.load %arg7[%c0_6, %c0_7] : memref<128x128xf32, #tpu.memory_space<vmem>>, vector<128x128xf32>
    tpu.vector_store %arg7[%c0_6, %c0_7], %7 {strides = array<i32>} : memref<128x128xf32, #tpu.memory_space<vmem>>, vector<128x128xf32>,
    %c0_i32_8 = arith.constant 0 : i32
    %9 = arith.cmpi eq, %arg2, %c0_i32_8 : i32
    %10 = arith.extui %9 : i1 to i32
    %c0_i32_9 = arith.constant 0 : i32
    %11 = arith.cmpi ne, %10, %c0_i32_9 : i32
    scf.if %11 {
      %c0_10 = arith.constant 0 : index
      %c0_11 = arith.constant 0 : index
      %12 = vector.load %arg7[%c0_10, %c0_11] : memref<128x128xf32, #tpu.memory_space<vmem>>, vector<128x128xf32>
      %c0_12 = arith.constant 0 : index
      %c0_13 = arith.constant 0 : index
      %13 = vector.load %arg5[%c0_12, %c0_13] : memref<1x128xf32, #tpu.memory_space<vmem>>, vector<1x128xf32>
      %14 = vector.broadcast %13 : vector<1x128xf32> to vector<128x128xf32>
      %15 = arith.addf %12, %14 : vector<128x128xf32>
      %16 = arith.truncf %15 : vector<128x128xf32> to vector<128x128xbf16>
      %c0_14 = arith.constant 0 : index
      %c0_15 = arith.constant 0 : index
      %17 = vector.load %arg6[%c0_14, %c0_15] : memref<128x128xbf16, #tpu.memory_space<vmem>>, vector<128x128xbf16>
      tpu.vector_store %arg6[%c0_14, %c0_15], %16 {strides = array<i32>} : memref<128x128xbf16, #tpu.memory_space<vmem>>, vector<128x128xbf16>,
    } else {
    }
    return
  }
  func.func @transform_0(%arg0: i32, %arg1: i32, %arg2: i32) -> (i32, i32) {
    %c0_i32 = arith.constant 0 : i32
    return %arg0, %arg2 : i32, i32
  }
  func.func @transform_1(%arg0: i32, %arg1: i32, %arg2: i32) -> (i32, i32) {
    %c0_i32 = arith.constant 0 : i32
    return %arg2, %arg1 : i32, i32
  }
  func.func @transform_2(%arg0: i32, %arg1: i32, %arg2: i32) -> (i32, i32) {
    %c0_i32 = arith.constant 0 : i32
    %c0_i32_0 = arith.constant 0 : i32
    return %c0_i32, %arg1 : i32, i32
  }
  func.func @transform_3(%arg0: i32, %arg1: i32, %arg2: i32) -> (i32, i32) {
    %c0_i32 = arith.constant 0 : i32
    return %arg0, %arg1 : i32, i32
  }
}

module attributes {stable_mosaic.version = 11 : i64} {
  func.func @_mm_kernel(%arg0: i32, %arg1: i32, %arg2: i32, %arg3: memref<128x128xbf16, #tpu.memory_space<vmem>>, %arg4: memref<128x128xbf16, #tpu.memory_space<vmem>>, %arg5: memref<1x128xf32, #tpu.memory_space<vmem>>, %arg6: memref<128x128xf32, #tpu.memory_space<vmem>>, %arg7: memref<128x128xf32, #tpu.memory_space<vmem>>) attributes {dimension_semantics = [#tpu.dimension_semantics<parallel>, #tpu.dimension_semantics<parallel>, #tpu.dimension_semantics<arbitrary>], iteration_bounds = array<i64: 1, 3, 1>, scalar_prefetch = 0 : i64, scratch_operands = 1 : i64, tpu.core_type = #tpu.core_type<tc>, window_params = [{transform_indices = @transform_0, window_bounds = array<i64: 128, 128>}, {transform_indices = @transform_1, window_bounds = array<i64: 128, 128>}, {transform_indices = @transform_2, window_bounds = array<i64: 1, 128>}, {transform_indices = @transform_3, window_bounds = array<i64: 128, 128>}]} {
    %c0_i32 = arith.constant 0 : i32
    %0 = arith.cmpi eq, %arg2, %c0_i32 : i32
    %1 = arith.extui %0 : i1 to i32
    %c0_i32_0 = arith.constant 0 : i32
    %2 = arith.cmpi ne, %1, %c0_i32_0 : i32
    scf.if %2 {
      %cst_10 = arith.constant 0.000000e+00 : f32
      %12 = vector.broadcast %cst_10 : f32 to vector<128x128xf32>
      %c0_11 = arith.constant 0 : index
      %c0_12 = arith.constant 0 : index
      %13 = vector.load %arg7[%c0_11, %c0_12] : memref<128x128xf32, #tpu.memory_space<vmem>>, vector<128x128xf32>
      tpu.vector_store %arg7[%c0_11, %c0_12], %12 {strides = array<i32>} : memref<128x128xf32, #tpu.memory_space<vmem>>, vector<128x128xf32>,
    } else {
    }
    %c0 = arith.constant 0 : index
    %c0_1 = arith.constant 0 : index
    %3 = vector.load %arg7[%c0, %c0_1] : memref<128x128xf32, #tpu.memory_space<vmem>>, vector<128x128xf32>
    %c0_2 = arith.constant 0 : index
    %c0_3 = arith.constant 0 : index
    %4 = vector.load %arg3[%c0_2, %c0_3] : memref<128x128xbf16, #tpu.memory_space<vmem>>, vector<128x128xbf16>
    %c0_4 = arith.constant 0 : index
    %c0_5 = arith.constant 0 : index
    %5 = vector.load %arg4[%c0_4, %c0_5] : memref<128x128xbf16, #tpu.memory_space<vmem>>, vector<128x128xbf16>
    %cst = arith.constant dense<0.000000e+00> : vector<128x128xf32>
    %6 = tpu.matmul %4, %5, %cst {dimension_numbers = #tpu.dot_dimension_numbers<[1], [0], [0], [1], [0, 0, 1, 1], [], []>} : vector<128x128xbf16>, vector<128x128xbf16>, vector<128x128xf32> -> vector<128x128xf32>
    %7 = arith.addf %3, %6 : vector<128x128xf32>
    %c0_6 = arith.constant 0 : index
    %c0_7 = arith.constant 0 : index
    %8 = vector.load %arg7[%c0_6, %c0_7] : memref<128x128xf32, #tpu.memory_space<vmem>>, vector<128x128xf32>
    tpu.vector_store %arg7[%c0_6, %c0_7], %7 {strides = array<i32>} : memref<128x128xf32, #tpu.memory_space<vmem>>, vector<128x128xf32>,
    %c0_i32_8 = arith.constant 0 : i32
    %9 = arith.cmpi eq, %arg2, %c0_i32_8 : i32
    %10 = arith.extui %9 : i1 to i32
    %c0_i32_9 = arith.constant 0 : i32
    %11 = arith.cmpi ne, %10, %c0_i32_9 : i32
    scf.if %11 {
      %c0_10 = arith.constant 0 : index
      %c0_11 = arith.constant 0 : index
      %12 = vector.load %arg7[%c0_10, %c0_11] : memref<128x128xf32, #tpu.memory_space<vmem>>, vector<128x128xf32>
      %c0_12 = arith.constant 0 : index
      %c0_13 = arith.constant 0 : index
      %13 = vector.load %arg5[%c0_12, %c0_13] : memref<1x128xf32, #tpu.memory_space<vmem>>, vector<1x128xf32>
      %14 = vector.broadcast %13 : vector<1x128xf32> to vector<128x128xf32>
      %15 = arith.addf %12, %14 : vector<128x128xf32>
      %c0_14 = arith.constant 0 : index
      %c0_15 = arith.constant 0 : index
      %16 = vector.load %arg6[%c0_14, %c0_15] : memref<128x128xf32, #tpu.memory_space<vmem>>, vector<128x128xf32>
      tpu.vector_store %arg6[%c0_14, %c0_15], %15 {strides = array<i32>} : memref<128x128xf32, #tpu.memory_space<vmem>>, vector<128x128xf32>,
    } else {
    }
    return
  }
  func.func @transform_0(%arg0: i32, %arg1: i32, %arg2: i32) -> (i32, i32) {
    %c0_i32 = arith.constant 0 : i32
    return %arg0, %arg2 : i32, i32
  }
  func.func @transform_1(%arg0: i32, %arg1: i32, %arg2: i32) -> (i32, i32) {
    %c0_i32 = arith.constant 0 : i32
    return %arg2, %arg1 : i32, i32
  }
  func.func @transform_2(%arg0: i32, %arg1: i32, %arg2: i32) -> (i32, i32) {
    %c0_i32 = arith.constant 0 : i32
    %c0_i32_0 = arith.constant 0 : i32
    return %c0_i32, %arg1 : i32, i32
  }
  func.func @transform_3(%arg0: i32, %arg1: i32, %arg2: i32) -> (i32, i32) {
    %c0_i32 = arith.constant 0 : i32
    return %arg0, %arg1 : i32, i32
  }
}

</mosaic_0001>

<bundles_post_ra>
// kernel: deeplabv3_forward.7
= control target key start
LH: loop header
LB: loop body
LE: loop exit
PB: predicated region body
PF: predicated region fallthrough
CT: control target
= control target key end

     0   :  { %s721_s1 = inlined_call_operand.vmem [shape: bf16[128,128], index: 1, kind: input, shape index: {}]   ;;  %s722_s0 = inlined_call_operand.vmem [shape: bf16[128,128], index: 0, kind: input, shape index: {}]   ;;  %s723_s2 = inlined_call_operand.vmem [shape: f32[1,128], index: 2, kind: input, shape index: {}]   ;;  %s724_s3 = inlined_call_operand.vmem [shape: bf16[128,128], index: 3, kind: output, shape index: {}]  }
   0x1   :  { %v610_v0 = vld [vmem:[%s721_s1] sm:$0xff]   ;;  %v611_v1 = vld [vmem:[%s721_s1 + $0x8] sm:$0xff]   ;;  %v612_v2 = vld [vmem:[%s721_s1 + $0x10] sm:$0xff]  }
   0x2   :  { %562 = vmatprep.subr.bf16.mxu0 %v610_v0  ;;  %594 = vmatprep.subr.bf16.mxu1 %v610_v0  ;;  %v613_v3 = vld [vmem:[%s721_s1 + $0x18] sm:$0xff]   ;;  %v618_v4 = vld [vmem:[%s722_s0] sm:$0xff]   ;;  %v615_v7 = vld [vmem:[%s721_s1 + $0x28] sm:$0xff]  }
   0x3   :  { %563 = vmatpush3.bf16.msra.mxu0 %v610_v0  ;;  %602 = vmatpush3.bf16.msra.mxu1 %v610_v0  ;;  %v619_v5 = vld [vmem:[%s722_s0 + $0x20] sm:$0xff]   ;;  %v616_v8 = vld [vmem:[%s721_s1 + $0x30] sm:$0xff]   ;;  %v617_v9 = vld [vmem:[%s721_s1 + $0x38] sm:$0xff]  }
   0x4   :  { %564 = vmatprep.subr.bf16.mxu0 %v611_v1  ;;  %595 = vmatprep.subr.bf16.mxu1 %v611_v1  ;;  %v614_v6 = vld [vmem:[%s721_s1 + $0x20] sm:$0xff]   ;;  %v620_v10 = vld [vmem:[%s722_s0 + $0x8] sm:$0xff]   ;;  %v622_v12 = vld [vmem:[%s722_s0 + $0x10] sm:$0xff]  }
   0x5   :  { %578 = vmatprep.mubr.bf16.mxu0 %v618_v4  ;;  %586 = vmatprep.mubr.bf16.mxu1 %v619_v5  ;;  %v621_v11 = vld [vmem:[%s722_s0 + $0x28] sm:$0xff]   ;;  %v623_v13 = vld [vmem:[%s722_s0 + $0x30] sm:$0xff]   ;;  %v624_v14 = vld [vmem:[%s722_s0 + $0x18] sm:$0xff]  }
   0x6   :  { %v625_v15 = vld [vmem:[%s722_s0 + $0x38] sm:$0xff]   ;;  %v466_v16 = vld [vmem:[%s723_s2] ss:$0 sm:$0xff] }
   0x7   :  { %565 = vmatpush3.bf16.msra.mxu0 %v611_v1  ;;  %603 = vmatpush3.bf16.msra.mxu1 %v611_v1 }
   0x8   :  { %566 = vmatprep.subr.bf16.mxu0 %v612_v2  ;;  %596 = vmatprep.subr.bf16.mxu1 %v612_v2 }
   0xb   :  { %567 = vmatpush3.bf16.msra.mxu0 %v612_v2  ;;  %604 = vmatpush3.bf16.msra.mxu1 %v612_v2 }
   0xc   :  { %568 = vmatprep.subr.bf16.mxu0 %v613_v3  ;;  %597 = vmatprep.subr.bf16.mxu1 %v613_v3 }
   0xf   :  { %569 = vmatpush3.bf16.msra.mxu0 %v613_v3  ;;  %605 = vmatpush3.bf16.msra.mxu1 %v613_v3 }
  0x10   :  { %570 = vmatprep.subr.bf16.mxu0 %v614_v6  ;;  %598 = vmatprep.subr.bf16.mxu1 %v614_v6 }
  0x13   :  { %571 = vmatpush3.bf16.msra.mxu0 %v614_v6  ;;  %606 = vmatpush3.bf16.msra.mxu1 %v614_v6 }
  0x14   :  { %572 = vmatprep.subr.bf16.mxu0 %v615_v7  ;;  %599 = vmatprep.subr.bf16.mxu1 %v615_v7 }
  0x17   :  { %573 = vmatpush3.bf16.msra.mxu0 %v615_v7  ;;  %607 = vmatpush3.bf16.msra.mxu1 %v615_v7 }
  0x18   :  { %574 = vmatprep.subr.bf16.mxu0 %v616_v8  ;;  %600 = vmatprep.subr.bf16.mxu1 %v616_v8 }
  0x1b   :  { %575 = vmatpush3.bf16.msra.mxu0 %v616_v8  ;;  %608 = vmatpush3.bf16.msra.mxu1 %v616_v8 }
  0x1c   :  { %576 = vmatprep.subr.bf16.mxu0 %v617_v9  ;;  %601 = vmatprep.subr.bf16.mxu1 %v617_v9 }
  0x1f   :  { %577 = vmatpush3.bf16.msra.mxu0 %v617_v9  ;;  %609 = vmatpush3.bf16.msra.mxu1 %v617_v9 }
  0x22   :  { %579 = vmatmul.mubr.bf16.vlgmr.msra.gmra.mrb[0].mxu0 %v620_v10  ;;  %587 = vmatmul.mubr.bf16.vlgmr.msra.gmra.mrb[0].mxu1 %v621_v11 }
  0x23   :  { %582 = vmatprep.mubr.bf16.mxu0 %v622_v12  ;;  %590 = vmatprep.mubr.bf16.mxu1 %v623_v13 }
  0x2a   :  { %583 = vmatmul.mubr.bf16.gmra.mrb[4].mxu0 %v624_v14  ;;  %591 = vmatmul.mubr.bf16.gmra.mrb[4].mxu1 %v625_v15 }
  0xf5   :  { %v580_v17 = vpop.f32.mrb[0].mxu0  ;;  %v588_v18 = vpop.f32.mrb[0].mxu1 }
  0xf6   :  { %v336_v19 = vadd.f32 %v580_v17, %v466_v16  ;;  %v344_v20 = vadd.f32 %v588_v18, %v466_v16  ;;  %v213_v21 = vpop.f32.mrb[1].mxu0  ;;  %v245_v22 = vpop.f32.mrb[1].mxu1 }
  0xf7   :  { %v334_v23 = vadd.f32 %v466_v16, %v213_v21  ;;  %v342_v24 = vadd.f32 %v466_v16, %v245_v22  ;;  %v581_v25 = vpop.f32.mrb[2].mxu0  ;;  %v589_v26 = vpop.f32.mrb[2].mxu1 }
  0xf8   :  { %v337_v27 = vadd.f32 %v581_v25, %v466_v16  ;;  %v345_v28 = vadd.f32 %v589_v26, %v466_v16  ;;  %v216_v29 = vpop.f32.mrb[3].mxu0  ;;  %v248_v30 = vpop.f32.mrb[3].mxu1  ;;  %v352_v33 = vmax.f32 %v336_v19, 0.0  ;;  %v360_v34 = vmax.f32 %v344_v20, 0.0 }
  0xf9   :  { %v335_v31 = vadd.f32 %v466_v16, %v216_v29  ;;  %v343_v32 = vadd.f32 %v466_v16, %v248_v30  ;;  %v350_v37 = vmax.f32 %v334_v23, 0.0  ;;  %v358_v38 = vmax.f32 %v342_v24, 0.0 }
  0xfa   :  { %v353_v35 = vmax.f32 %v337_v27, 0.0  ;;  %v361_v36 = vmax.f32 %v345_v28, 0.0 }
  0xfb   :  { %v351_v39 = vmax.f32 %v335_v31, 0.0  ;;  %v359_v40 = vmax.f32 %v343_v32, 0.0 }
  0xfc   :  { %v507_v41 = vpack.c.bf16 %v353_v35, %v352_v33  ;;  %v527_v42 = vpack.c.bf16 %v361_v36, %v360_v34 }
  0xfd   :  { %v502_v43 = vpack.c.bf16 %v351_v39, %v350_v37  ;;  %v522_v44 = vpack.c.bf16 %v359_v40, %v358_v38  ;;  %v584_v45 = vpop.f32.mrb[4].mxu0  ;;  %v592_v46 = vpop.f32.mrb[4].mxu1 }
  0xfe   :  { %539 = vst [vmem:[%s724_s3 + $0x8] sm:$0xff] %v507_v41   ;;  %543 = vst [vmem:[%s724_s3 + $0x28] sm:$0xff] %v527_v42   ;;  %v340_v47 = vadd.f32 %v584_v45, %v466_v16  ;;  %v348_v48 = vadd.f32 %v592_v46, %v466_v16  ;;  %v229_v49 = vpop.f32.mrb[5].mxu0  ;;  %v261_v50 = vpop.f32.mrb[5].mxu1 }
  0xff   :  { %503 = vst [vmem:[%s724_s3] sm:$0xff] %v502_v43   ;;  %542 = vst [vmem:[%s724_s3 + $0x20] sm:$0xff] %v522_v44   ;;  %v338_v51 = vadd.f32 %v466_v16, %v229_v49  ;;  %v346_v52 = vadd.f32 %v466_v16, %v261_v50  ;;  %v585_v53 = vpop.f32.mrb[6].mxu0  ;;  %v593_v54 = vpop.f32.mrb[6].mxu1 }
 0x100   :  { %v341_v55 = vadd.f32 %v585_v53, %v466_v16  ;;  %v349_v56 = vadd.f32 %v593_v54, %v466_v16  ;;  %v232_v57 = vpop.f32.mrb[7].mxu0  ;;  %v264_v58 = vpop.f32.mrb[7].mxu1  ;;  %v356_v61 = vmax.f32 %v340_v47, 0.0  ;;  %v364_v62 = vmax.f32 %v348_v48, 0.0 }
 0x101   :  { %v339_v59 = vadd.f32 %v466_v16, %v232_v57  ;;  %v347_v60 = vadd.f32 %v466_v16, %v264_v58  ;;  %v354_v1 = vmax.f32 %v338_v51, 0.0  ;;  %v362_v2 = vmax.f32 %v346_v52, 0.0 }
 0x102   :  { %v357_v63 = vmax.f32 %v341_v55, 0.0  ;;  %v365_v0 = vmax.f32 %v349_v56, 0.0 }
 0x103   :  { %v355_v3 = vmax.f32 %v339_v59, 0.0  ;;  %v363_v4 = vmax.f32 %v347_v60, 0.0 }
 0x104   :  { %v517_v5 = vpack.c.bf16 %v357_v63, %v356_v61  ;;  %v537_v6 = vpack.c.bf16 %v365_v0, %v364_v62 }
 0x105   :  { %v512_v7 = vpack.c.bf16 %v355_v3, %v354_v1  ;;  %v532_v8 = vpack.c.bf16 %v363_v4, %v362_v2 }
 0x106   :  { %541 = vst [vmem:[%s724_s3 + $0x18] sm:$0xff] %v517_v5   ;;  %545 = vst [vmem:[%s724_s3 + $0x38] sm:$0xff] %v537_v6  }
 0x107   :  { %540 = vst [vmem:[%s724_s3 + $0x10] sm:$0xff] %v512_v7   ;;  %544 = vst [vmem:[%s724_s3 + $0x30] sm:$0xff] %v532_v8  }

// kernel: deeplabv3_forward.9
= control target key start
LH: loop header
LB: loop body
LE: loop exit
PB: predicated region body
PF: predicated region fallthrough
CT: control target
= control target key end

     0   :  { %s939_s1 = inlined_call_operand.vmem [shape: bf16[256,128], index: 1, kind: input, shape index: {}]   ;;  %s940_s0 = inlined_call_operand.vmem [shape: bf16[128,256], index: 0, kind: input, shape index: {}]   ;;  %s941_s2 = inlined_call_operand.vmem [shape: f32[1,128], index: 2, kind: input, shape index: {}]   ;;  %s942_s3 = inlined_call_operand.vmem [shape: bf16[128,128], index: 3, kind: output, shape index: {}]  }
   0x1   :  { %v738_v0 = vld [vmem:[%s939_s1 + $0x40] sm:$0xff]   ;;  %v740_v2 = vld [vmem:[%s939_s1 + $0x48] sm:$0xff]   ;;  %v742_v4 = vld [vmem:[%s939_s1 + $0x50] sm:$0xff]  }
   0x2   :  { %v739_v1 = vld [vmem:[%s939_s1] sm:$0xff]   ;;  %658 = vmatprep.subr.bf16.mxu0 %v738_v0  ;;  %722 = vmatprep.subr.bf16.mxu1 %v738_v0  ;;  %v741_v3 = vld [vmem:[%s939_s1 + $0x8] sm:$0xff]   ;;  %v743_v5 = vld [vmem:[%s939_s1 + $0x10] sm:$0xff]  }
   0x3   :  { %659 = vmatpush3.bf16.msra.mxu0 %v739_v1  ;;  %730 = vmatpush3.bf16.msra.mxu1 %v739_v1  ;;  %v744_v6 = vld [vmem:[%s939_s1 + $0x58] sm:$0xff]   ;;  %v746_v8 = vld [vmem:[%s939_s1 + $0x60] sm:$0xff]   ;;  %v748_v10 = vld [vmem:[%s939_s1 + $0x68] sm:$0xff]  }
   0x4   :  { %660 = vmatprep.subr.bf16.mxu0 %v740_v2  ;;  %723 = vmatprep.subr.bf16.mxu1 %v740_v2  ;;  %v745_v7 = vld [vmem:[%s939_s1 + $0x18] sm:$0xff]   ;;  %v747_v9 = vld [vmem:[%s939_s1 + $0x20] sm:$0xff]   ;;  %v749_v13 = vld [vmem:[%s939_s1 + $0x28] sm:$0xff]  }
   0x5   :  { %v756_v11 = vld [vmem:[%s940_s0 + $0x4] ss:$8 sps:$4 sm:$0xff]   ;;  %v750_v14 = vld [vmem:[%s939_s1 + $0x70] sm:$0xff]   ;;  %v752_v16 = vld [vmem:[%s939_s1 + $0x78] sm:$0xff]  }
   0x6   :  { %v759_v12 = vld [vmem:[%s940_s0 + $0x44] ss:$8 sps:$4 sm:$0xff]   ;;  %307 = vmatprep.mubr.bf16.mxu0 %v756_v11  ;;  %v751_v15 = vld [vmem:[%s939_s1 + $0x30] sm:$0xff]   ;;  %v753_v17 = vld [vmem:[%s939_s1 + $0x38] sm:$0xff]  }
   0x7   :  { %661 = vmatpush3.bf16.msra.mxu0 %v741_v3  ;;  %731 = vmatpush3.bf16.msra.mxu1 %v741_v3  ;;  %v754_v18 = vld [vmem:[%s940_s0] ss:$8 sps:$4 sm:$0xff]   ;;  %v760_v20 = vld [vmem:[%s940_s0 + $0x14] ss:$8 sps:$4 sm:$0xff]   ;;  %v764_v22 = vld [vmem:[%s940_s0 + $0x10] ss:$8 sps:$4 sm:$0xff]  }
   0x8   :  { %662 = vmatprep.subr.bf16.mxu0 %v742_v4  ;;  %724 = vmatprep.subr.bf16.mxu1 %v742_v4  ;;  %v757_v19 = vld [vmem:[%s940_s0 + $0x40] ss:$8 sps:$4 sm:$0xff]   ;;  %v762_v21 = vld [vmem:[%s940_s0 + $0x54] ss:$8 sps:$4 sm:$0xff]   ;;  %v765_v23 = vld [vmem:[%s940_s0 + $0x50] ss:$8 sps:$4 sm:$0xff]  }
   0x9   :  { %339 = vmatprep.mubr.bf16.mxu1 %v759_v12  ;;  %v766_v24 = vld [vmem:[%s940_s0 + $0x24] ss:$8 sps:$4 sm:$0xff]   ;;  %v770_v26 = vld [vmem:[%s940_s0 + $0x20] ss:$8 sps:$4 sm:$0xff]   ;;  %v772_v28 = vld [vmem:[%s940_s0 + $0x34] ss:$8 sps:$4 sm:$0xff]  }
   0xa   :  { %v768_v25 = vld [vmem:[%s940_s0 + $0x64] ss:$8 sps:$4 sm:$0xff]   ;;  %v771_v27 = vld [vmem:[%s940_s0 + $0x60] ss:$8 sps:$4 sm:$0xff]   ;;  %v774_v29 = vld [vmem:[%s940_s0 + $0x74] ss:$8 sps:$4 sm:$0xff]  }
   0xb   :  { %663 = vmatpush3.bf16.msra.mxu0 %v743_v5  ;;  %732 = vmatpush3.bf16.msra.mxu1 %v743_v5  ;;  %v776_v30 = vld [vmem:[%s940_s0 + $0x30] ss:$8 sps:$4 sm:$0xff]   ;;  %v897_v35 = vld [vmem:[%s941_s2] ss:$0 sm:$0xff] }
   0xc   :  { %664 = vmatprep.subr.bf16.mxu0 %v744_v6  ;;  %725 = vmatprep.subr.bf16.mxu1 %v744_v6  ;;  %v777_v31 = vld [vmem:[%s940_s0 + $0x70] ss:$8 sps:$4 sm:$0xff]  }
   0xf   :  { %665 = vmatpush3.bf16.msra.mxu0 %v745_v7  ;;  %733 = vmatpush3.bf16.msra.mxu1 %v745_v7 }
  0x10   :  { %666 = vmatprep.subr.bf16.mxu0 %v746_v8  ;;  %726 = vmatprep.subr.bf16.mxu1 %v746_v8 }
  0x13   :  { %667 = vmatpush3.bf16.msra.mxu0 %v747_v9  ;;  %734 = vmatpush3.bf16.msra.mxu1 %v747_v9 }
  0x14   :  { %668 = vmatprep.subr.bf16.mxu0 %v748_v10  ;;  %727 = vmatprep.subr.bf16.mxu1 %v748_v10 }
  0x17   :  { %669 = vmatpush3.bf16.msra.mxu0 %v749_v13  ;;  %735 = vmatpush3.bf16.msra.mxu1 %v749_v13 }
  0x18   :  { %670 = vmatprep.subr.bf16.mxu0 %v750_v14  ;;  %728 = vmatprep.subr.bf16.mxu1 %v750_v14 }
  0x1b   :  { %671 = vmatpush3.bf16.msra.mxu0 %v751_v15  ;;  %736 = vmatpush3.bf16.msra.mxu1 %v751_v15 }
  0x1c   :  { %672 = vmatprep.subr.bf16.mxu0 %v752_v16  ;;  %729 = vmatprep.subr.bf16.mxu1 %v752_v16 }
  0x1f   :  { %673 = vmatpush3.bf16.msra.mxu0 %v753_v17  ;;  %737 = vmatpush3.bf16.msra.mxu1 %v753_v17 }
  0x22   :  { %308 = vmatmul.mubr.bf16.vlgmr.msra.gmra.mrb[0].mxu0 %v754_v18  ;;  %340 = vmatmul.mubr.bf16.vlgmr.msra.gmra.mrb[0].mxu1 %v757_v19 }
  0x23   :  { %315 = vmatprep.mubr.bf16.mxu0 %v760_v20  ;;  %347 = vmatprep.mubr.bf16.mxu1 %v762_v21 }
  0x2a   :  { %316 = vmatmul.mubr.bf16.gmra.mrb[4].mxu0 %v764_v22  ;;  %348 = vmatmul.mubr.bf16.gmra.mrb[4].mxu1 %v765_v23 }
  0x2b   :  { %323 = vmatprep.mubr.bf16.mxu0 %v766_v24  ;;  %355 = vmatprep.mubr.bf16.mxu1 %v768_v25 }
  0x32   :  { %324 = vmatmul.mubr.bf16.gmra.mrb[8].mxu0 %v770_v26  ;;  %356 = vmatmul.mubr.bf16.gmra.mrb[8].mxu1 %v771_v27 }
  0x33   :  { %331 = vmatprep.mubr.bf16.mxu0 %v772_v28  ;;  %363 = vmatprep.mubr.bf16.mxu1 %v774_v29 }
  0x3a   :  { %332 = vmatmul.mubr.bf16.gmra.mrb[12].mxu0 %v776_v30  ;;  %364 = vmatmul.mubr.bf16.gmra.mrb[12].mxu1 %v777_v31 }
  0xf5   :  { %v674_v32 = vpop.f32.mrb[0].mxu0  ;;  %v698_v33 = vpop.f32.mrb[0].mxu1 }
  0xf6   :  { %v675_v34 = vpop.f32.mrb[1].mxu0  ;;  %v699_v36 = vpop.f32.mrb[1].mxu1 }
  0xf7   :  { %v676_v37 = vadd.f32 %v675_v34, %v674_v32  ;;  %v700_v38 = vadd.f32 %v699_v36, %v698_v33  ;;  %v677_v39 = vpop.f32.mrb[2].mxu0  ;;  %v701_v40 = vpop.f32.mrb[2].mxu1 }
  0xf8   :  { %v678_v41 = vpop.f32.mrb[3].mxu0  ;;  %v702_v42 = vpop.f32.mrb[3].mxu1 }
  0xf9   :  { %v430_v43 = vadd.f32 %v676_v37, %v897_v35  ;;  %v438_v44 = vadd.f32 %v700_v38, %v897_v35  ;;  %v679_v45 = vadd.f32 %v678_v41, %v677_v39  ;;  %v703_v46 = vadd.f32 %v702_v42, %v701_v40 }
  0xfb   :  { %v431_v47 = vadd.f32 %v679_v45, %v897_v35  ;;  %v439_v48 = vadd.f32 %v703_v46, %v897_v35  ;;  %v446_v49 = vmax.f32 %v430_v43, 0.0  ;;  %v454_v50 = vmax.f32 %v438_v44, 0.0 }
  0xfd   :  { %v447_v51 = vmax.f32 %v431_v47, 0.0  ;;  %v455_v52 = vmax.f32 %v439_v48, 0.0  ;;  %v680_v53 = vpop.f32.mrb[4].mxu0  ;;  %v704_v54 = vpop.f32.mrb[4].mxu1 }
  0xfe   :  { %v681_v55 = vpop.f32.mrb[5].mxu0  ;;  %v705_v56 = vpop.f32.mrb[5].mxu1 }
  0xff   :  { %v614_v57 = vpack.c.bf16 %v447_v51, %v446_v49  ;;  %v634_v58 = vpack.c.bf16 %v455_v52, %v454_v50  ;;  %v682_v59 = vadd.f32 %v681_v55, %v680_v53  ;;  %v706_v60 = vadd.f32 %v705_v56, %v704_v54  ;;  %v683_v61 = vpop.f32.mrb[6].mxu0  ;;  %v707_v62 = vpop.f32.mrb[6].mxu1 }
 0x100   :  { %v684_v63 = vpop.f32.mrb[7].mxu0  ;;  %v708_v0 = vpop.f32.mrb[7].mxu1 }
 0x101   :  { %615 = vst [vmem:[%s942_s3] sm:$0xff] %v614_v57   ;;  %654 = vst [vmem:[%s942_s3 + $0x20] sm:$0xff] %v634_v58   ;;  %v432_v1 = vadd.f32 %v682_v59, %v897_v35  ;;  %v440_v2 = vadd.f32 %v706_v60, %v897_v35  ;;  %v685_v3 = vadd.f32 %v684_v63, %v683_v61 }
 0x102   :  { %v709_v4 = vadd.f32 %v708_v0, %v707_v62 }
 0x103   :  { %v433_v5 = vadd.f32 %v685_v3, %v897_v35  ;;  %v448_v7 = vmax.f32 %v432_v1, 0.0  ;;  %v456_v8 = vmax.f32 %v440_v2, 0.0 }
 0x104   :  { %v441_v6 = vadd.f32 %v709_v4, %v897_v35 }
 0x105   :  { %v449_v9 = vmax.f32 %v433_v5, 0.0  ;;  %v686_v11 = vpop.f32.mrb[8].mxu0  ;;  %v710_v12 = vpop.f32.mrb[8].mxu1 }
 0x106   :  { %v457_v10 = vmax.f32 %v441_v6, 0.0  ;;  %v687_v13 = vpop.f32.mrb[9].mxu0  ;;  %v711_v14 = vpop.f32.mrb[9].mxu1 }
 0x107   :  { %v619_v15 = vpack.c.bf16 %v449_v9, %v448_v7  ;;  %v688_v17 = vadd.f32 %v687_v13, %v686_v11  ;;  %v712_v18 = vadd.f32 %v711_v14, %v710_v12  ;;  %v689_v19 = vpop.f32.mrb[10].mxu0  ;;  %v713_v20 = vpop.f32.mrb[10].mxu1 }
 0x108   :  { %v639_v16 = vpack.c.bf16 %v457_v10, %v456_v8  ;;  %v690_v21 = vpop.f32.mrb[11].mxu0  ;;  %v714_v22 = vpop.f32.mrb[11].mxu1 }
 0x109   :  { %651 = vst [vmem:[%s942_s3 + $0x8] sm:$0xff] %v619_v15   ;;  %v434_v23 = vadd.f32 %v688_v17, %v897_v35  ;;  %v442_v24 = vadd.f32 %v712_v18, %v897_v35  ;;  %v691_v25 = vadd.f32 %v690_v21, %v689_v19  ;;  %v715_v26 = vadd.f32 %v714_v22, %v713_v20 }
 0x10a   :  { %655 = vst [vmem:[%s942_s3 + $0x28] sm:$0xff] %v639_v16  }
 0x10b   :  { %v435_v27 = vadd.f32 %v691_v25, %v897_v35  ;;  %v443_v28 = vadd.f32 %v715_v26, %v897_v35  ;;  %v450_v29 = vmax.f32 %v434_v23, 0.0  ;;  %v458_v30 = vmax.f32 %v442_v24, 0.0 }
 0x10d   :  { %v451_v31 = vmax.f32 %v435_v27, 0.0  ;;  %v459_v32 = vmax.f32 %v443_v28, 0.0  ;;  %v692_v33 = vpop.f32.mrb[12].mxu0  ;;  %v716_v34 = vpop.f32.mrb[12].mxu1 }
 0x10e   :  { %v693_v36 = vpop.f32.mrb[13].mxu0  ;;  %v717_v37 = vpop.f32.mrb[13].mxu1 }
 0x10f   :  { %v624_v38 = vpack.c.bf16 %v451_v31, %v450_v29  ;;  %v644_v39 = vpack.c.bf16 %v459_v32, %v458_v30  ;;  %v694_v40 = vadd.f32 %v693_v36, %v692_v33  ;;  %v718_v41 = vadd.f32 %v717_v37, %v716_v34  ;;  %v695_v42 = vpop.f32.mrb[14].mxu0  ;;  %v719_v43 = vpop.f32.mrb[14].mxu1 }
 0x110   :  { %v696_v44 = vpop.f32.mrb[15].mxu0  ;;  %v720_v45 = vpop.f32.mrb[15].mxu1 }
 0x111   :  { %652 = vst [vmem:[%s942_s3 + $0x10] sm:$0xff] %v624_v38   ;;  %656 = vst [vmem:[%s942_s3 + $0x30] sm:$0xff] %v644_v39   ;;  %v436_v46 = vadd.f32 %v694_v40, %v897_v35  ;;  %v444_v47 = vadd.f32 %v718_v41, %v897_v35  ;;  %v697_v48 = vadd.f32 %v696_v44, %v695_v42 }
 0x112   :  { %v721_v49 = vadd.f32 %v720_v45, %v719_v43 }
 0x113   :  { %v437_v50 = vadd.f32 %v697_v48, %v897_v35  ;;  %v452_v52 = vmax.f32 %v436_v46, 0.0  ;;  %v460_v53 = vmax.f32 %v444_v47, 0.0 }
 0x114   :  { %v445_v51 = vadd.f32 %v721_v49, %v897_v35 }
 0x115   :  { %v453_v54 = vmax.f32 %v437_v50, 0.0 }
 0x116   :  { %v461_v55 = vmax.f32 %v445_v51, 0.0 }
 0x117   :  { %v629_v56 = vpack.c.bf16 %v453_v54, %v452_v52 }
 0x118   :  { %v649_v57 = vpack.c.bf16 %v461_v55, %v460_v53 }
 0x119   :  { %653 = vst [vmem:[%s942_s3 + $0x18] sm:$0xff] %v629_v56  }
 0x11a   :  { %657 = vst [vmem:[%s942_s3 + $0x38] sm:$0xff] %v649_v57  }

// kernel: deeplabv3_forward.12
= control target key start
LH: loop header
LB: loop body
LE: loop exit
PB: predicated region body
PF: predicated region fallthrough
CT: control target
= control target key end

     0   :  { %s705_s1 = inlined_call_operand.vmem [shape: bf16[128,128], index: 1, kind: input, shape index: {}]   ;;  %s706_s0 = inlined_call_operand.vmem [shape: bf16[128,128], index: 0, kind: input, shape index: {}]   ;;  %s707_s2 = inlined_call_operand.vmem [shape: f32[1,128], index: 2, kind: input, shape index: {}]   ;;  %s708_s3 = inlined_call_operand.vmem [shape: bf16[128,128], index: 3, kind: output, shape index: {}]  }
   0x1   :  { %v594_v0 = vld [vmem:[%s705_s1] sm:$0xff]   ;;  %v595_v1 = vld [vmem:[%s705_s1 + $0x8] sm:$0xff]   ;;  %v596_v2 = vld [vmem:[%s705_s1 + $0x10] sm:$0xff]  }
   0x2   :  { %546 = vmatprep.subr.bf16.mxu0 %v594_v0  ;;  %578 = vmatprep.subr.bf16.mxu1 %v594_v0  ;;  %v597_v3 = vld [vmem:[%s705_s1 + $0x18] sm:$0xff]   ;;  %v602_v4 = vld [vmem:[%s706_s0] sm:$0xff]   ;;  %v599_v7 = vld [vmem:[%s705_s1 + $0x28] sm:$0xff]  }
   0x3   :  { %547 = vmatpush3.bf16.msra.mxu0 %v594_v0  ;;  %586 = vmatpush3.bf16.msra.mxu1 %v594_v0  ;;  %v603_v5 = vld [vmem:[%s706_s0 + $0x20] sm:$0xff]   ;;  %v600_v8 = vld [vmem:[%s705_s1 + $0x30] sm:$0xff]   ;;  %v601_v9 = vld [vmem:[%s705_s1 + $0x38] sm:$0xff]  }
   0x4   :  { %548 = vmatprep.subr.bf16.mxu0 %v595_v1  ;;  %579 = vmatprep.subr.bf16.mxu1 %v595_v1  ;;  %v598_v6 = vld [vmem:[%s705_s1 + $0x20] sm:$0xff]   ;;  %v604_v10 = vld [vmem:[%s706_s0 + $0x8] sm:$0xff]   ;;  %v606_v12 = vld [vmem:[%s706_s0 + $0x10] sm:$0xff]  }
   0x5   :  { %562 = vmatprep.mubr.bf16.mxu0 %v602_v4  ;;  %570 = vmatprep.mubr.bf16.mxu1 %v603_v5  ;;  %v605_v11 = vld [vmem:[%s706_s0 + $0x28] sm:$0xff]   ;;  %v607_v13 = vld [vmem:[%s706_s0 + $0x30] sm:$0xff]   ;;  %v608_v14 = vld [vmem:[%s706_s0 + $0x18] sm:$0xff]  }
   0x6   :  { %v609_v15 = vld [vmem:[%s706_s0 + $0x38] sm:$0xff]   ;;  %v450_v17 = vld [vmem:[%s707_s2] ss:$0 sm:$0xff] }
   0x7   :  { %549 = vmatpush3.bf16.msra.mxu0 %v595_v1  ;;  %587 = vmatpush3.bf16.msra.mxu1 %v595_v1 }
   0x8   :  { %550 = vmatprep.subr.bf16.mxu0 %v596_v2  ;;  %580 = vmatprep.subr.bf16.mxu1 %v596_v2 }
   0xb   :  { %551 = vmatpush3.bf16.msra.mxu0 %v596_v2  ;;  %588 = vmatpush3.bf16.msra.mxu1 %v596_v2 }
   0xc   :  { %552 = vmatprep.subr.bf16.mxu0 %v597_v3  ;;  %581 = vmatprep.subr.bf16.mxu1 %v597_v3 }
   0xf   :  { %553 = vmatpush3.bf16.msra.mxu0 %v597_v3  ;;  %589 = vmatpush3.bf16.msra.mxu1 %v597_v3 }
  0x10   :  { %554 = vmatprep.subr.bf16.mxu0 %v598_v6  ;;  %582 = vmatprep.subr.bf16.mxu1 %v598_v6 }
  0x13   :  { %555 = vmatpush3.bf16.msra.mxu0 %v598_v6  ;;  %590 = vmatpush3.bf16.msra.mxu1 %v598_v6 }
  0x14   :  { %556 = vmatprep.subr.bf16.mxu0 %v599_v7  ;;  %583 = vmatprep.subr.bf16.mxu1 %v599_v7 }
  0x17   :  { %557 = vmatpush3.bf16.msra.mxu0 %v599_v7  ;;  %591 = vmatpush3.bf16.msra.mxu1 %v599_v7 }
  0x18   :  { %558 = vmatprep.subr.bf16.mxu0 %v600_v8  ;;  %584 = vmatprep.subr.bf16.mxu1 %v600_v8 }
  0x1b   :  { %559 = vmatpush3.bf16.msra.mxu0 %v600_v8  ;;  %592 = vmatpush3.bf16.msra.mxu1 %v600_v8 }
  0x1c   :  { %560 = vmatprep.subr.bf16.mxu0 %v601_v9  ;;  %585 = vmatprep.subr.bf16.mxu1 %v601_v9 }
  0x1f   :  { %561 = vmatpush3.bf16.msra.mxu0 %v601_v9  ;;  %593 = vmatpush3.bf16.msra.mxu1 %v601_v9 }
  0x22   :  { %563 = vmatmul.mubr.bf16.vlgmr.msra.gmra.mrb[0].mxu0 %v604_v10  ;;  %571 = vmatmul.mubr.bf16.vlgmr.msra.gmra.mrb[0].mxu1 %v605_v11 }
  0x23   :  { %566 = vmatprep.mubr.bf16.mxu0 %v606_v12  ;;  %574 = vmatprep.mubr.bf16.mxu1 %v607_v13 }
  0x2a   :  { %567 = vmatmul.mubr.bf16.gmra.mrb[4].mxu0 %v608_v14  ;;  %575 = vmatmul.mubr.bf16.gmra.mrb[4].mxu1 %v609_v15 }
  0xf5   :  { %v564_v16 = vpop.f32.mrb[0].mxu0  ;;  %v572_v18 = vpop.f32.mrb[0].mxu1 }
  0xf6   :  { %v213_v19 = vpop.f32.mrb[1].mxu0  ;;  %v245_v20 = vpop.f32.mrb[1].mxu1  ;;  %v336_v23 = vadd.f32 %v564_v16, %v450_v17  ;;  %v344_v24 = vadd.f32 %v572_v18, %v450_v17 }
  0xf7   :  { %v565_v21 = vpop.f32.mrb[2].mxu0  ;;  %v573_v22 = vpop.f32.mrb[2].mxu1  ;;  %v334_v29 = vadd.f32 %v450_v17, %v213_v19  ;;  %v342_v30 = vadd.f32 %v450_v17, %v245_v20 }
  0xf8   :  { %v337_v25 = vadd.f32 %v565_v21, %v450_v17  ;;  %v345_v26 = vadd.f32 %v573_v22, %v450_v17  ;;  %v216_v27 = vpop.f32.mrb[3].mxu0  ;;  %v248_v28 = vpop.f32.mrb[3].mxu1 }
  0xf9   :  { %v335_v31 = vadd.f32 %v450_v17, %v216_v27  ;;  %v343_v32 = vadd.f32 %v450_v17, %v248_v28 }
  0xfa   :  { %v491_v33 = vpack.c.bf16 %v337_v25, %v336_v23  ;;  %v511_v34 = vpack.c.bf16 %v345_v26, %v344_v24 }
  0xfb   :  { %v486_v35 = vpack.c.bf16 %v335_v31, %v334_v29  ;;  %v506_v36 = vpack.c.bf16 %v343_v32, %v342_v30 }
  0xfc   :  { %523 = vst [vmem:[%s708_s3 + $0x8] sm:$0xff] %v491_v33   ;;  %527 = vst [vmem:[%s708_s3 + $0x28] sm:$0xff] %v511_v34  }
  0xfd   :  { %487 = vst [vmem:[%s708_s3] sm:$0xff] %v486_v35   ;;  %526 = vst [vmem:[%s708_s3 + $0x20] sm:$0xff] %v506_v36   ;;  %v568_v37 = vpop.f32.mrb[4].mxu0  ;;  %v576_v38 = vpop.f32.mrb[4].mxu1 }
  0xfe   :  { %v229_v39 = vpop.f32.mrb[5].mxu0  ;;  %v261_v40 = vpop.f32.mrb[5].mxu1  ;;  %v340_v43 = vadd.f32 %v568_v37, %v450_v17  ;;  %v348_v44 = vadd.f32 %v576_v38, %v450_v17 }
  0xff   :  { %v569_v41 = vpop.f32.mrb[6].mxu0  ;;  %v577_v42 = vpop.f32.mrb[6].mxu1  ;;  %v338_v49 = vadd.f32 %v450_v17, %v229_v39  ;;  %v346_v50 = vadd.f32 %v450_v17, %v261_v40 }
 0x100   :  { %v341_v45 = vadd.f32 %v569_v41, %v450_v17  ;;  %v349_v46 = vadd.f32 %v577_v42, %v450_v17  ;;  %v232_v47 = vpop.f32.mrb[7].mxu0  ;;  %v264_v48 = vpop.f32.mrb[7].mxu1 }
 0x101   :  { %v339_v51 = vadd.f32 %v450_v17, %v232_v47  ;;  %v347_v52 = vadd.f32 %v450_v17, %v264_v48 }
 0x102   :  { %v501_v53 = vpack.c.bf16 %v341_v45, %v340_v43  ;;  %v521_v54 = vpack.c.bf16 %v349_v46, %v348_v44 }
 0x103   :  { %v496_v55 = vpack.c.bf16 %v339_v51, %v338_v49  ;;  %v516_v56 = vpack.c.bf16 %v347_v52, %v346_v50 }
 0x104   :  { %525 = vst [vmem:[%s708_s3 + $0x18] sm:$0xff] %v501_v53   ;;  %529 = vst [vmem:[%s708_s3 + $0x38] sm:$0xff] %v521_v54  }
 0x105   :  { %524 = vst [vmem:[%s708_s3 + $0x10] sm:$0xff] %v496_v55   ;;  %528 = vst [vmem:[%s708_s3 + $0x30] sm:$0xff] %v516_v56  }

// kernel: deeplabv3_forward.11
= control target key start
LH: loop header
LB: loop body
LE: loop exit
PB: predicated region body
PF: predicated region fallthrough
CT: control target
= control target key end

     0   :  { %s2165_s18 = smov 0   ;;  %s2167_s19 = smov 0   ;;  %s2538_s0 = inlined_call_operand.vmem [shape: bf16[2,4,4,128], index: 0, kind: input, shape index: {}]   ;;  %s2539_s1 = inlined_call_operand.vmem [shape: bf16[3,384,128], index: 1, kind: input, shape index: {}]   ;;  %s2540_s2 = inlined_call_operand.vmem [shape: f32[1,128], index: 2, kind: input, shape index: {}]   ;;  %s2541_s3 = inlined_call_operand.vmem [shape: bf16[128,128], index: 3, kind: input, shape index: {}]   ;;  %s2542_s4 = inlined_call_operand.vmem [shape: f32[1,128], index: 4, kind: input, shape index: {}]   ;;  %s2543_s5 = inlined_call_operand.vmem [shape: bf16[2,2,2,128], index: 5, kind: output, shape index: {}]  }
   0x1   :  { %s2169_s20 = smov 0  }
   0x2 LB: > { %s27_s21 = sadd.s32 1, %s2125_s19  ;;  %p1628_p0 = scmp.ge.s32.totalorder %s2129_s20, 1  ;;  %s2129_s20 = sphi %s2169_s20, %s15_s20   ;;  %s2125_s19 = sphi %s2167_s19, %s2545_s19   ;;  %s2121_s18 = sphi %s2165_s18, %s2544_s18  }
   0x3   : > { %p29_p1 = scmp.ge.s32.totalorder %s27_s21, 2  ;;  %p201_p2 = scmp.lt.s32.totalorder %s2129_s20, 3 }
   0x5   : > { %s2547_s21 = smov (%p29_p1, %s27_s21), 0  ;;  %p202_p3 = pnand %p1628_p0, %p201_p2 }
   0x6   : > { %v2027_v0 = vld [vmem:[%s2539_s1 + $0x40] sm:$0xff] (!%p202_p3)   ;;  %v2131_v1 = vmov (!%p202_p3), 0.0   ;;  %v2030_v4 = vld [vmem:[%s2539_s1 + $0x48] sm:$0xff] (!%p202_p3)   ;;  %v2033_v7 = vld [vmem:[%s2539_s1 + $0x50] sm:$0xff] (!%p202_p3)   ;;  %vm2132_vm0 = vmmov (!%p202_p3), 0   ;;  %p232_p4 = scmp.lt.s32.totalorder (!%p202_p3), %s2121_s18, 1  ;;  %v257_v20 = vlaneseq (!%p202_p3) }
   0x7   : > { %205 = sbr.rel (%p202_p3) target bundleno = 561 (0x231), region = 40  ;;  %1919 = vmatprep.subr.bf16.mxu1 (!%p202_p3), %v2131_v1  ;;  %v2028_v2 = vld [vmem:[%s2539_s1] sm:$0xff] (!%p202_p3)   ;;  %1817 = vmatprep.subr.bf16.mxu0 (!%p202_p3), %v2027_v0  ;;  %v2031_v5 = vld [vmem:[%s2539_s1 + $0x8] sm:$0xff] (!%p202_p3)   ;;  %v2034_v8 = vld [vmem:[%s2539_s1 + $0x10] sm:$0xff] (!%p202_p3)   ;;  %v2133_v26 = vmov (!%p202_p3), 1983009808  }
   0x8   : > { %v2029_v3 = vld [vmem:[%s2539_s1 + $0x80] sm:$0xff] (!%p202_p3)   ;;  %1818 = vmatpush3.bf16.msra.mxu0 (!%p202_p3), %v2028_v2  ;;  %v2032_v6 = vld [vmem:[%s2539_s1 + $0x88] sm:$0xff] (!%p202_p3)   ;;  %1935 = vmatprep.mubr.msk.bf16.mxu1 (!%p202_p3), %vm2132_vm0, %v2131_v1  ;;  %v2035_v9 = vld [vmem:[%s2539_s1 + $0x90] sm:$0xff] (!%p202_p3)   ;;  %v258_v24 = vshrl.u32 (!%p202_p3), %v257_v20, 7  ;;  %v255_v27 = vunpack.c.l.s4 (!%p202_p3), %v2133_v26  ;;  %v2134_v32 = vmov (!%p202_p3), 1966171168  }
   0x9   : > { %1920 = vmatpush3.bf16.msra.mxu1 (!%p202_p3), %v2029_v3  ;;  %1819 = vmatprep.subr.bf16.mxu0 (!%p202_p3), %v2030_v4  ;;  %v2036_v10 = vld [vmem:[%s2539_s1 + $0x58] sm:$0xff] (!%p202_p3)   ;;  %v2039_v13 = vld [vmem:[%s2539_s1 + $0x60] sm:$0xff] (!%p202_p3)   ;;  %v2042_v16 = vld [vmem:[%s2539_s1 + $0x68] sm:$0xff] (!%p202_p3)   ;;  %v286_v33 = vunpack.c.l.s4 (!%p202_p3), %v2134_v32 }
   0xa   : > { %1921 = vmatprep.subr.bf16.mxu1 (!%p202_p3), %v2131_v1  ;;  %v2037_v11 = vld [vmem:[%s2539_s1 + $0x18] sm:$0xff] (!%p202_p3)   ;;  %v2040_v14 = vld [vmem:[%s2539_s1 + $0x20] sm:$0xff] (!%p202_p3)   ;;  %v2043_v17 = vld [vmem:[%s2539_s1 + $0x28] sm:$0xff] (!%p202_p3)   ;;  %v256_v31 = vunpack.c.0.s8 (!%p202_p3), %v255_v27 }
   0xb   : > { %v2038_v12 = vld [vmem:[%s2539_s1 + $0x98] sm:$0xff] (!%p202_p3)   ;;  %v2041_v15 = vld [vmem:[%s2539_s1 + $0xa0] sm:$0xff] (!%p202_p3)   ;;  %v2044_v18 = vld [vmem:[%s2539_s1 + $0xa8] sm:$0xff] (!%p202_p3)   ;;  %v287_v38 = vunpack.c.0.s8 (!%p202_p3), %v286_v33 }
   0xc   : > { %1820 = vmatpush3.bf16.msra.mxu0 (!%p202_p3), %v2031_v5  ;;  %v2045_v19 = vld [vmem:[%s2539_s1 + $0x70] sm:$0xff] (!%p202_p3)   ;;  %v2048_v23 = vld [vmem:[%s2539_s1 + $0x78] sm:$0xff] (!%p202_p3)   ;;  %v2051_v34 = vld [vmem:[%s2539_s1 + $0x100] sm:$0xff] (!%p202_p3)   ;;  %v2282_v35 = vsub.s32 (!%p202_p3), %v256_v31, %v258_v24 }
   0xd   : > { %1922 = vmatpush3.bf16.msra.mxu1 (!%p202_p3), %v2032_v6  ;;  %1821 = vmatprep.subr.bf16.mxu0 (!%p202_p3), %v2033_v7  ;;  %v2046_v21 = vld [vmem:[%s2539_s1 + $0x30] sm:$0xff] (!%p202_p3)   ;;  %v2049_v25 = vld [vmem:[%s2539_s1 + $0x38] sm:$0xff] (!%p202_p3)   ;;  %v2287_v47 = vsub.s32 (!%p202_p3), %v287_v38, %v258_v24  ;;  %v2052_v3 = vld [vmem:[%s2539_s1 + $0xc0] sm:$0xff] (!%p202_p3)  }
   0xe   : > { %1923 = vmatprep.subr.bf16.mxu1 %v2131_v1  ;;  %s2549_s18 = smov (!%p232_p4, %s2121_s18), 1  ;;  %v2047_v22 = vld [vmem:[%s2539_s1 + $0xb0] sm:$0xff]   ;;  %v2050_v28 = vld [vmem:[%s2539_s1 + $0xb8] sm:$0xff]   ;;  %v2053_v6 = vld [vmem:[%s2539_s1 + $0x140] sm:$0xff]  }
   0xf   : > { %s1816_s14 = sshll.u32 %s2549_s18, 3  ;;  %v2062_v33 = vld [vmem:[%s2539_s1 + $0x158] sm:$0xff]   ;;  %v2063_v38 = vld [vmem:[%s2539_s1 + $0x120] sm:$0xff]   ;;  %s1631_s24 = sshll.u32 %s2549_s18, 1 }
  0x10   : > { %1822 = vmatpush3.bf16.msra.mxu0 %v2034_v8  ;;  %s2261_s23 = scalar_lea.vmem %s2538_s0, %s1816_s14  ;;  %s244_s27 = scalar_lea.vmem %s2543_s5, %s1631_s24 }
  0x11   : > { %1924 = vmatpush3.bf16.msra.mxu1 %v2035_v9  ;;  %1823 = vmatprep.subr.bf16.mxu0 %v2036_v10  ;;  %v250_v29 = vld [vmem:[%s2261_s23] sm:$0x3]  ;;  %v251_v30 = vld [vmem:[%s2261_s23 + $0x2] sm:$0x3]  ;;  %v1657_v63 = vld [vmem:[%s2261_s23 + $0x4] sm:$0x3] }
  0x12   : > { %1925 = vmatprep.subr.bf16.mxu1 %v2131_v1  ;;  %v260_v36 = vrot.slane %v250_v29, %v2282_v35  ;;  %v267_v37 = vrot.slane %v251_v30, %v2282_v35  ;;  %v1656_v62 = vld [vmem:[%s2261_s23 + $0x2] sm:$0x3]  ;;  %v650_v5 = vrot.slane %v1657_v63, %v2282_v35 }
  0x13   : > { %v643_v4 = vrot.slane %v1656_v62, %v2282_v35 }
  0x14   : > { %1824 = vmatpush3.bf16.msra.mxu0 %v2037_v11  ;;  %v269_v39 = vshrl.u32 %v260_v36, 16  ;;  %v271_v40 = vshll.u32 %v260_v36, 16  ;;  %v276_v41 = vshrl.u32 %v267_v37, 16  ;;  %v278_v42 = vshll.u32 %v267_v37, 16  ;;  %v2054_v11 = vld [vmem:[%s2539_s1 + $0x108] sm:$0xff]  }
  0x15   : > { %1926 = vmatpush3.bf16.msra.mxu1 %v2038_v12  ;;  %1825 = vmatprep.subr.bf16.mxu0 %v2039_v13  ;;  %v282_v43 = vrot.slane %v260_v36, 1  ;;  %v283_v44 = vrot.slane %v267_v37, 1  ;;  %v652_v9 = vshrl.u32 %v643_v4, 16  ;;  %v654_v10 = vshll.u32 %v643_v4, 16  ;;  %v2056_v12 = vld [vmem:[%s2539_s1 + $0x148] sm:$0xff]   ;;  %v2061_v36 = vld [vmem:[%s2539_s1 + $0xd8] sm:$0xff]  }
  0x16   : > { %1927 = vmatprep.subr.bf16.mxu1 %v2131_v1  ;;  %v273_v45 = vrot.slane %v271_v40, 1  ;;  %v280_v46 = vrot.slane %v278_v42, 1  ;;  %v659_v13 = vshrl.u32 %v650_v5, 16  ;;  %v2065_v40 = vld [vmem:[%s2539_s1 + $0x160] sm:$0xff]  }
  0x17   : > { %v298_v51 = vrot.slane %v282_v43, %v2287_v47  ;;  %v321_v53 = vrot.slane %v283_v44, %v2287_v47  ;;  %v2064_v42 = vld [vmem:[%s2539_s1 + $0xe0] sm:$0xff]   ;;  %v2066_v43 = vld [vmem:[%s2539_s1 + $0x128] sm:$0xff]  }
  0x18   : > { %1826 = vmatpush3.bf16.msra.mxu0 %v2040_v14  ;;  %v274_v48 = vor.u32 %v273_v45, %v269_v39  ;;  %v281_v49 = vor.u32 %v280_v46, %v276_v41  ;;  %v661_v14 = vshll.u32 %v650_v5, 16  ;;  %v2068_v45 = vld [vmem:[%s2539_s1 + $0x168] sm:$0xff]  }
  0x19   : > { %1928 = vmatpush3.bf16.msra.mxu1 %v2041_v15  ;;  %1827 = vmatprep.subr.bf16.mxu0 %v2042_v16  ;;  %v2055_v15 = vld [vmem:[%s2539_s1 + $0xc8] sm:$0xff]   ;;  %v656_v16 = vrot.slane %v654_v10, 1  ;;  %v2077_v10 = vld [vmem:[%s2539_s1 + $0x200] sm:$0xff]  }
  0x1a   : > { %1929 = vmatprep.subr.bf16.mxu1 %v2131_v1  ;;  %v284_v50 = vcombine.low %v250_v29, %v274_v48  ;;  %v307_v52 = vcombine.low %v251_v30, %v281_v49  ;;  %v2060_v30 = vld [vmem:[%s2539_s1 + $0x118] sm:$0xff]   ;;  %v2067_v48 = vld [vmem:[%s2539_s1 + $0xe8] sm:$0xff]   ;;  %v2069_v49 = vld [vmem:[%s2539_s1 + $0x130] sm:$0xff]  }
  0x1b   : > { %v657_v20 = vor.u32 %v656_v16, %v652_v9  ;;  %v2078_v16 = vld [vmem:[%s2539_s1 + $0x1c8] sm:$0xff]  }
  0x1c   : > { %1828 = vmatpush3.bf16.msra.mxu0 %v2043_v17  ;;  %v291_v54 = vrot.slane %v284_v50, %v2287_v47  ;;  %v314_v55 = vrot.slane %v307_v52, %v2287_v47  ;;  %v665_v17 = vrot.slane %v643_v4, 1  ;;  %v2071_v52 = vld [vmem:[%s2539_s1 + $0x170] sm:$0xff]  }
  0x1d   : > { %1930 = vmatpush3.bf16.msra.mxu1 %v2044_v18  ;;  %1829 = vmatprep.subr.bf16.mxu0 %v2045_v19  ;;  %v663_v18 = vrot.slane %v661_v14, 1  ;;  %v666_v19 = vrot.slane %v650_v5, 1 }
  0x1e   : > { %1931 = vmatprep.subr.bf16.mxu1 %v2131_v1  ;;  %v299_v56 = vcombine.low %v291_v54, %v298_v51  ;;  %v322_v57 = vcombine.low %v314_v55, %v321_v53  ;;  %v681_v24 = vrot.slane %v665_v17, %v2287_v47  ;;  %v2070_v51 = vld [vmem:[%s2539_s1 + $0xf0] sm:$0xff]   ;;  %v1730_v53 = vld [vmem:[%s2261_s23 + $0x4] sm:$0x3]  ;;  %v1731_v54 = vld [vmem:[%s2261_s23 + $0x6] sm:$0x3] }
  0x1f   : > { %v704_v27 = vrot.slane %v666_v19, %v2287_v47  ;;  %v1029_v55 = vrot.slane %v1730_v53, %v2282_v35  ;;  %v2080_v19 = vld [vmem:[%s2539_s1 + $0x208] sm:$0xff]  }
  0x20   : > { %1830 = vmatpush3.bf16.msra.mxu0 %v2046_v21  ;;  %v306_v58 = vrot.slane %v299_v56, %v2287_v47  ;;  %v329_v59 = vrot.slane %v322_v57, %v2287_v47  ;;  %v2057_v21 = vld [vmem:[%s2539_s1 + $0x110] sm:$0xff]   ;;  %v1036_v56 = vrot.slane %v1731_v54, %v2282_v35  ;;  %v2072_v57 = vld [vmem:[%s2539_s1 + $0x138] sm:$0xff]  }
  0x21   : > { %1932 = vmatpush3.bf16.msra.mxu1 %v2047_v22  ;;  %1831 = vmatprep.subr.bf16.mxu0 %v2048_v23  ;;  %v664_v22 = vor.u32 %v663_v18, %v659_v13  ;;  %v667_v23 = vcombine.low %v1656_v62, %v657_v20  ;;  %v1051_v4 = vrot.slane %v1029_v55, 1  ;;  %v2076_v13 = vld [vmem:[%s2539_s1 + $0x180] sm:$0xff]  }
  0x22   : > { %1933 = vmatprep.subr.bf16.mxu1 %v2131_v1  ;;  %v378_v60 = vcombine.low %v306_v58, %v329_v59  ;;  %v1038_v58 = vshrl.u32 %v1029_v55, 16  ;;  %v1040_v59 = vshll.u32 %v1029_v55, 16  ;;  %v2104_v55 = vld [vmem:[%s2541_s3 + $0x28] sm:$0xff]  }
  0x23   : > { %v690_v26 = vcombine.low %v1657_v63, %v664_v22  ;;  %v674_v29 = vrot.slane %v667_v23, %v2287_v47  ;;  %v1045_v63 = vshrl.u32 %v1036_v56, 16  ;;  %v2081_v23 = vld [vmem:[%s2539_s1 + $0x1d0] sm:$0xff]  }
  0x24   : > { %1832 = vmatpush3.bf16.msra.mxu0 %v2049_v25  ;;  %v385_v61 = vrot.slane %v378_v60, %v2287_v47  ;;  %v2059_v25 = vld [vmem:[%s2539_s1 + $0x150] sm:$0xff]   ;;  %v2073_v60 = vld [vmem:[%s2539_s1 + $0xf8] sm:$0xff]  }
  0x25   : > { %1934 = vmatpush3.bf16.msra.mxu1 %v2050_v28  ;;  %1848 = vmatprep.subr.bf16.mxu0 %v2051_v34  ;;  %v2058_v28 = vld [vmem:[%s2539_s1 + $0xd0] sm:$0xff]   ;;  %v697_v31 = vrot.slane %v690_v26, %v2287_v47  ;;  %v682_v32 = vcombine.low %v674_v29, %v681_v24  ;;  %v2084_v29 = vld [vmem:[%s2539_s1 + $0x1d8] sm:$0xff]  }
  0x26   : > { %1939 = vmatprep.subr.bf16.mxu1 %v2131_v1  ;;  %v386_v0 = vcombine.high %v385_v61, %v385_v61  ;;  %v393_v2 = vrot.slane %v385_v61, %v2287_v47  ;;  %v2074_v61 = vld [vmem:[%s2539_s1 + $0x178] sm:$0xff]   ;;  %v2083_v26 = vld [vmem:[%s2539_s1 + $0x210] sm:$0xff]  }
  0x27   : > { %v705_v34 = vcombine.low %v697_v31, %v704_v27  ;;  %v689_v37 = vrot.slane %v682_v32, %v2287_v47  ;;  %v2082_v27 = vld [vmem:[%s2539_s1 + $0x190] sm:$0xff]   ;;  %v2086_v31 = vld [vmem:[%s2539_s1 + $0x218] sm:$0xff]  }
  0x28   : > { %v400_v7 = vrot.slane %v386_v0, %v2287_v47  ;;  %v401_v8 = vcombine.high %v393_v2, %v393_v2  ;;  %v1047_v0 = vshll.u32 %v1036_v56, 16  ;;  %v2085_v32 = vld [vmem:[%s2539_s1 + $0x198] sm:$0xff]  }
  0x29   : > { %v712_v39 = vrot.slane %v705_v34, %v2287_v47  ;;  %v2087_v34 = vld [vmem:[%s2539_s1 + $0x1e0] sm:$0xff]  }
  0x2a   : > { %581 = vmatprep.mubr.bf16.mxu0 %v400_v7  ;;  %1936 = vmatmul.mubr.bf16.vlgmr.msra.gmra.mrb[0].mxu1 %v401_v8  ;;  %v1049_v5 = vrot.slane %v1047_v0, 1 }
  0x2b   : > { %582 = vmatmul.mubr.bf16.vlgmr.msra.gmra.mrb[0].mxu0 %v393_v2  ;;  %1940 = vmatpush3.bf16.msra.mxu1 %v2053_v6  ;;  %v762_v41 = vcombine.low %v689_v37, %v712_v39  ;;  %v2075_v2 = vld [vmem:[%s2539_s1 + $0x1c0] sm:$0xff]   ;;  %v1052_v6 = vrot.slane %v1036_v56, 1  ;;  %v2090_v39 = vld [vmem:[%s2539_s1 + $0x1e8] sm:$0xff]   ;;  %v2105_v56 = vld [vmem:[%s2541_s3 + $0x30] sm:$0xff]  }
  0x2c   : > { %1849 = vmatpush3.bf16.msra.mxu0 %v2052_v3  ;;  %1941 = vmatprep.subr.bf16.mxu1 %v2131_v1  ;;  %v1042_v3 = vrot.slane %v1040_v59, 1  ;;  %v1050_v9 = vor.u32 %v1049_v5, %v1045_v63  ;;  %v2089_v37 = vld [vmem:[%s2539_s1 + $0x220] sm:$0xff]  }
  0x2d   : > { %1850 = vmatprep.subr.bf16.mxu0 %v2054_v11  ;;  %1955 = vmatprep.mubr.msk.bf16.mxu1 %vm2132_vm0, %v2131_v1  ;;  %v769_v44 = vrot.slane %v762_v41, %v2287_v47  ;;  %v2091_v41 = vld [vmem:[%s2539_s1 + $0x1a8] sm:$0xff]  }
  0x2e   : > { %v1043_v7 = vor.u32 %v1042_v3, %v1038_v58  ;;  %v1076_v14 = vcombine.low %v1731_v54, %v1050_v9  ;;  %v2103_v54 = vld [vmem:[%s2541_s3 + $0x20] sm:$0xff]  }
  0x2f   : > { %1942 = vmatpush3.bf16.msra.mxu1 %v2056_v12  ;;  %v770_v46 = vcombine.high %v769_v44, %v769_v44  ;;  %v777_v62 = vrot.slane %v769_v44, %v2287_v47  ;;  %v1067_v12 = vrot.slane %v1051_v4, %v2287_v47  ;;  %v2094_v44 = vld [vmem:[%s2539_s1 + $0x1b0] sm:$0xff]  }
  0x30   : > { %1851 = vmatpush3.bf16.msra.mxu0 %v2055_v15  ;;  %1943 = vmatprep.subr.bf16.mxu1 %v2131_v1  ;;  %v1053_v11 = vcombine.low %v1730_v53, %v1043_v7  ;;  %v1090_v15 = vrot.slane %v1052_v6, %v2287_v47  ;;  %v1083_v18 = vrot.slane %v1076_v14, %v2287_v47  ;;  %v2102_v53 = vld [vmem:[%s2541_s3 + $0x18] sm:$0xff]  }
  0x31   : > { %1852 = vmatprep.subr.bf16.mxu0 %v2057_v21  ;;  %v784_v50 = vrot.slane %v770_v46, %v2287_v47  ;;  %v785_v8 = vcombine.high %v777_v62, %v777_v62  ;;  %v2079_v21 = vld [vmem:[%s2539_s1 + $0x188] sm:$0xff]  }
  0x32   : > { %v1060_v17 = vrot.slane %v1053_v11, %v2287_v47  ;;  %v1091_v22 = vcombine.low %v1083_v18, %v1090_v15 }
  0x33   : > { %1944 = vmatpush3.bf16.msra.mxu1 %v2059_v25  ;;  %965 = vmatprep.mubr.bf16.mxu0 %v784_v50 }
  0x34   : > { %1853 = vmatpush3.bf16.msra.mxu0 %v2058_v28  ;;  %1945 = vmatprep.subr.bf16.mxu1 %v2131_v1  ;;  %v1068_v20 = vcombine.low %v1060_v17, %v1067_v12  ;;  %v1098_v25 = vrot.slane %v1091_v22, %v2287_v47 }
  0x35   : > { %1854 = vmatprep.subr.bf16.mxu0 %v2060_v30 }
  0x36   : > { %v1075_v24 = vrot.slane %v1068_v20, %v2287_v47 }
  0x37   : > { %1946 = vmatpush3.bf16.msra.mxu1 %v2062_v33 }
  0x38   : > { %1855 = vmatpush3.bf16.msra.mxu0 %v2061_v36  ;;  %1947 = vmatprep.subr.bf16.mxu1 %v2131_v1  ;;  %v1148_v28 = vcombine.low %v1075_v24, %v1098_v25 }
  0x39   : > { %1856 = vmatprep.subr.bf16.mxu0 %v2063_v38  ;;  %v2088_v38 = vld [vmem:[%s2539_s1 + $0x1a0] sm:$0xff]  }
  0x3a   : > { %v1155_v30 = vrot.slane %v1148_v28, %v2287_v47  ;;  %v1804_v28 = vld [vmem:[%s2540_s2] ss:$0 sm:$0xff] }
  0x3b   : > { %1948 = vmatpush3.bf16.msra.mxu1 %v2065_v40  ;;  %v2092_v40 = vld [vmem:[%s2539_s1 + $0x228] sm:$0xff]  }
  0x3c   : > { %1857 = vmatpush3.bf16.msra.mxu0 %v2064_v42  ;;  %1949 = vmatprep.subr.bf16.mxu1 %v2131_v1  ;;  %v1156_v33 = vcombine.high %v1155_v30, %v1155_v30  ;;  %v2093_v42 = vld [vmem:[%s2539_s1 + $0x1f0] sm:$0xff]   ;;  %v1163_v46 = vrot.slane %v1155_v30, %v2287_v47 }
  0x3d   : > { %1858 = vmatprep.subr.bf16.mxu0 %v2066_v43  ;;  %v2095_v43 = vld [vmem:[%s2539_s1 + $0x230] sm:$0xff]  }
  0x3e   : > { %v1170_v36 = vrot.slane %v1156_v33, %v2287_v47  ;;  %v1171_v50 = vcombine.high %v1163_v46, %v1163_v46  ;;  %v2099_v47 = vld [vmem:[%s2541_s3] sm:$0xff]  }
  0x3f   : > { %1950 = vmatpush3.bf16.msra.mxu1 %v2068_v45  ;;  %v2096_v45 = vld [vmem:[%s2539_s1 + $0x1f8] sm:$0xff]   ;;  %v1805_v33 = vld [vmem:[%s2542_s4] ss:$0 sm:$0xff] }
  0x40   : > { %1859 = vmatpush3.bf16.msra.mxu0 %v2067_v48  ;;  %1951 = vmatprep.subr.bf16.mxu1 %v2131_v1  ;;  %v2098_v48 = vld [vmem:[%s2539_s1 + $0x238] sm:$0xff]  }
  0x41   : > { %1860 = vmatprep.subr.bf16.mxu0 %v2069_v49  ;;  %v2097_v49 = vld [vmem:[%s2539_s1 + $0x1b8] sm:$0xff]  }
  0x43   : > { %1952 = vmatpush3.bf16.msra.mxu1 %v2071_v52  ;;  %v2101_v52 = vld [vmem:[%s2541_s3 + $0x10] sm:$0xff]  }
  0x44   : > { %1861 = vmatpush3.bf16.msra.mxu0 %v2070_v51  ;;  %1953 = vmatprep.subr.bf16.mxu1 %v2131_v1  ;;  %v2100_v51 = vld [vmem:[%s2541_s3 + $0x8] sm:$0xff]  }
  0x45   : > { %1862 = vmatprep.subr.bf16.mxu0 %v2072_v57  ;;  %v2106_v57 = vld [vmem:[%s2541_s3 + $0x38] sm:$0xff]  }
  0x47   : > { %1954 = vmatpush3.bf16.msra.mxu1 %v2074_v61 }
  0x48   : > { %1863 = vmatpush3.bf16.msra.mxu0 %v2073_v60  ;;  %1959 = vmatprep.subr.bf16.mxu1 %v2131_v1 }
  0x49   : > { %1879 = vmatprep.subr.bf16.mxu0 %v2075_v2 }
  0x4a   : > { %1956 = vmatmul.mubr.bf16.vlgmr.msra.gmra.mrb[4].mxu1 %v785_v8 }
  0x4b   : > { %966 = vmatmul.mubr.bf16.vlgmr.msra.gmra.mrb[4].mxu0 %v777_v62  ;;  %1960 = vmatpush3.bf16.msra.mxu1 %v2077_v10 }
  0x4c   : > { %1880 = vmatpush3.bf16.msra.mxu0 %v2076_v13  ;;  %1961 = vmatprep.subr.bf16.mxu1 %v2131_v1 }
  0x4d   : > { %1881 = vmatprep.subr.bf16.mxu0 %v2078_v16  ;;  %1975 = vmatprep.mubr.msk.bf16.mxu1 %vm2132_vm0, %v2131_v1 }
  0x4e   : > { %1351 = vmatprep.mubr.bf16.mxu0 %v1170_v36 }
  0x4f   : > { %1962 = vmatpush3.bf16.msra.mxu1 %v2080_v19 }
  0x50   : > { %1882 = vmatpush3.bf16.msra.mxu0 %v2079_v21  ;;  %1963 = vmatprep.subr.bf16.mxu1 %v2131_v1 }
  0x51   : > { %1883 = vmatprep.subr.bf16.mxu0 %v2081_v23 }
  0x53   : > { %1964 = vmatpush3.bf16.msra.mxu1 %v2083_v26 }
  0x54   : > { %1884 = vmatpush3.bf16.msra.mxu0 %v2082_v27  ;;  %1965 = vmatprep.subr.bf16.mxu1 %v2131_v1 }
  0x55   : > { %1885 = vmatprep.subr.bf16.mxu0 %v2084_v29 }
  0x57   : > { %1966 = vmatpush3.bf16.msra.mxu1 %v2086_v31 }
  0x58   : > { %1886 = vmatpush3.bf16.msra.mxu0 %v2085_v32  ;;  %1967 = vmatprep.subr.bf16.mxu1 %v2131_v1 }
  0x59   : > { %1887 = vmatprep.subr.bf16.mxu0 %v2087_v34 }
  0x5b   : > { %1968 = vmatpush3.bf16.msra.mxu1 %v2089_v37 }
  0x5c   : > { %1888 = vmatpush3.bf16.msra.mxu0 %v2088_v38  ;;  %1969 = vmatprep.subr.bf16.mxu1 %v2131_v1 }
  0x5d   : > { %1889 = vmatprep.subr.bf16.mxu0 %v2090_v39 }
  0x5f   : > { %1970 = vmatpush3.bf16.msra.mxu1 %v2092_v40 }
  0x60   : > { %1890 = vmatpush3.bf16.msra.mxu0 %v2091_v41  ;;  %1971 = vmatprep.subr.bf16.mxu1 %v2131_v1 }
  0x61   : > { %1891 = vmatprep.subr.bf16.mxu0 %v2093_v42 }
  0x63   : > { %1972 = vmatpush3.bf16.msra.mxu1 %v2095_v43 }
  0x64   : > { %1892 = vmatpush3.bf16.msra.mxu0 %v2094_v44  ;;  %1973 = vmatprep.subr.bf16.mxu1 %v2131_v1 }
  0x65   : > { %1893 = vmatprep.subr.bf16.mxu0 %v2096_v45 }
  0x67   : > { %1974 = vmatpush3.bf16.msra.mxu1 %v2098_v48 }
  0x68   : > { %1894 = vmatpush3.bf16.msra.mxu0 %v2097_v49 }
  0x69   : > { %1979 = vmatprep.subr.bf16.mxu0 %v2131_v1 }
  0x6a   : > { %1976 = vmatmul.mubr.bf16.vlgmr.msra.gmra.mrb[8].mxu1 %v1171_v50 }
  0x6b   : > { %1352 = vmatmul.mubr.bf16.vlgmr.msra.gmra.mrb[8].mxu0 %v1163_v46 }
  0x6c   : > { %1995 = vmatprep.mubr.msk.bf16.mxu0 %vm2132_vm0, %v2131_v1  ;;  %1980 = vmatpush3.bf16.msra.mxu0 %v2099_v47 }
  0x6d   : > { %1981 = vmatprep.subr.bf16.mxu0 %v2131_v1 }
  0x70   : > { %1982 = vmatpush3.bf16.msra.mxu0 %v2100_v51 }
  0x71   : > { %1983 = vmatprep.subr.bf16.mxu0 %v2131_v1 }
  0x74   : > { %1984 = vmatpush3.bf16.msra.mxu0 %v2101_v52 }
  0x75   : > { %1985 = vmatprep.subr.bf16.mxu0 %v2131_v1 }
  0x78   : > { %1986 = vmatpush3.bf16.msra.mxu0 %v2102_v53 }
  0x79   : > { %1987 = vmatprep.subr.bf16.mxu0 %v2131_v1 }
  0x7c   : > { %1988 = vmatpush3.bf16.msra.mxu0 %v2103_v54 }
  0x7d   : > { %1989 = vmatprep.subr.bf16.mxu0 %v2131_v1 }
  0x80   : > { %1990 = vmatpush3.bf16.msra.mxu0 %v2104_v55 }
  0x81   : > { %1991 = vmatprep.subr.bf16.mxu0 %v2131_v1 }
  0x84   : > { %1992 = vmatpush3.bf16.msra.mxu0 %v2105_v56 }
  0x85   : > { %1993 = vmatprep.subr.bf16.mxu0 %v2131_v1 }
  0x88   : > { %1994 = vmatpush3.bf16.msra.mxu0 %v2106_v57 }
  0xfd   : > { %v623_v58 = vpop.f32.mrb[0].mxu1 }
  0xfe   : > { %v1833_v59 = vpop.f32.mrb[0].mxu0  ;;  %v1937_v60 = vpop.f32.mrb[1].mxu1 }
  0xff   : > { %v1834_v61 = vpop.f32.mrb[1].mxu0  ;;  %v626_v62 = vpop.f32.mrb[2].mxu1 }
 0x100   : > { %v1835_v63 = vadd.f32 %v1834_v61, %v1833_v59  ;;  %v1836_v0 = vpop.f32.mrb[2].mxu0  ;;  %v1938_v2 = vpop.f32.mrb[3].mxu1 }
 0x101   : > { %v1837_v3 = vpop.f32.mrb[3].mxu0 }
 0x102   : > { %v624_v4 = vadd.f32 %v1835_v63, %v623_v58 }
 0x104   : > { %629 = vst [vmem:[#allocation2] sm:$0xf] %v624_v4 }
 0x10b   : > { %v1013_v14 = vld [vmem:[#allocation2] sm:$0xf] }
 0x11d   : > { %v1007_v5 = vpop.f32.mrb[4].mxu1 }
 0x11e   : > { %v1864_v6 = vpop.f32.mrb[4].mxu0  ;;  %v1957_v7 = vpop.f32.mrb[5].mxu1 }
 0x11f   : > { %v1865_v8 = vpop.f32.mrb[5].mxu0  ;;  %v1010_v9 = vpop.f32.mrb[6].mxu1 }
 0x120   : > { %v1866_v10 = vadd.f32 %v1865_v8, %v1864_v6  ;;  %v1867_v11 = vpop.f32.mrb[6].mxu0  ;;  %v1958_v1 = vpop.f32.mrb[7].mxu1 }
 0x121   : > { %v1868_v12 = vpop.f32.mrb[7].mxu0 }
 0x122   : > { %v1008_v13 = vadd.f32 %v1866_v10, %v1007_v5 }
 0x124   : > { %v1014_v15 = vadd.f32 %v1013_v14, %v1008_v13 }
 0x126   : > { %1015 = vst [vmem:[#allocation2] sm:$0xf] %v1014_v15 }
 0x12d   : > { %v1399_v26 = vld [vmem:[#allocation2] sm:$0xf] }
 0x13d   : > { %v1393_v16 = vpop.f32.mrb[8].mxu1 }
 0x13e   : > { %v1895_v17 = vpop.f32.mrb[8].mxu0  ;;  %v1977_v18 = vpop.f32.mrb[9].mxu1 }
 0x13f   : > { %v1896_v19 = vpop.f32.mrb[9].mxu0  ;;  %v1396_v20 = vpop.f32.mrb[10].mxu1 }
 0x140   : > { %v1897_v21 = vadd.f32 %v1896_v19, %v1895_v17  ;;  %v1898_v22 = vpop.f32.mrb[10].mxu0  ;;  %v1978_v23 = vpop.f32.mrb[11].mxu1 }
 0x141   : > { %v1899_v24 = vpop.f32.mrb[11].mxu0 }
 0x142   : > { %v1394_v25 = vadd.f32 %v1897_v21, %v1393_v16 }
 0x144   : > { %v1400_v27 = vadd.f32 %v1399_v26, %v1394_v25 }
 0x146   : > { %1401 = vst [vmem:[#allocation2] sm:$0xf] %v1400_v27 }
 0x14d   : > { %v1402_v29 = vld [vmem:[#allocation2] sm:$0xf] }
 0x14e   : > { %v1410_v30 = vadd.f32 %v1804_v28, %v1402_v29 }
 0x150   : > { %v1411_v31 = vmax.f32 %v1410_v30, 0.0 }
 0x152   : > { %v1412_v32 = vpack.c.bf16 %v1411_v31, %v1411_v31 }
 0x154   : > { %1996 = vmatmul.mubr.bf16.vlgmr.msra.gmra.mrb[12].mxu0 %v1412_v32 }
 0x227   : > { %v1518_v34 = vpop.f32.mrb[12].mxu0 }
 0x228   : > { %v1519_v36 = vadd.f32 %v1805_v33, %v1518_v34  ;;  %v1997_v37 = vpop.f32.mrb[13].mxu0 }
 0x229   : > { %v1521_v38 = vpop.f32.mrb[14].mxu0 }
 0x22a   : > { %v1531_v39 = vrot.slane %v1519_v36, %v2282_v35  ;;  %v1998_v40 = vpop.f32.mrb[15].mxu0 }
 0x22c   : > { %v1532_v41 = vcombine.high %v1531_v39, %v1531_v39  ;;  %v1535_v42 = vpack.c.bf16 %v1531_v39, %v1531_v39 }
 0x22e   : > { %v1536_v43 = vpack.c.bf16 %v1532_v41, %v1532_v41  ;;  %1537 = vst [vmem:[%s244_s27] sm:$0x1] %v1535_v42 }
 0x230   : > { %1538 = vst [vmem:[%s244_s27 + $0x1] sm:$0x1] %v1536_v43 }
 0x231 PF: > { %s15_s20 = sadd.s32 1, %s2129_s20   ;;  %s2544_s18 = smov %s2125_s19 }
 0x232   : > { %p12_p5 = scmp.ge.s32.totalorder %s15_s20, 4   ;;  %s2545_s19 = smov %s2547_s21 }
 0x234   :  { %14 = sbr.rel (!%p12_p5) target bundleno = 2 (0x2), region = 75 }

// kernel: deeplabv3_forward.13
= control target key start
LH: loop header
LB: loop body
LE: loop exit
PB: predicated region body
PF: predicated region fallthrough
CT: control target
= control target key end

     0   :  { %s1107_s12 = smov 0   ;;  %s1109_s13 = smov 0   ;;  %s1274_s0 = inlined_call_operand.vmem [shape: bf16[128,128], index: 0, kind: input, shape index: {}]   ;;  %s1275_s1 = inlined_call_operand.vmem [shape: bf16[128,384], index: 1, kind: input, shape index: {}]   ;;  %s1276_s2 = inlined_call_operand.vmem [shape: f32[1,384], index: 2, kind: input, shape index: {}]   ;;  %s1277_s3 = inlined_call_operand.vmem [shape: f32[128,384], index: 3, kind: output, shape index: {}]  }
   0x1   :  { %s1111_s14 = smov 0   ;;  %s1113_s15 = smov 0  }
   0x2   :  { %s1115_s16 = smov 0  }
   0x3 LB: > { %s28_s17 = sadd.s32 1, %s1081_s15  ;;  %s896_s18 = sadd.s32 4294967295, %s1085_s16   ;;  %s1085_s16 = sphi %s1115_s16, %s13_s16   ;;  %s1081_s15 = sphi %s1113_s15, %s1282_s15   ;;  %s1077_s14 = sphi %s1111_s14, %s1281_s14   ;;  %s1073_s13 = sphi %s1109_s13, %s1280_s13   ;;  %s1069_s12 = sphi %s1107_s12, %s1279_s12  }
   0x4   : > { %p30_p0 = scmp.ge.s32.totalorder %s28_s17, 3  ;;  %p76_p1 = scmp.ne.s32.totalorder %s1073_s13, %s1069_s12 }
   0x5   : > { %p77_p2 = scmp.eq.s32.totalorder %s1085_s16, 0  ;;  %p134_p4 = scmp.eq.s32.totalorder %s896_s18, 2 }
   0x6   : > { %s1284_s17 = smov (%p30_p0, %s28_s17), 0  ;;  %s69_s20 = sadd.s32 1, %s1073_s13 }
   0x7   : > { %p78_p3 = por %p77_p2, %p76_p1  ;;  %s65_s19 = ssub.s32 %s1081_s15, %s1284_s17 }
   0x8   : > { %p67_p5 = scmp.eq.s32.totalorder %s65_s19, 0  ;;  %p1142_p6 = por %p134_p4, %p76_p1 }
   0x9   : > { %p900_p7 = scmp.ge.s32.totalorder %s1085_s16, 3 }
   0xa   : > { %s1147_s22 = scalar_select %p67_p5, %s1073_s13, %s69_s20  }
   0xb   : > { %168 = sbr.rel (%p900_p7) target bundleno = 32 (0x20), region = 20 }
  0x12   : > { %171 = sbr.rel (!%p78_p3) target bundleno = 32 (0x20), region = 24  ;;  %s173_s23 = sand.u32 (%p78_p3), 1, %s1073_s13  }
  0x13   : > { %s902_s24 = sshll.u32 (%p78_p3), %s1081_s15, 2  ;;  %s901_s25 = sshll.u32 (%p78_p3), %s173_s23, 6 }
  0x14   : > { %s1155_s28 = scalar_lea.vmem (%p78_p3), %s1275_s1, %s902_s24  ;;  %s175_s29 = scalar_lea.vmem (%p78_p3), [#allocation3], %s901_s25 }
  0x15   : > { %v196_v0 = vld [vmem:[%s1155_s28] sm:$0xf] (%p78_p3)  ;;  %v198_v1 = vld [vmem:[%s1155_s28 + $0xc] sm:$0xf] (%p78_p3)  ;;  %v200_v2 = vld [vmem:[%s1155_s28 + $0x18] sm:$0xf] (%p78_p3) }
  0x16   : > { %197 = vst [vmem:[%s175_s29] sm:$0xf] (%p78_p3), %v196_v0  ;;  %199 = vst [vmem:[%s175_s29 + $0x4] sm:$0xf] (%p78_p3), %v198_v1  ;;  %v202_v3 = vld [vmem:[%s1155_s28 + $0x24] sm:$0xf] (%p78_p3) }
  0x17   : > { %v204_v4 = vld [vmem:[%s1155_s28 + $0x30] sm:$0xf] (%p78_p3)  ;;  %201 = vst [vmem:[%s175_s29 + $0x8] sm:$0xf] (%p78_p3), %v200_v2  ;;  %203 = vst [vmem:[%s175_s29 + $0xc] sm:$0xf] (%p78_p3), %v202_v3 }
  0x18   : > { %205 = vst [vmem:[%s175_s29 + $0x10] sm:$0xf] (%p78_p3), %v204_v4  ;;  %v206_v5 = vld [vmem:[%s1155_s28 + $0x3c] sm:$0xf] (%p78_p3)  ;;  %v208_v6 = vld [vmem:[%s1155_s28 + $0x48] sm:$0xf] (%p78_p3) }
  0x19   : > { %v210_v7 = vld [vmem:[%s1155_s28 + $0x54] sm:$0xf]  ;;  %207 = vst [vmem:[%s175_s29 + $0x14] sm:$0xf] %v206_v5  ;;  %209 = vst [vmem:[%s175_s29 + $0x18] sm:$0xf] %v208_v6 }
  0x1a   : > { %211 = vst [vmem:[%s175_s29 + $0x1c] sm:$0xf] %v210_v7  ;;  %v212_v8 = vld [vmem:[%s1155_s28 + $0x60] sm:$0xf]  ;;  %v214_v9 = vld [vmem:[%s1155_s28 + $0x6c] sm:$0xf] }
  0x1b   : > { %v216_v10 = vld [vmem:[%s1155_s28 + $0x78] sm:$0xf]  ;;  %213 = vst [vmem:[%s175_s29 + $0x20] sm:$0xf] %v212_v8  ;;  %215 = vst [vmem:[%s175_s29 + $0x24] sm:$0xf] %v214_v9 }
  0x1c   : > { %217 = vst [vmem:[%s175_s29 + $0x28] sm:$0xf] %v216_v10  ;;  %v218_v11 = vld [vmem:[%s1155_s28 + $0x84] sm:$0xf]  ;;  %v220_v12 = vld [vmem:[%s1155_s28 + $0x90] sm:$0xf] }
  0x1d   : > { %v222_v13 = vld [vmem:[%s1155_s28 + $0x9c] sm:$0xf]  ;;  %219 = vst [vmem:[%s175_s29 + $0x2c] sm:$0xf] %v218_v11  ;;  %221 = vst [vmem:[%s175_s29 + $0x30] sm:$0xf] %v220_v12 }
  0x1e   : > { %223 = vst [vmem:[%s175_s29 + $0x34] sm:$0xf] %v222_v13  ;;  %v224_v14 = vld [vmem:[%s1155_s28 + $0xa8] sm:$0xf]  ;;  %v226_v15 = vld [vmem:[%s1155_s28 + $0xb4] sm:$0xf] }
  0x1f   : > { %225 = vst [vmem:[%s175_s29 + $0x38] sm:$0xf] %v224_v14  ;;  %227 = vst [vmem:[%s175_s29 + $0x3c] sm:$0xf] %v226_v15 }
  0x20 PF: > { %p903_p8 = scmp.ge.s32.totalorder %s1085_s16, 1  ;;  %p287_p9 = scmp.lt.s32.totalorder %s1085_s16, 4 }
  0x22   : > { %p288_p10 = pnand %p903_p8, %p287_p9 }
  0x23   : > { %s294_s30 = sand.u32 (!%p288_p10), 1, %s1069_s12   ;;  %v1039_v16 = vld [vmem:[%s1274_s0] sm:$0xff] (!%p288_p10)   ;;  %v1041_v26 = vld [vmem:[%s1274_s0 + $0x8] sm:$0xff] (!%p288_p10)   ;;  %v1043_v28 = vld [vmem:[%s1274_s0 + $0x10] sm:$0xff] (!%p288_p10)   ;;  %p337_p11 = scmp.lt.s32.totalorder (!%p288_p10), %s1077_s14, 2 }
  0x24   : > { %291 = sbr.rel (%p288_p10) target bundleno = 306 (0x132), region = 69  ;;  %s904_s6 = sshll.u32 (!%p288_p10), %s294_s30, 6  ;;  %v1040_v17 = vld [vmem:[%s1274_s0 + $0x20] sm:$0xff] (!%p288_p10)   ;;  %959 = vmatprep.mubr.bf16.mxu0 (!%p288_p10), %v1039_v16  ;;  %v1042_v27 = vld [vmem:[%s1274_s0 + $0x28] sm:$0xff] (!%p288_p10)   ;;  %v1044_v29 = vld [vmem:[%s1274_s0 + $0x30] sm:$0xff] (!%p288_p10)  }
  0x25   : > { %s1184_s9 = scalar_lea.vmem (!%p288_p10), [#allocation3], %s904_s6  ;;  %967 = vmatprep.mubr.bf16.mxu1 (!%p288_p10), %v1040_v17  ;;  %v1045_v30 = vld [vmem:[%s1274_s0 + $0x18] sm:$0xff] (!%p288_p10)   ;;  %s905_s8 = sshll.u32 (!%p288_p10), %s294_s30, 7 }
  0x26   : > { %v1031_v18 = vld [vmem:[%s1184_s9] sm:$0xff] (!%p288_p10)   ;;  %v1032_v19 = vld [vmem:[%s1184_s9 + $0x8] sm:$0xff] (!%p288_p10)   ;;  %v1033_v20 = vld [vmem:[%s1184_s9 + $0x10] sm:$0xff] (!%p288_p10)  }
  0x27   : > { %943 = vmatprep.subr.bf16.mxu0 (!%p288_p10), %v1031_v18  ;;  %975 = vmatprep.subr.bf16.mxu1 (!%p288_p10), %v1031_v18  ;;  %v1034_v21 = vld [vmem:[%s1184_s9 + $0x18] sm:$0xff] (!%p288_p10)   ;;  %v1035_v22 = vld [vmem:[%s1184_s9 + $0x20] sm:$0xff] (!%p288_p10)   ;;  %v1036_v23 = vld [vmem:[%s1184_s9 + $0x28] sm:$0xff] (!%p288_p10)  }
  0x28   : > { %944 = vmatpush3.bf16.msra.mxu0 (!%p288_p10), %v1031_v18  ;;  %983 = vmatpush3.bf16.msra.mxu1 (!%p288_p10), %v1031_v18  ;;  %v1037_v24 = vld [vmem:[%s1184_s9 + $0x30] sm:$0xff] (!%p288_p10)   ;;  %v1038_v25 = vld [vmem:[%s1184_s9 + $0x38] sm:$0xff] (!%p288_p10)   ;;  %s1219_s9 = scalar_lea.vmem (!%p288_p10), [#allocation4], %s905_s8 }
  0x29   : > { %945 = vmatprep.subr.bf16.mxu0 (!%p288_p10), %v1032_v19  ;;  %976 = vmatprep.subr.bf16.mxu1 (!%p288_p10), %v1032_v19  ;;  %v1046_v31 = vld [vmem:[%s1274_s0 + $0x38] sm:$0xff] (!%p288_p10)  }
  0x2b   : > { %s338_s4 = scalar_select %p337_p11, %s1077_s14, 2 }
  0x2c   : > { %946 = vmatpush3.bf16.msra.mxu0 %v1032_v19  ;;  %984 = vmatpush3.bf16.msra.mxu1 %v1032_v19  ;;  %s924_s12 = sshll.u32 (%p1142_p6), %s1077_s14, 3 }
  0x2d   : > { %947 = vmatprep.subr.bf16.mxu0 %v1033_v20  ;;  %977 = vmatprep.subr.bf16.mxu1 %v1033_v20  ;;  %s339_s7 = scalar_lea.vmem %s1276_s2, %s338_s4  ;;  %s704_s11 = scalar_lea.vmem (%p1142_p6), %s1277_s3, %s924_s12 }
  0x2e   : > { %v922_v32 = vld [vmem:[%s339_s7] ss:$0 sm:$0xff] }
  0x30   : > { %948 = vmatpush3.bf16.msra.mxu0 %v1033_v20  ;;  %985 = vmatpush3.bf16.msra.mxu1 %v1033_v20 }
  0x31   : > { %949 = vmatprep.subr.bf16.mxu0 %v1034_v21  ;;  %978 = vmatprep.subr.bf16.mxu1 %v1034_v21 }
  0x34   : > { %950 = vmatpush3.bf16.msra.mxu0 %v1034_v21  ;;  %986 = vmatpush3.bf16.msra.mxu1 %v1034_v21 }
  0x35   : > { %951 = vmatprep.subr.bf16.mxu0 %v1035_v22  ;;  %979 = vmatprep.subr.bf16.mxu1 %v1035_v22 }
  0x38   : > { %952 = vmatpush3.bf16.msra.mxu0 %v1035_v22  ;;  %987 = vmatpush3.bf16.msra.mxu1 %v1035_v22 }
  0x39   : > { %953 = vmatprep.subr.bf16.mxu0 %v1036_v23  ;;  %980 = vmatprep.subr.bf16.mxu1 %v1036_v23 }
  0x3c   : > { %954 = vmatpush3.bf16.msra.mxu0 %v1036_v23  ;;  %988 = vmatpush3.bf16.msra.mxu1 %v1036_v23 }
  0x3d   : > { %955 = vmatprep.subr.bf16.mxu0 %v1037_v24  ;;  %981 = vmatprep.subr.bf16.mxu1 %v1037_v24 }
  0x40   : > { %956 = vmatpush3.bf16.msra.mxu0 %v1037_v24  ;;  %989 = vmatpush3.bf16.msra.mxu1 %v1037_v24 }
  0x41   : > { %957 = vmatprep.subr.bf16.mxu0 %v1038_v25  ;;  %982 = vmatprep.subr.bf16.mxu1 %v1038_v25 }
  0x44   : > { %958 = vmatpush3.bf16.msra.mxu0 %v1038_v25  ;;  %990 = vmatpush3.bf16.msra.mxu1 %v1038_v25 }
  0x47   : > { %960 = vmatmul.mubr.bf16.vlgmr.msra.gmra.mrb[0].mxu0 %v1041_v26  ;;  %968 = vmatmul.mubr.bf16.vlgmr.msra.gmra.mrb[0].mxu1 %v1042_v27 }
  0x48   : > { %963 = vmatprep.mubr.bf16.mxu0 %v1043_v28  ;;  %971 = vmatprep.mubr.bf16.mxu1 %v1044_v29 }
  0x4f   : > { %964 = vmatmul.mubr.bf16.gmra.mrb[4].mxu0 %v1045_v30  ;;  %972 = vmatmul.mubr.bf16.gmra.mrb[4].mxu1 %v1046_v31 }
 0x11a   : > { %v961_v33 = vpop.f32.mrb[0].mxu0  ;;  %v969_v34 = vpop.f32.mrb[0].mxu1 }
 0x11b   : > { %v663_v35 = vadd.f32 %v961_v33, %v922_v32  ;;  %v671_v36 = vadd.f32 %v969_v34, %v922_v32  ;;  %v540_v37 = vpop.f32.mrb[1].mxu0  ;;  %v572_v38 = vpop.f32.mrb[1].mxu1 }
 0x11c   : > { %v661_v39 = vadd.f32 %v922_v32, %v540_v37  ;;  %v669_v40 = vadd.f32 %v922_v32, %v572_v38  ;;  %v962_v41 = vpop.f32.mrb[2].mxu0  ;;  %v970_v42 = vpop.f32.mrb[2].mxu1 }
 0x11d   : > { %679 = vst [vmem:[%s1219_s9 + $0x10] sm:$0xff] %v663_v35  ;;  %687 = vst [vmem:[%s1219_s9 + $0x50] sm:$0xff] %v671_v36  ;;  %v664_v43 = vadd.f32 %v962_v41, %v922_v32  ;;  %v672_v44 = vadd.f32 %v970_v42, %v922_v32  ;;  %v543_v45 = vpop.f32.mrb[3].mxu0  ;;  %v575_v46 = vpop.f32.mrb[3].mxu1 }
 0x11e   : > { %677 = vst [vmem:[%s1219_s9] sm:$0xff] %v661_v39  ;;  %685 = vst [vmem:[%s1219_s9 + $0x40] sm:$0xff] %v669_v40  ;;  %v662_v47 = vadd.f32 %v922_v32, %v543_v45  ;;  %v670_v48 = vadd.f32 %v922_v32, %v575_v46 }
 0x11f   : > { %680 = vst [vmem:[%s1219_s9 + $0x18] sm:$0xff] %v664_v43  ;;  %688 = vst [vmem:[%s1219_s9 + $0x58] sm:$0xff] %v672_v44 }
 0x120   : > { %678 = vst [vmem:[%s1219_s9 + $0x8] sm:$0xff] %v662_v47  ;;  %686 = vst [vmem:[%s1219_s9 + $0x48] sm:$0xff] %v670_v48 }
 0x122   : > { %v965_v49 = vpop.f32.mrb[4].mxu0  ;;  %v973_v50 = vpop.f32.mrb[4].mxu1  ;;  %699 = sbr.rel (!%p1142_p6) target bundleno = 306 (0x132), region = 85 }
 0x123   : > { %v667_v51 = vadd.f32 %v965_v49, %v922_v32  ;;  %v675_v52 = vadd.f32 %v973_v50, %v922_v32  ;;  %v556_v53 = vpop.f32.mrb[5].mxu0  ;;  %v588_v54 = vpop.f32.mrb[5].mxu1 }
 0x124   : > { %v665_v55 = vadd.f32 %v922_v32, %v556_v53  ;;  %v673_v56 = vadd.f32 %v922_v32, %v588_v54  ;;  %v966_v57 = vpop.f32.mrb[6].mxu0  ;;  %v974_v58 = vpop.f32.mrb[6].mxu1  ;;  %v766_v3 = vld [vmem:[%s1219_s9 + $0x10] sm:$0xff] (%p1142_p6) }
 0x125   : > { %683 = vst [vmem:[%s1219_s9 + $0x30] sm:$0xff] %v667_v51  ;;  %691 = vst [vmem:[%s1219_s9 + $0x70] sm:$0xff] %v675_v52  ;;  %v668_v59 = vadd.f32 %v966_v57, %v922_v32  ;;  %v676_v60 = vadd.f32 %v974_v58, %v922_v32  ;;  %v559_v61 = vpop.f32.mrb[7].mxu0  ;;  %v591_v62 = vpop.f32.mrb[7].mxu1  ;;  %v762_v1 = vld [vmem:[%s1219_s9] sm:$0xff] (%p1142_p6)  ;;  %v782_v11 = vld [vmem:[%s1219_s9 + $0x50] sm:$0xff] (%p1142_p6) }
 0x126   : > { %681 = vst [vmem:[%s1219_s9 + $0x20] sm:$0xff] %v665_v55  ;;  %689 = vst [vmem:[%s1219_s9 + $0x60] sm:$0xff] %v673_v56  ;;  %v666_v63 = vadd.f32 %v922_v32, %v559_v61  ;;  %v674_v0 = vadd.f32 %v922_v32, %v591_v62  ;;  %v768_v4 = vld [vmem:[%s1219_s9 + $0x18] sm:$0xff] (%p1142_p6)  ;;  %v778_v9 = vld [vmem:[%s1219_s9 + $0x40] sm:$0xff] (%p1142_p6) }
 0x127   : > { %684 = vst [vmem:[%s1219_s9 + $0x38] sm:$0xff] %v668_v59  ;;  %692 = vst [vmem:[%s1219_s9 + $0x78] sm:$0xff] %v676_v60  ;;  %v764_v2 = vld [vmem:[%s1219_s9 + $0x8] sm:$0xff] (%p1142_p6)  ;;  %v784_v12 = vld [vmem:[%s1219_s9 + $0x58] sm:$0xff] (%p1142_p6) }
 0x128   : > { %682 = vst [vmem:[%s1219_s9 + $0x28] sm:$0xff] %v666_v63  ;;  %690 = vst [vmem:[%s1219_s9 + $0x68] sm:$0xff] %v674_v0  ;;  %v780_v10 = vld [vmem:[%s1219_s9 + $0x48] sm:$0xff] (%p1142_p6) }
 0x129   : > { %763 = vst [vmem:[%s704_s11] sm:$0xff] %v762_v1  ;;  %765 = vst [vmem:[%s704_s11 + $0x18] sm:$0xff] %v764_v2 }
 0x12a   : > { %767 = vst [vmem:[%s704_s11 + $0x30] sm:$0xff] %v766_v3  ;;  %769 = vst [vmem:[%s704_s11 + $0x48] sm:$0xff] %v768_v4 }
 0x12b   : > { %779 = vst [vmem:[%s704_s11 + $0xc0] sm:$0xff] %v778_v9  ;;  %781 = vst [vmem:[%s704_s11 + $0xd8] sm:$0xff] %v780_v10 }
 0x12c   : > { %v774_v7 = vld [vmem:[%s1219_s9 + $0x30] sm:$0xff]  ;;  %783 = vst [vmem:[%s704_s11 + $0xf0] sm:$0xff] %v782_v11  ;;  %785 = vst [vmem:[%s704_s11 + $0x108] sm:$0xff] %v784_v12 }
 0x12d   : > { %v770_v5 = vld [vmem:[%s1219_s9 + $0x20] sm:$0xff]  ;;  %775 = vst [vmem:[%s704_s11 + $0x90] sm:$0xff] %v774_v7  ;;  %v790_v15 = vld [vmem:[%s1219_s9 + $0x70] sm:$0xff] }
 0x12e   : > { %771 = vst [vmem:[%s704_s11 + $0x60] sm:$0xff] %v770_v5  ;;  %v776_v8 = vld [vmem:[%s1219_s9 + $0x38] sm:$0xff]  ;;  %v786_v13 = vld [vmem:[%s1219_s9 + $0x60] sm:$0xff]  ;;  %791 = vst [vmem:[%s704_s11 + $0x150] sm:$0xff] %v790_v15 }
 0x12f   : > { %v772_v6 = vld [vmem:[%s1219_s9 + $0x28] sm:$0xff]  ;;  %777 = vst [vmem:[%s704_s11 + $0xa8] sm:$0xff] %v776_v8  ;;  %787 = vst [vmem:[%s704_s11 + $0x120] sm:$0xff] %v786_v13  ;;  %v792_v16 = vld [vmem:[%s1219_s9 + $0x78] sm:$0xff] }
 0x130   : > { %773 = vst [vmem:[%s704_s11 + $0x78] sm:$0xff] %v772_v6  ;;  %v788_v14 = vld [vmem:[%s1219_s9 + $0x68] sm:$0xff]  ;;  %793 = vst [vmem:[%s704_s11 + $0x168] sm:$0xff] %v792_v16 }
 0x131   : > { %789 = vst [vmem:[%s704_s11 + $0x138] sm:$0xff] %v788_v14 }
 0x132 PF: > { %s13_s16 = sadd.s32 1, %s1085_s16   ;;  %s1279_s12 = smov %s1073_s13 }
 0x133   : > { %p10_p12 = scmp.ge.s32.totalorder %s13_s16, 5   ;;  %s1280_s13 = smov %s1147_s22 }
 0x134   : > { %s1281_s14 = smov %s1081_s15  ;;  %s1282_s15 = smov %s1284_s17 }
 0x135   :  { %12 = sbr.rel (!%p10_p12) target bundleno = 3 (0x3), region = 160 }

// kernel: deeplabv3_forward.10
= control target key start
LH: loop header
LB: loop body
LE: loop exit
PB: predicated region body
PF: predicated region fallthrough
CT: control target
= control target key end

     0   :  { %s6607_s24 = smov 0   ;;  %s6609_s25 = smov 0   ;;  %s7846_s0 = inlined_call_operand.vmem [shape: bf16[2,8,8,128], index: 0, kind: input, shape index: {}]   ;;  %s7847_s1 = inlined_call_operand.vmem [shape: bf16[128,128], index: 1, kind: input, shape index: {}]   ;;  %s7848_s2 = inlined_call_operand.vmem [shape: bf16[9,384,128], index: 2, kind: input, shape index: {}]   ;;  %s7849_s3 = inlined_call_operand.vmem [shape: bf16[128,128], index: 3, kind: input, shape index: {}]   ;;  %s7850_s4 = inlined_call_operand.vmem [shape: bf16[5,128,128], index: 4, kind: input, shape index: {}]   ;;  %s7851_s5 = inlined_call_operand.vmem [shape: f32[5,128], index: 5, kind: input, shape index: {}]   ;;  %s7852_s6 = inlined_call_operand.vmem [shape: f32[1,128], index: 6, kind: input, shape index: {}]   ;;  %s7853_s7 = inlined_call_operand.vmem [shape: bf16[2,2,2,128], index: 7, kind: output, shape index: {}]  }
   0x1   :  { %s6611_s26 = smov 0  }
   0x2 LB: > { %s29_s27 = sadd.s32 1, %s6557_s25  ;;  %p4779_p0 = scmp.ge.s32.totalorder %s6561_s26, 1  ;;  %s6561_s26 = sphi %s6611_s26, %s17_s26   ;;  %s6557_s25 = sphi %s6609_s25, %s7857_s25   ;;  %s6553_s24 = sphi %s6607_s24, %s7856_s24  }
   0x3   : > { %p31_p1 = scmp.ge.s32.totalorder %s29_s27, 2  ;;  %p251_p2 = scmp.lt.s32.totalorder %s6561_s26, 3 }
   0x5   : > { %s7859_s27 = smov (%p31_p1, %s29_s27), 0  ;;  %p252_p3 = pnand %p4779_p0, %p251_p2 }
   0x6   : > { %v6249_v0 = vld [vmem:[%s7847_s1] sm:$0xff] (!%p252_p3)   ;;  %v6563_v1 = vmov (!%p252_p3), 0.0   ;;  %v6250_v2 = vld [vmem:[%s7847_s1 + $0x8] sm:$0xff] (!%p252_p3)   ;;  %vm6564_vm0 = vmmov (!%p252_p3), 0   ;;  %p286_p4 = scmp.lt.s32.totalorder (!%p252_p3), %s6553_s24, 1  ;;  %v320_v3 = vlaneseq (!%p252_p3)  ;;  %v6251_v4 = vld [vmem:[%s7847_s1 + $0x10] sm:$0xff] (!%p252_p3)  }
   0x7   : > { %255 = sbr.rel (%p252_p3) target bundleno = 1494 (0x5d6), region = 48  ;;  %5901 = vmatprep.subr.bf16.mxu0 (!%p252_p3), %v6563_v1  ;;  %5921 = vmatprep.subr.bf16.mxu1 (!%p252_p3), %v6563_v1  ;;  %v6252_v6 = vld [vmem:[%s7847_s1 + $0x18] sm:$0xff] (!%p252_p3)   ;;  %v6565_v9 = vmov (!%p252_p3), 1966171168   ;;  %vm355_vm1 = vsmask.f32 (!%p252_p3), 256 }
   0x8   : > { %5902 = vmatpush3.bf16.msra.mxu0 (!%p252_p3), %v6249_v0  ;;  %5917 = vmatprep.mubr.msk.bf16.mxu0 (!%p252_p3), %vm6564_vm0, %v6563_v1  ;;  %v6650_v5 = vshrl.u32 (!%p252_p3), %v320_v3, 7  ;;  %v318_v10 = vunpack.c.l.s4 (!%p252_p3), %v6565_v9  ;;  %vm356_vm2 = vsmask.f32 (!%p252_p3), 1284  ;;  %vm358_vm3 = vsmask.f32 (!%p252_p3), 2312  ;;  %v6257_v15 = vld [vmem:[%s7850_s4] sm:$0xff] (!%p252_p3)  }
   0x9   : > { %5903 = vmatprep.subr.bf16.mxu0 (!%p252_p3), %v6563_v1  ;;  %5937 = vmatprep.mubr.msk.bf16.mxu1 (!%p252_p3), %vm6564_vm0, %v6563_v1  ;;  %vm360_vm4 = vsmask.f32 (!%p252_p3), 3340  ;;  %vm357_vm5 = vmor (!%p252_p3), %vm355_vm1, %vm356_vm2  ;;  %vm362_vm6 = vsmask.f32 (!%p252_p3), 4368  ;;  %vm364_vm8 = vsmask.f32 (!%p252_p3), 5396 }
   0xa   : > { %v319_v12 = vunpack.c.0.s8 (!%p252_p3), %v318_v10  ;;  %vm359_vm7 = vmor (!%p252_p3), %vm357_vm5, %vm358_vm3  ;;  %vm366_vm10 = vsmask.f32 (!%p252_p3), 6424  ;;  %v6253_v16 = vld [vmem:[%s7847_s1 + $0x20] sm:$0xff] (!%p252_p3)   ;;  %vm368_vm12 = vsmask.f32 (!%p252_p3), 7452  ;;  %5922 = vmatpush3.bf16.msra.mxu1 (!%p252_p3), %v6257_v15  ;;  %v6258_v21 = vld [vmem:[%s7850_s4 + $0x8] sm:$0xff] (!%p252_p3)  }
   0xb   : > { %vm361_vm9 = vmor (!%p252_p3), %vm359_vm7, %vm360_vm4  ;;  %v6254_v22 = vld [vmem:[%s7847_s1 + $0x28] sm:$0xff] (!%p252_p3)   ;;  %5923 = vmatprep.subr.bf16.mxu1 (!%p252_p3), %v6563_v1  ;;  %v6259_v30 = vld [vmem:[%s7850_s4 + $0x10] sm:$0xff] (!%p252_p3)   ;;  %vm4415_vm1 = vcmask (!%p252_p3), 1044483   ;;  %vm4422_vm2 = vcmask (!%p252_p3), 1041408  }
   0xc   : > { %5904 = vmatpush3.bf16.msra.mxu0 (!%p252_p3), %v6250_v2  ;;  %v6659_v14 = vsub.s32 (!%p252_p3), %v319_v12, %v6650_v5  ;;  %vm363_vm11 = vmor (!%p252_p3), %vm361_vm9, %vm362_vm6  ;;  %v6255_v31 = vld [vmem:[%s7847_s1 + $0x30] sm:$0xff] (!%p252_p3)   ;;  %v6260_v35 = vld [vmem:[%s7850_s4 + $0x18] sm:$0xff] (!%p252_p3)  }
   0xd   : > { %5905 = vmatprep.subr.bf16.mxu0 (!%p252_p3), %v6563_v1  ;;  %vm365_vm13 = vmor (!%p252_p3), %vm363_vm11, %vm364_vm8  ;;  %v6256_v36 = vld [vmem:[%s7847_s1 + $0x38] sm:$0xff] (!%p252_p3)   ;;  %v6261_v38 = vld [vmem:[%s7850_s4 + $0x20] sm:$0xff] (!%p252_p3)  }
   0xe   : > { %s7861_s24 = smov (!%p286_p4, %s6553_s24), 1  ;;  %vm367_vm14 = vmor %vm365_vm13, %vm366_vm10  ;;  %5924 = vmatpush3.bf16.msra.mxu1 %v6258_v21  ;;  %v6262_v40 = vld [vmem:[%s7850_s4 + $0x28] sm:$0xff]   ;;  %v6263_v41 = vld [vmem:[%s7850_s4 + $0x30] sm:$0xff]  }
   0xf   : > { %s5558_s11 = sshll.u32 %s7861_s24, 5  ;;  %vm6680_vm15 = vmor %vm367_vm14, %vm368_vm12  ;;  %5925 = vmatprep.subr.bf16.mxu1 %v6563_v1  ;;  %v6264_v42 = vld [vmem:[%s7848_s2 + $0x40] sm:$0xff]   ;;  %v6266_v44 = vld [vmem:[%s7850_s4 + $0x38] sm:$0xff]   ;;  %s4782_s21 = sshll.u32 %s7861_s24, 1 }
  0x10   : > { %s6648_s14 = scalar_lea.vmem %s7846_s0, %s5558_s11  ;;  %5906 = vmatpush3.bf16.msra.mxu0 %v6251_v4  ;;  %v6265_v43 = vld [vmem:[%s7848_s2] sm:$0xff]   ;;  %v6267_v45 = vld [vmem:[%s7848_s2 + $0x48] sm:$0xff]   ;;  %v6270_v47 = vld [vmem:[%s7848_s2 + $0x50] sm:$0xff]   ;;  %s298_s28 = scalar_lea.vmem %s7853_s7, %s4782_s21 }
  0x11   : > { %v4785_v7 = vld.sshfl [vmem:[%s6648_s14 + $0xc] sm:$0x12 pattern:$0x75316420]  ;;  %5907 = vmatprep.subr.bf16.mxu0 %v6563_v1  ;;  %v6271_v48 = vld [vmem:[%s7848_s2 + $0x10] sm:$0xff]   ;;  %v6273_v53 = vld [vmem:[%s7848_s2 + $0x58] sm:$0xff]  }
  0x12   : > { %v4786_v8 = vld.sshfl [vmem:[%s6648_s14 + $0x10] sm:$0x12 pattern:$0x75316420]  ;;  %v316_v11 = vcombine.high %v4785_v7, %v4785_v7  ;;  %v323_v17 = vrot.slane %v4785_v7, %v6659_v14  ;;  %5926 = vmatpush3.bf16.msra.mxu1 %v6259_v30  ;;  %v6268_v46 = vld [vmem:[%s7848_s2 + $0x8] sm:$0xff]   ;;  %v6274_v56 = vld [vmem:[%s7848_s2 + $0x18] sm:$0xff]  }
  0x13   : > { %v339_v13 = vcombine.high %v4786_v8, %v4786_v8  ;;  %v346_v19 = vrot.slane %v4786_v8, %v6659_v14  ;;  %5927 = vmatprep.subr.bf16.mxu1 %v6563_v1  ;;  %v4806_v49 = vld [vmem:[%s6648_s14 + $0x8] sm:$0xf]  ;;  %v4807_v50 = vld [vmem:[%s6648_s14 + $0xc] sm:$0xf]  ;;  %v6276_v61 = vld [vmem:[%s7848_s2 + $0x60] sm:$0xff]  }
  0x14   : > { %5908 = vmatpush3.bf16.msra.mxu0 %v6252_v6  ;;  %v330_v18 = vrot.slane %v316_v11, %v6659_v14  ;;  %v331_v23 = vcombine.high %v323_v17, %v323_v17  ;;  %v4808_v51 = vcombine.low %v4806_v49, %v4806_v49  ;;  %v4809_v52 = vcombine.low %v4807_v50, %v4807_v50  ;;  %v6277_v0 = vld [vmem:[%s7848_s2 + $0x20] sm:$0xff]   ;;  %v6279_v7 = vld [vmem:[%s7848_s2 + $0x68] sm:$0xff]   ;;  %v6285_v21 = vld [vmem:[%s7848_s2 + $0x78] sm:$0xff]  }
  0x15   : > { %5909 = vmatprep.subr.bf16.mxu0 %v6563_v1  ;;  %v353_v20 = vrot.slane %v339_v13, %v6659_v14  ;;  %v354_v24 = vcombine.high %v346_v19, %v346_v19  ;;  %v6280_v12 = vld [vmem:[%s7848_s2 + $0x28] sm:$0xff]   ;;  %v6283_v19 = vld [vmem:[%s7848_s2 + $0x30] sm:$0xff]  }
  0x16   : > { %v371_v25 = vshrl.u32 %v330_v18, 16  ;;  %v376_v28 = vshll.u32 %v331_v23, 16  ;;  %5928 = vmatpush3.bf16.msra.mxu1 %v6260_v35  ;;  %v634_v54 = vshll.u32 %v4808_v51, 16  ;;  %v641_v55 = vshll.u32 %v4809_v52, 16  ;;  %v6286_v23 = vld [vmem:[%s7848_s2 + $0x38] sm:$0xff]   ;;  %v6293_v30 = vld [vmem:[%s7848_s2 + $0x108] sm:$0xff]  }
  0x17   : > { %v380_v26 = vshrl.u32 %v353_v20, 16  ;;  %v385_v29 = vshll.u32 %v354_v24, 16  ;;  %5929 = vmatprep.subr.bf16.mxu1 %v6563_v1  ;;  %v632_v57 = vshrl.u32 %v4808_v51, 16  ;;  %v639_v59 = vshrl.u32 %v4809_v52, 16  ;;  %v4835_v35 = vld [vmem:[%s6648_s14 + $0x10] sm:$0xf] }
  0x18   : > { %5910 = vmatpush3.bf16.msra.mxu0 %v6253_v16  ;;  %v378_v32 = vsel %vm6680_vm15, %v371_v25, %v376_v28  ;;  %v636_v58 = vrot.slane %v634_v54, 1  ;;  %v643_v60 = vrot.slane %v641_v55, 1  ;;  %v645_v2 = vrot.slane %v4808_v51, 1  ;;  %v6282_v16 = vld [vmem:[%s7848_s2 + $0x70] sm:$0xff]   ;;  %v6305_v54 = vld [vmem:[%s7848_s2 + $0x128] sm:$0xff]  }
  0x19   : > { %5911 = vmatprep.subr.bf16.mxu0 %v6563_v1  ;;  %v387_v33 = vsel %vm6680_vm15, %v380_v26, %v385_v29  ;;  %v646_v3 = vrot.slane %v4809_v52, 1  ;;  %v6290_v26 = vld [vmem:[%s7848_s2 + $0x100] sm:$0xff]  }
  0x1a   : > { %v409_v34 = vcombine.low %v378_v32, %v387_v33  ;;  %5930 = vmatpush3.bf16.msra.mxu1 %v6261_v38  ;;  %v637_v62 = vor.u32 %v636_v58, %v632_v57  ;;  %v644_v63 = vor.u32 %v643_v60, %v639_v59  ;;  %v661_v9 = vrot.slane %v645_v2, %v6659_v14  ;;  %v6291_v29 = vld [vmem:[%s7848_s2 + $0xc0] sm:$0xff]   ;;  %v6296_v32 = vld [vmem:[%s7848_s2 + $0x110] sm:$0xff]   ;;  %v6299_v38 = vld [vmem:[%s7848_s2 + $0x118] sm:$0xff]  }
  0x1b   : > { %5931 = vmatprep.subr.bf16.mxu1 %v6563_v1  ;;  %v684_v11 = vrot.slane %v646_v3, %v6659_v14  ;;  %v6297_v33 = vld [vmem:[%s7848_s2 + $0xd0] sm:$0xff]   ;;  %v6306_v59 = vld [vmem:[%s7848_s2 + $0xe8] sm:$0xff]  }
  0x1c   : > { %5912 = vmatpush3.bf16.msra.mxu0 %v6254_v22  ;;  %v416_v37 = vrot.slane %v409_v34, %v6659_v14  ;;  %v647_v4 = vcombine.low %v4806_v49, %v637_v62  ;;  %v670_v6 = vcombine.low %v4807_v50, %v644_v63  ;;  %v4834_v34 = vld [vmem:[%s6648_s14 + $0xc] sm:$0xf]  ;;  %v6303_v49 = vld [vmem:[%s7848_s2 + $0xe0] sm:$0xff]   ;;  %v6308_v62 = vld [vmem:[%s7848_s2 + $0x130] sm:$0xff]  }
  0x1d   : > { %5913 = vmatprep.subr.bf16.mxu0 %v6563_v1  ;;  %v6309_v2 = vld [vmem:[%s7848_s2 + $0xf0] sm:$0xff]  }
  0x1e   : > { %v423_v39 = vrot.slane %v416_v37, %v6659_v14  ;;  %5932 = vmatpush3.bf16.msra.mxu1 %v6262_v40  ;;  %v654_v8 = vrot.slane %v647_v4, %v6659_v14  ;;  %v677_v10 = vrot.slane %v670_v6, %v6659_v14  ;;  %v4837_v37 = vcombine.low %v4835_v35, %v4835_v35  ;;  %v6311_v4 = vld [vmem:[%s7848_s2 + $0x138] sm:$0xff]  }
  0x1f   : > { %5933 = vmatprep.subr.bf16.mxu1 %v6563_v1 }
  0x20   : > { %5914 = vmatpush3.bf16.msra.mxu0 %v6255_v31  ;;  %v662_v13 = vcombine.high %v654_v8, %v661_v9  ;;  %v685_v15 = vcombine.high %v677_v10, %v684_v11  ;;  %v6294_v31 = vld [vmem:[%s7848_s2 + $0xc8] sm:$0xff]   ;;  %v1011_v40 = vshll.u32 %v4837_v37, 16  ;;  %v1016_v51 = vrot.slane %v4837_v37, 1  ;;  %v6316_v10 = vld [vmem:[%s7848_s2 + $0x1c0] sm:$0xff]  }
  0x21   : > { %5915 = vmatprep.subr.bf16.mxu0 %v6563_v1 }
  0x22   : > { %5934 = vmatpush3.bf16.msra.mxu1 %v6263_v41  ;;  %v669_v17 = vrot.slane %v662_v13, %v6659_v14  ;;  %v692_v18 = vrot.slane %v685_v15, %v6659_v14  ;;  %v6300_v41 = vld [vmem:[%s7848_s2 + $0xd8] sm:$0xff]   ;;  %v1054_v58 = vrot.slane %v1016_v51, %v6659_v14  ;;  %v6319_v13 = vld [vmem:[%s7848_s2 + $0x1c8] sm:$0xff]   ;;  %v6335_v51 = vld [vmem:[%s7848_s2 + $0x1b0] sm:$0xff]  }
  0x23   : > { %5935 = vmatprep.subr.bf16.mxu1 %v6563_v1  ;;  %v6320_v15 = vld [vmem:[%s7848_s2 + $0x188] sm:$0xff]  }
  0x24   : > { %5916 = vmatpush3.bf16.msra.mxu0 %v6256_v36  ;;  %v741_v20 = vcombine.low %v669_v17, %v692_v18  ;;  %v4836_v36 = vcombine.low %v4834_v34, %v4834_v34  ;;  %v4910_v17 = vld [vmem:[%s6648_s14 + $0x10] sm:$0xf]  ;;  %v4911_v18 = vld [vmem:[%s6648_s14 + $0x14] sm:$0xf] }
  0x25   : > { %5577 = vmatprep.subr.bf16.mxu0 %v6264_v42 }
  0x26   : > { %5936 = vmatpush3.bf16.msra.mxu1 %v6266_v44  ;;  %v748_v22 = vrot.slane %v741_v20, %v6659_v14  ;;  %v1002_v42 = vshrl.u32 %v4836_v36, 16  ;;  %v1009_v44 = vshrl.u32 %v4837_v37, 16  ;;  %v1015_v50 = vrot.slane %v4836_v36, 1 }
  0x27   : > { %5918 = vmatmul.mubr.bf16.vlgmr.msra.gmra.mrb[0].mxu0 %v423_v39  ;;  %5941 = vmatprep.subr.bf16.mxu1 %v6563_v1  ;;  %v1004_v39 = vshll.u32 %v4836_v36, 16  ;;  %v4912_v20 = vcombine.low %v4910_v17, %v4910_v17 }
  0x28   : > { %5578 = vmatpush3.bf16.msra.mxu0 %v6265_v43  ;;  %v749_v24 = vcombine.high %v748_v22, %v748_v22  ;;  %v6786_v28 = vrot.slane %v748_v22, %v6659_v14 }
  0x29   : > { %5579 = vmatprep.subr.bf16.mxu0 %v6267_v45  ;;  %v1006_v43 = vrot.slane %v1004_v39, 1  ;;  %v1013_v45 = vrot.slane %v1011_v40, 1  ;;  %v1380_v22 = vshll.u32 %v4912_v20, 16  ;;  %v1391_v36 = vrot.slane %v4912_v20, 1 }
  0x2a   : > { %v763_v25 = vrot.slane %v749_v24, %v6659_v14  ;;  %v6325_v24 = vld [vmem:[%s7848_s2 + $0x1d8] sm:$0xff]  }
  0x2c   : > { %5580 = vmatpush3.bf16.msra.mxu0 %v6268_v46  ;;  %944 = vmatprep.mubr.bf16.mxu0 %v763_v25  ;;  %v6302_v46 = vld [vmem:[%s7848_s2 + $0x120] sm:$0xff]   ;;  %v6326_v25 = vld [vmem:[%s7848_s2 + $0x198] sm:$0xff]  }
  0x2d   : > { %5581 = vmatprep.subr.bf16.mxu0 %v6270_v47  ;;  %v1007_v47 = vor.u32 %v1006_v43, %v1002_v42 }
  0x2f   : > { %v1017_v52 = vcombine.low %v4834_v34, %v1007_v47  ;;  %v6328_v34 = vld [vmem:[%s7848_s2 + $0x1e0] sm:$0xff]  }
  0x30   : > { %5582 = vmatpush3.bf16.msra.mxu0 %v6271_v48  ;;  %v1014_v48 = vor.u32 %v1013_v45, %v1009_v44  ;;  %v6331_v44 = vld [vmem:[%s7848_s2 + $0x1e8] sm:$0xff]  }
  0x31   : > { %5583 = vmatprep.subr.bf16.mxu0 %v6273_v53  ;;  %v1024_v55 = vrot.slane %v1017_v52, %v6659_v14  ;;  %v6332_v45 = vld [vmem:[%s7848_s2 + $0x1a8] sm:$0xff]  }
  0x32   : > { %v1040_v53 = vcombine.low %v4835_v35, %v1014_v48  ;;  %v6329_v35 = vld [vmem:[%s7848_s2 + $0x1a0] sm:$0xff]  }
  0x34   : > { %5584 = vmatpush3.bf16.msra.mxu0 %v6274_v56  ;;  %v1031_v56 = vrot.slane %v1015_v50, %v6659_v14  ;;  %v1047_v57 = vrot.slane %v1040_v53, %v6659_v14  ;;  %v6334_v50 = vld [vmem:[%s7848_s2 + $0x1f0] sm:$0xff]  }
  0x35   : > { %5585 = vmatprep.subr.bf16.mxu0 %v6276_v61 }
  0x36   : > { %v1032_v60 = vcombine.high %v1024_v55, %v1031_v56  ;;  %v1055_v61 = vcombine.high %v1047_v57, %v1054_v58  ;;  %v6338_v55 = vld [vmem:[%s7848_s2 + $0x1b8] sm:$0xff]  }
  0x38   : > { %5586 = vmatpush3.bf16.msra.mxu0 %v6277_v0  ;;  %v1039_v63 = vrot.slane %v1032_v60, %v6659_v14  ;;  %v1062_v0 = vrot.slane %v1055_v61, %v6659_v14 }
  0x39   : > { %5587 = vmatprep.subr.bf16.mxu0 %v6279_v7  ;;  %v6312_v7 = vld [vmem:[%s7848_s2 + $0xf8] sm:$0xff]  }
  0x3a   : > { %v1112_v3 = vcombine.low %v1039_v63, %v1062_v0 }
  0x3c   : > { %5588 = vmatpush3.bf16.msra.mxu0 %v6280_v12  ;;  %v1119_v6 = vrot.slane %v1112_v3, %v6659_v14  ;;  %v6317_v12 = vld [vmem:[%s7848_s2 + $0x180] sm:$0xff]  }
  0x3d   : > { %5589 = vmatprep.subr.bf16.mxu0 %v6282_v16  ;;  %v6322_v16 = vld [vmem:[%s7848_s2 + $0x1d0] sm:$0xff]   ;;  %v6269_v3 = vld [vmem:[%s7848_s2 + $0x80] sm:$0xff]  }
  0x3e   : > { %v1120_v8 = vcombine.high %v1119_v6, %v1119_v6  ;;  %v6848_v11 = vrot.slane %v1119_v6, %v6659_v14  ;;  %v6272_v6 = vld [vmem:[%s7848_s2 + $0x88] sm:$0xff]  }
  0x40   : > { %5590 = vmatpush3.bf16.msra.mxu0 %v6283_v19  ;;  %v1134_v9 = vrot.slane %v1120_v8, %v6659_v14  ;;  %v6323_v19 = vld [vmem:[%s7848_s2 + $0x190] sm:$0xff]   ;;  %v6278_v8 = vld [vmem:[%s7848_s2 + $0x98] sm:$0xff]  }
  0x41   : > { %5591 = vmatprep.subr.bf16.mxu0 %v6285_v21  ;;  %v4913_v21 = vcombine.low %v4911_v18, %v4911_v18 }
  0x43   : > { %v1392_v37 = vrot.slane %v4913_v21, 1 }
  0x44   : > { %5592 = vmatpush3.bf16.msra.mxu0 %v6286_v23  ;;  %v1387_v23 = vshll.u32 %v4913_v21, 16 }
  0x45   : > { %5608 = vmatprep.subr.bf16.mxu0 %v6290_v26  ;;  %v1378_v26 = vshrl.u32 %v4912_v20, 16  ;;  %v1430_v43 = vrot.slane %v1392_v37, %v6659_v14  ;;  %v6310_v20 = vld [vmem:[%s7848_s2 + $0x168] sm:$0xff]  }
  0x47   : > { %945 = vmatmul.mubr.bf16.vlgmr.msra.gmra.mrb[4].mxu0 %v6786_v28 }
  0x48   : > { %5609 = vmatpush3.bf16.msra.mxu0 %v6291_v29  ;;  %1315 = vmatprep.mubr.bf16.mxu0 %v1134_v9  ;;  %v1382_v29 = vrot.slane %v1380_v22, 1  ;;  %v6281_v9 = vld [vmem:[%s7848_s2 + $0xa0] sm:$0xff]   ;;  %v6318_v22 = vld [vmem:[%s7848_s2 + $0x178] sm:$0xff]  }
  0x49   : > { %5610 = vmatprep.subr.bf16.mxu0 %v6293_v30  ;;  %v1385_v30 = vshrl.u32 %v4913_v21, 16  ;;  %v6313_v21 = vld [vmem:[%s7848_s2 + $0x170] sm:$0xff]  }
  0x4c   : > { %5611 = vmatpush3.bf16.msra.mxu0 %v6294_v31  ;;  %v1389_v31 = vrot.slane %v1387_v23, 1  ;;  %v1135_v23 = vcombine.high %v6848_v11, %v6848_v11 }
  0x4d   : > { %5612 = vmatprep.subr.bf16.mxu0 %v6296_v32  ;;  %v1383_v32 = vor.u32 %v1382_v29, %v1378_v26  ;;  %v6330_v26 = vld [vmem:[%s7848_s2 + $0x218] sm:$0xff]   ;;  %v6333_v29 = vld [vmem:[%s7848_s2 + $0x220] sm:$0xff]  }
  0x50   : > { %5613 = vmatpush3.bf16.msra.mxu0 %v6297_v33  ;;  %v1390_v33 = vor.u32 %v1389_v31, %v1385_v30  ;;  %v6336_v30 = vld [vmem:[%s7848_s2 + $0x228] sm:$0xff]   ;;  %v6341_v31 = vld [vmem:[%s7848_s2 + $0x230] sm:$0xff]  }
  0x51   : > { %5614 = vmatprep.subr.bf16.mxu0 %v6299_v38  ;;  %v1393_v38 = vcombine.low %v4910_v17, %v1383_v32  ;;  %v6298_v17 = vld [vmem:[%s7848_s2 + $0x148] sm:$0xff]   ;;  %v6342_v32 = vld [vmem:[%s7848_s2 + $0x238] sm:$0xff]  }
  0x52   : > { %v1416_v39 = vcombine.low %v4911_v18, %v1390_v33  ;;  %v6304_v18 = vld [vmem:[%s7848_s2 + $0x158] sm:$0xff]  }
  0x53   : > { %v1400_v40 = vrot.slane %v1393_v38, %v6659_v14 }
  0x54   : > { %5615 = vmatpush3.bf16.msra.mxu0 %v6300_v41  ;;  %v1407_v41 = vrot.slane %v1391_v36, %v6659_v14  ;;  %v1423_v42 = vrot.slane %v1416_v39, %v6659_v14 }
  0x55   : > { %5616 = vmatprep.subr.bf16.mxu0 %v6302_v46 }
  0x56   : > { %v1408_v46 = vcombine.high %v1400_v40, %v1407_v41  ;;  %v1431_v47 = vcombine.high %v1423_v42, %v1430_v43 }
  0x58   : > { %5617 = vmatpush3.bf16.msra.mxu0 %v6303_v49  ;;  %v1415_v48 = vrot.slane %v1408_v46, %v6659_v14  ;;  %v1438_v49 = vrot.slane %v1431_v47, %v6659_v14  ;;  %v6345_v46 = vld [vmem:[%s7850_s4 + $0x50] sm:$0xff]   ;;  %v6346_v47 = vld [vmem:[%s7850_s4 + $0x58] sm:$0xff]  }
  0x59   : > { %5618 = vmatprep.subr.bf16.mxu0 %v6305_v54  ;;  %v6337_v54 = vld [vmem:[%s7848_s2 + $0x1f8] sm:$0xff]  }
  0x5a   : > { %v1488_v52 = vcombine.low %v1415_v48, %v1438_v49 }
  0x5c   : > { %5619 = vmatpush3.bf16.msra.mxu0 %v6306_v59  ;;  %v1495_v53 = vrot.slane %v1488_v52, %v6659_v14  ;;  %v4789_v59 = vld [vmem:[%s7851_s5] ss:$0 sm:$0xff] }
  0x5d   : > { %5620 = vmatprep.subr.bf16.mxu0 %v6308_v62 }
  0x5e   : > { %v1496_v56 = vcombine.high %v1495_v53, %v1495_v53  ;;  %v6907_v58 = vrot.slane %v1495_v53, %v6659_v14  ;;  %v6347_v53 = vld [vmem:[%s7850_s4 + $0x60] sm:$0xff]  }
  0x60   : > { %5621 = vmatpush3.bf16.msra.mxu0 %v6309_v2  ;;  %v1510_v57 = vrot.slane %v1496_v56, %v6659_v14  ;;  %v1511_v33 = vcombine.high %v6907_v58, %v6907_v58  ;;  %v6351_v56 = vld [vmem:[%s7848_s2 + $0x240] sm:$0xff]  }
  0x61   : > { %5622 = vmatprep.subr.bf16.mxu0 %v6311_v4 }
  0x64   : > { %5623 = vmatpush3.bf16.msra.mxu0 %v6312_v7  ;;  %v6275_v7 = vld [vmem:[%s7848_s2 + $0x90] sm:$0xff]  }
  0x65   : > { %5639 = vmatprep.subr.bf16.mxu0 %v6316_v10  ;;  %v6284_v10 = vld [vmem:[%s7848_s2 + $0xa8] sm:$0xff]  }
  0x67   : > { %1316 = vmatmul.mubr.bf16.vlgmr.msra.gmra.mrb[8].mxu0 %v6848_v11  ;;  %v6327_v11 = vld [vmem:[%s7848_s2 + $0x210] sm:$0xff]  }
  0x68   : > { %5640 = vmatpush3.bf16.msra.mxu0 %v6317_v12  ;;  %1691 = vmatprep.mubr.bf16.mxu0 %v1510_v57  ;;  %v6287_v12 = vld [vmem:[%s7848_s2 + $0xb0] sm:$0xff]   ;;  %v6353_v57 = vld [vmem:[%s7848_s2 + $0x288] sm:$0xff]  }
  0x69   : > { %5641 = vmatprep.subr.bf16.mxu0 %v6319_v13  ;;  %v6292_v13 = vld [vmem:[%s7848_s2 + $0xb8] sm:$0xff]  }
  0x6c   : > { %5642 = vmatpush3.bf16.msra.mxu0 %v6320_v15  ;;  %v764_v15 = vcombine.high %v6786_v28, %v6786_v28  ;;  %v6301_v28 = vld [vmem:[%s7848_s2 + $0x150] sm:$0xff]  }
  0x6d   : > { %5643 = vmatprep.subr.bf16.mxu0 %v6322_v16  ;;  %v6295_v16 = vld [vmem:[%s7848_s2 + $0x140] sm:$0xff]  }
  0x70   : > { %5644 = vmatpush3.bf16.msra.mxu0 %v6323_v19  ;;  %v6307_v19 = vld [vmem:[%s7848_s2 + $0x160] sm:$0xff]  }
  0x71   : > { %5645 = vmatprep.subr.bf16.mxu0 %v6325_v24  ;;  %v6321_v24 = vld [vmem:[%s7848_s2 + $0x200] sm:$0xff]  }
  0x74   : > { %5646 = vmatpush3.bf16.msra.mxu0 %v6326_v25  ;;  %v6324_v25 = vld [vmem:[%s7848_s2 + $0x208] sm:$0xff]  }
  0x75   : > { %5647 = vmatprep.subr.bf16.mxu0 %v6328_v34 }
  0x78   : > { %5648 = vmatpush3.bf16.msra.mxu0 %v6329_v35 }
  0x79   : > { %5649 = vmatprep.subr.bf16.mxu0 %v6331_v44  ;;  %v6343_v44 = vld [vmem:[%s7850_s4 + $0x40] sm:$0xff]  }
  0x7c   : > { %5650 = vmatpush3.bf16.msra.mxu0 %v6332_v45  ;;  %v6344_v45 = vld [vmem:[%s7850_s4 + $0x48] sm:$0xff]  }
  0x7d   : > { %5651 = vmatprep.subr.bf16.mxu0 %v6334_v50 }
  0x80   : > { %5652 = vmatpush3.bf16.msra.mxu0 %v6335_v51 }
  0x81   : > { %5653 = vmatprep.subr.bf16.mxu0 %v6337_v54  ;;  %v6348_v54 = vld [vmem:[%s7850_s4 + $0x68] sm:$0xff]  }
  0x84   : > { %5654 = vmatpush3.bf16.msra.mxu0 %v6338_v55  ;;  %v6350_v55 = vld [vmem:[%s7848_s2 + $0x280] sm:$0xff]  }
  0x85   : > { %6001 = vmatprep.subr.bf16.mxu0 %v6563_v1 }
  0x87   : > { %1692 = vmatmul.mubr.bf16.vlgmr.msra.gmra.mrb[12].mxu0 %v6907_v58  ;;  %v6349_v58 = vld [vmem:[%s7850_s4 + $0x70] sm:$0xff]  }
  0x88   : > { %6017 = vmatprep.mubr.msk.bf16.mxu0 %vm6564_vm0, %v6563_v1  ;;  %6002 = vmatpush3.bf16.msra.mxu0 %v6343_v44 }
  0x89   : > { %6003 = vmatprep.subr.bf16.mxu0 %v6563_v1 }
  0x8c   : > { %6004 = vmatpush3.bf16.msra.mxu0 %v6344_v45 }
  0x8d   : > { %6005 = vmatprep.subr.bf16.mxu0 %v6563_v1 }
  0x90   : > { %6006 = vmatpush3.bf16.msra.mxu0 %v6345_v46  ;;  %v6371_v46 = vld [vmem:[%s7848_s2 + $0x2b8] sm:$0xff]  }
  0x91   : > { %6007 = vmatprep.subr.bf16.mxu0 %v6563_v1 }
  0x94   : > { %6008 = vmatpush3.bf16.msra.mxu0 %v6346_v47 }
  0x95   : > { %6009 = vmatprep.subr.bf16.mxu0 %v6563_v1 }
  0x98   : > { %6010 = vmatpush3.bf16.msra.mxu0 %v6347_v53 }
  0x99   : > { %6011 = vmatprep.subr.bf16.mxu0 %v6563_v1 }
  0x9c   : > { %6012 = vmatpush3.bf16.msra.mxu0 %v6348_v54  ;;  %v6377_v54 = vld [vmem:[%s7848_s2 + $0x300] sm:$0xff]  }
  0x9d   : > { %6013 = vmatprep.subr.bf16.mxu0 %v6563_v1 }
  0xa0   : > { %6014 = vmatpush3.bf16.msra.mxu0 %v6349_v58  ;;  %v6383_v58 = vld [vmem:[%s7848_s2 + $0x310] sm:$0xff]  }
  0xa1   : > { %6015 = vmatprep.subr.bf16.mxu0 %v6563_v1 }
  0xfa   : > { %v507_v60 = vpop.f32.mrb[0].mxu0 }
  0xfb   : > { %v508_v61 = vadd.f32 %v4789_v59, %v507_v60  ;;  %v5919_v62 = vpop.f32.mrb[1].mxu0  ;;  %v6354_v59 = vld [vmem:[%s7848_s2 + $0x248] sm:$0xff]   ;;  %v6352_v60 = vld [vmem:[%s7850_s4 + $0x78] sm:$0xff]  }
  0xfc   : > { %v510_v63 = vpop.f32.mrb[2].mxu0  ;;  %6016 = vmatpush3.bf16.msra.mxu0 %v6352_v60  ;;  %v6357_v62 = vld [vmem:[%s7848_s2 + $0x250] sm:$0xff]  }
  0xfd   : > { %v513_v0 = vmax.f32 %v508_v61, 0.0  ;;  %v5920_v2 = vpop.f32.mrb[3].mxu0  ;;  %6021 = vmatprep.subr.bf16.mxu0 %v6563_v1  ;;  %v6356_v61 = vld [vmem:[%s7848_s2 + $0x290] sm:$0xff]   ;;  %v5011_v63 = vld [vmem:[%s6648_s14 + $0x4] sm:$0xf] }
  0xfe   : > { %v5013_v2 = vcombine.low %v5011_v63, %v5011_v63  ;;  %v5090_v60 = vld [vmem:[%s6648_s14 + $0x10] sm:$0xf] }
  0xff   : > { %v514_v4 = vpack.c.bf16 %v513_v0, %v513_v0  ;;  %v5012_v0 = vld [vmem:[%s6648_s14 + $0x8] sm:$0xf] }
 0x101   : > { %5938 = vmatmul.mubr.bf16.vlgmr.msra.gmra.mrb[0].mxu1 %v514_v4  ;;  %v6359_v4 = vld [vmem:[%s7848_s2 + $0x298] sm:$0xff]  }
 0x102   : > { %5942 = vmatpush3.bf16.msra.mxu1 %v6269_v3  ;;  %5957 = vmatprep.mubr.msk.bf16.mxu1 %vm6564_vm0, %v6563_v1  ;;  %v5014_v3 = vcombine.low %v5012_v0, %v5012_v0 }
 0x103   : > { %5943 = vmatprep.subr.bf16.mxu1 %v6563_v1 }
 0x106   : > { %5944 = vmatpush3.bf16.msra.mxu1 %v6272_v6  ;;  %v6360_v6 = vld [vmem:[%s7848_s2 + $0x258] sm:$0xff]  }
 0x107   : > { %5945 = vmatprep.subr.bf16.mxu1 %v6563_v1 }
 0x10a   : > { %5946 = vmatpush3.bf16.msra.mxu1 %v6275_v7  ;;  %v1870_v7 = vrot.slane %v5013_v2, 1 }
 0x10b   : > { %5947 = vmatprep.subr.bf16.mxu1 %v6563_v1 }
 0x10e   : > { %5948 = vmatpush3.bf16.msra.mxu1 %v6278_v8  ;;  %v1871_v8 = vrot.slane %v5014_v3, 1 }
 0x10f   : > { %5949 = vmatprep.subr.bf16.mxu1 %v6563_v1 }
 0x112   : > { %5950 = vmatpush3.bf16.msra.mxu1 %v6281_v9  ;;  %v1872_v9 = vrot.slane %v5013_v2, 2 }
 0x113   : > { %5951 = vmatprep.subr.bf16.mxu1 %v6563_v1 }
 0x116   : > { %5952 = vmatpush3.bf16.msra.mxu1 %v6284_v10  ;;  %v1873_v10 = vrot.slane %v5014_v3, 2 }
 0x117   : > { %5953 = vmatprep.subr.bf16.mxu1 %v6563_v1 }
 0x11a   : > { %5954 = vmatpush3.bf16.msra.mxu1 %v6287_v12  ;;  %v5593_v34 = vpop.f32.mrb[4].mxu0  ;;  %v1874_v12 = vcombine.low %v5011_v63, %v1870_v7  ;;  %v6385_v63 = vld [vmem:[%s7848_s2 + $0x358] sm:$0xff]  }
 0x11b   : > { %5955 = vmatprep.subr.bf16.mxu1 %v6563_v1  ;;  %v5594_v35 = vpop.f32.mrb[5].mxu0 }
 0x11c   : > { %v7023_v36 = vadd.f32 %v5594_v35, %v5593_v34  ;;  %v5596_v37 = vpop.f32.mrb[6].mxu0 }
 0x11d   : > { %v5597_v38 = vpop.f32.mrb[7].mxu0 }
 0x11e   : > { %5956 = vmatpush3.bf16.msra.mxu1 %v6292_v13  ;;  %v1905_v13 = vcombine.low %v5012_v0, %v1871_v8  ;;  %v6386_v0 = vld [vmem:[%s7848_s2 + $0x318] sm:$0xff]  }
 0x11f   : > { %5961 = vmatprep.subr.bf16.mxu1 %v6563_v1 }
 0x121   : > { %5958 = vmatmul.mubr.bf16.vlgmr.msra.gmra.mrb[4].mxu1 %v764_v15  ;;  %v6362_v15 = vld [vmem:[%s7848_s2 + $0x2a0] sm:$0xff]  }
 0x122   : > { %5962 = vmatpush3.bf16.msra.mxu1 %v6295_v16  ;;  %5977 = vmatprep.mubr.msk.bf16.mxu1 %vm6564_vm0, %v6563_v1  ;;  %v6363_v16 = vld [vmem:[%s7848_s2 + $0x260] sm:$0xff]  }
 0x123   : > { %5963 = vmatprep.subr.bf16.mxu1 %v6563_v1 }
 0x126   : > { %5964 = vmatpush3.bf16.msra.mxu1 %v6298_v17  ;;  %v1881_v17 = vrot.slane %v1874_v12, %v6659_v14 }
 0x127   : > { %5965 = vmatprep.subr.bf16.mxu1 %v6563_v1 }
 0x12a   : > { %5966 = vmatpush3.bf16.msra.mxu1 %v6301_v28  ;;  %v1888_v28 = vrot.slane %v1872_v9, %v6659_v14  ;;  %v6388_v9 = vld [vmem:[%s7848_s2 + $0x360] sm:$0xff]  }
 0x12b   : > { %5967 = vmatprep.subr.bf16.mxu1 %v6563_v1 }
 0x12e   : > { %5968 = vmatpush3.bf16.msra.mxu1 %v6304_v18  ;;  %v1912_v18 = vrot.slane %v1905_v13, %v6659_v14 }
 0x12f   : > { %5969 = vmatprep.subr.bf16.mxu1 %v6563_v1 }
 0x132   : > { %5970 = vmatpush3.bf16.msra.mxu1 %v6307_v19  ;;  %v1919_v19 = vrot.slane %v1873_v10, %v6659_v14  ;;  %v6389_v10 = vld [vmem:[%s7848_s2 + $0x320] sm:$0xff]  }
 0x133   : > { %5971 = vmatprep.subr.bf16.mxu1 %v6563_v1 }
 0x136   : > { %5972 = vmatpush3.bf16.msra.mxu1 %v6310_v20  ;;  %v1889_v20 = vcombine.low %v1881_v17, %v1888_v28 }
 0x137   : > { %5973 = vmatprep.subr.bf16.mxu1 %v6563_v1 }
 0x13a   : > { %5974 = vmatpush3.bf16.msra.mxu1 %v6313_v21  ;;  %v5624_v39 = vpop.f32.mrb[8].mxu0  ;;  %v1890_v21 = vcombine.high %v1881_v17, %v1888_v28 }
 0x13b   : > { %5975 = vmatprep.subr.bf16.mxu1 %v6563_v1  ;;  %v5625_v40 = vpop.f32.mrb[9].mxu0 }
 0x13c   : > { %v7025_v41 = vadd.f32 %v5625_v40, %v5624_v39  ;;  %v5627_v42 = vpop.f32.mrb[10].mxu0  ;;  %v6368_v40 = vld [vmem:[%s7848_s2 + $0x2b0] sm:$0xff]  }
 0x13d   : > { %v5628_v43 = vpop.f32.mrb[11].mxu0  ;;  %v6369_v42 = vld [vmem:[%s7848_s2 + $0x270] sm:$0xff]  }
 0x13e   : > { %5976 = vmatpush3.bf16.msra.mxu1 %v6318_v22  ;;  %v1920_v22 = vcombine.low %v1912_v18, %v1919_v19 }
 0x13f   : > { %5981 = vmatprep.subr.bf16.mxu1 %v6563_v1 }
 0x141   : > { %5978 = vmatmul.mubr.bf16.vlgmr.msra.gmra.mrb[8].mxu1 %v1135_v23  ;;  %v1921_v23 = vcombine.high %v1912_v18, %v1919_v19 }
 0x142   : > { %5982 = vmatpush3.bf16.msra.mxu1 %v6321_v24  ;;  %5997 = vmatprep.mubr.msk.bf16.mxu1 %vm6564_vm0, %v6563_v1  ;;  %v6365_v24 = vld [vmem:[%s7848_s2 + $0x2a8] sm:$0xff]  }
 0x143   : > { %5983 = vmatprep.subr.bf16.mxu1 %v6563_v1 }
 0x146   : > { %5984 = vmatpush3.bf16.msra.mxu1 %v6324_v25 }
 0x147   : > { %5985 = vmatprep.subr.bf16.mxu1 %v6563_v1 }
 0x14a   : > { %5986 = vmatpush3.bf16.msra.mxu1 %v6327_v11  ;;  %v6366_v11 = vld [vmem:[%s7848_s2 + $0x268] sm:$0xff]  }
 0x14b   : > { %5987 = vmatprep.subr.bf16.mxu1 %v6563_v1 }
 0x14e   : > { %5988 = vmatpush3.bf16.msra.mxu1 %v6330_v26  ;;  %v1897_v26 = vrot.slane %v1889_v20, %v6659_v14  ;;  %v6391_v20 = vld [vmem:[%s7848_s2 + $0x368] sm:$0xff]  }
 0x14f   : > { %5989 = vmatprep.subr.bf16.mxu1 %v6563_v1 }
 0x150   : > { %v1937_v34 = vshrl.u32 %v1897_v26, 16 }
 0x152   : > { %5990 = vmatpush3.bf16.msra.mxu1 %v6333_v29  ;;  %v1904_v29 = vrot.slane %v1890_v21, %v6659_v14 }
 0x153   : > { %5991 = vmatprep.subr.bf16.mxu1 %v6563_v1 }
 0x154   : > { %v1942_v35 = vshll.u32 %v1904_v29, 16 }
 0x156   : > { %5992 = vmatpush3.bf16.msra.mxu1 %v6336_v30  ;;  %v1928_v30 = vrot.slane %v1920_v22, %v6659_v14  ;;  %v1944_v43 = vsel %vm6680_vm15, %v1937_v34, %v1942_v35  ;;  %v6392_v22 = vld [vmem:[%s7848_s2 + $0x328] sm:$0xff]  }
 0x157   : > { %5993 = vmatprep.subr.bf16.mxu1 %v6563_v1 }
 0x158   : > { %v1946_v37 = vshrl.u32 %v1928_v30, 16 }
 0x15a   : > { %5994 = vmatpush3.bf16.msra.mxu1 %v6341_v31  ;;  %v5655_v48 = vpop.f32.mrb[12].mxu0  ;;  %v1935_v31 = vrot.slane %v1921_v23, %v6659_v14 }
 0x15b   : > { %5995 = vmatprep.subr.bf16.mxu1 %v6563_v1  ;;  %v5656_v49 = vpop.f32.mrb[13].mxu0 }
 0x15c   : > { %v7043_v50 = vadd.f32 %v5656_v49, %v5655_v48  ;;  %v5658_v51 = vpop.f32.mrb[14].mxu0  ;;  %v1951_v38 = vshll.u32 %v1935_v31, 16  ;;  %v6372_v48 = vld [vmem:[%s7848_s2 + $0x278] sm:$0xff]  }
 0x15d   : > { %v5659_v52 = vpop.f32.mrb[15].mxu0 }
 0x15e   : > { %5996 = vmatpush3.bf16.msra.mxu1 %v6342_v32  ;;  %v1953_v44 = vsel %vm6680_vm15, %v1946_v37, %v1951_v38  ;;  %v6376_v52 = vld [vmem:[%s7848_s2 + $0x340] sm:$0xff]   ;;  %v6394_v37 = vld [vmem:[%s7848_s2 + $0x370] sm:$0xff]  }
 0x15f   : > { %5679 = vmatprep.subr.bf16.mxu1 %v6350_v55  ;;  %v2003_v45 = vcombine.low %v1944_v43, %v1953_v44  ;;  %v6379_v55 = vld [vmem:[%s7848_s2 + $0x348] sm:$0xff]   ;;  %v6395_v38 = vld [vmem:[%s7848_s2 + $0x330] sm:$0xff]   ;;  %v6398_v44 = vld [vmem:[%s7848_s2 + $0x338] sm:$0xff]  }
 0x161   : > { %5998 = vmatmul.mubr.bf16.vlgmr.msra.gmra.mrb[12].mxu1 %v1511_v33  ;;  %v2010_v47 = vrot.slane %v2003_v45, %v6659_v14 }
 0x162   : > { %5680 = vmatpush3.bf16.msra.mxu1 %v6351_v56  ;;  %v6380_v56 = vld [vmem:[%s7848_s2 + $0x308] sm:$0xff]  }
 0x163   : > { %5681 = vmatprep.subr.bf16.mxu1 %v6353_v57  ;;  %v2011_v49 = vcombine.high %v2010_v47, %v2010_v47  ;;  %v7129_v53 = vrot.slane %v2010_v47, %v6659_v14  ;;  %v6382_v57 = vld [vmem:[%s7848_s2 + $0x350] sm:$0xff]   ;;  %v6402_v47 = vld [vmem:[%s7848_s2 + $0x400] sm:$0xff]  }
 0x165   : > { %v2025_v51 = vrot.slane %v2011_v49, %v6659_v14  ;;  %v6403_v49 = vld [vmem:[%s7848_s2 + $0x3c0] sm:$0xff]  }
 0x166   : > { %5682 = vmatpush3.bf16.msra.mxu1 %v6354_v59  ;;  %v5089_v59 = vld [vmem:[%s6648_s14 + $0xc] sm:$0xf] }
 0x167   : > { %5683 = vmatprep.subr.bf16.mxu1 %v6356_v61  ;;  %2206 = vmatprep.mubr.bf16.mxu1 %v2025_v51  ;;  %v5091_v61 = vcombine.low %v5089_v59, %v5089_v59  ;;  %v6405_v51 = vld [vmem:[%s7848_s2 + $0x408] sm:$0xff]  }
 0x169   : > { %v2263_v2 = vrot.slane %v5091_v61, 1 }
 0x16a   : > { %5684 = vmatpush3.bf16.msra.mxu1 %v6357_v62  ;;  %v5092_v62 = vcombine.low %v5090_v60, %v5090_v60 }
 0x16b   : > { %5685 = vmatprep.subr.bf16.mxu1 %v6359_v4  ;;  %v2265_v4 = vrot.slane %v5091_v61, 2  ;;  %v2267_v7 = vcombine.low %v5089_v59, %v2263_v2 }
 0x16c   : > { %v2264_v3 = vrot.slane %v5092_v62, 1 }
 0x16d   : > { %v2274_v12 = vrot.slane %v2267_v7, %v6659_v14  ;;  %v2281_v13 = vrot.slane %v2265_v4, %v6659_v14 }
 0x16e   : > { %5686 = vmatpush3.bf16.msra.mxu1 %v6360_v6  ;;  %v2266_v6 = vrot.slane %v5092_v62, 2  ;;  %v2298_v8 = vcombine.low %v5090_v60, %v2264_v3  ;;  %v6411_v60 = vld [vmem:[%s7848_s2 + $0x418] sm:$0xff]  }
 0x16f   : > { %5687 = vmatprep.subr.bf16.mxu1 %v6362_v15  ;;  %v2282_v17 = vcombine.low %v2274_v12, %v2281_v13  ;;  %v2283_v28 = vcombine.high %v2274_v12, %v2281_v13  ;;  %v6415_v12 = vld [vmem:[%s7848_s2 + $0x3e0] sm:$0xff]  }
 0x170   : > { %v2305_v15 = vrot.slane %v2298_v8, %v6659_v14 }
 0x171   : > { %v2290_v23 = vrot.slane %v2282_v17, %v6659_v14 }
 0x172   : > { %5688 = vmatpush3.bf16.msra.mxu1 %v6363_v16  ;;  %v2312_v16 = vrot.slane %v2266_v6, %v6659_v14  ;;  %v6414_v6 = vld [vmem:[%s7848_s2 + $0x420] sm:$0xff]  }
 0x173   : > { %5689 = vmatprep.subr.bf16.mxu1 %v6365_v24  ;;  %v2297_v24 = vrot.slane %v2283_v28, %v6659_v14  ;;  %v2330_v31 = vshrl.u32 %v2290_v23, 16  ;;  %v6417_v28 = vld [vmem:[%s7848_s2 + $0x428] sm:$0xff]  }
 0x174   : > { %v2313_v18 = vcombine.low %v2305_v15, %v2312_v16  ;;  %v2314_v19 = vcombine.high %v2305_v15, %v2312_v16  ;;  %v6418_v23 = vld [vmem:[%s7848_s2 + $0x3e8] sm:$0xff]  }
 0x176   : > { %5690 = vmatpush3.bf16.msra.mxu1 %v6366_v11  ;;  %v2328_v11 = vrot.slane %v2314_v19, %v6659_v14 }
 0x177   : > { %5691 = vmatprep.subr.bf16.mxu1 %v6368_v40 }
 0x178   : > { %v2344_v34 = vshll.u32 %v2328_v11, 16 }
 0x17a   : > { %5692 = vmatpush3.bf16.msra.mxu1 %v6369_v42  ;;  %v6397_v42 = vld [vmem:[%s7848_s2 + $0x378] sm:$0xff]  }
 0x17b   : > { %5693 = vmatprep.subr.bf16.mxu1 %v6371_v46 }
 0x17e   : > { %5694 = vmatpush3.bf16.msra.mxu1 %v6372_v48 }
 0x17f   : > { %5710 = vmatprep.subr.bf16.mxu1 %v6376_v52  ;;  %v6406_v52 = vld [vmem:[%s7848_s2 + $0x3c8] sm:$0xff]  }
 0x181   : > { %2207 = vmatmul.mubr.bf16.vlgmr.msra.gmra.mrb[16].mxu1 %v7129_v53 }
 0x182   : > { %5711 = vmatpush3.bf16.msra.mxu1 %v6377_v54  ;;  %v6408_v54 = vld [vmem:[%s7848_s2 + $0x410] sm:$0xff]  }
 0x183   : > { %5712 = vmatprep.subr.bf16.mxu1 %v6379_v55  ;;  %v6409_v55 = vld [vmem:[%s7848_s2 + $0x3d0] sm:$0xff]  }
 0x186   : > { %5713 = vmatpush3.bf16.msra.mxu1 %v6380_v56  ;;  %v5167_v56 = vld [vmem:[%s6648_s14 + $0x14] sm:$0xf] }
 0x187   : > { %5714 = vmatprep.subr.bf16.mxu1 %v6382_v57  ;;  %v5168_v57 = vld [vmem:[%s6648_s14 + $0x18] sm:$0xf] }
 0x188   : > { %v5170_v59 = vcombine.low %v5168_v57, %v5168_v57 }
 0x18a   : > { %5715 = vmatpush3.bf16.msra.mxu1 %v6383_v58  ;;  %v5169_v58 = vcombine.low %v5167_v56, %v5167_v56  ;;  %v2662_v62 = vrot.slane %v5170_v59, 1  ;;  %v2664_v2 = vrot.slane %v5170_v59, 2  ;;  %v6355_v59 = vld [vmem:[%s7848_s2 + $0x2c0] sm:$0xff]  }
 0x18b   : > { %5716 = vmatprep.subr.bf16.mxu1 %v6385_v63  ;;  %v6412_v63 = vld [vmem:[%s7848_s2 + $0x3d8] sm:$0xff]  }
 0x18c   : > { %v2661_v61 = vrot.slane %v5169_v58, 1  ;;  %v2696_v4 = vcombine.low %v5168_v57, %v2662_v62  ;;  %v6364_v62 = vld [vmem:[%s7848_s2 + $0x2d8] sm:$0xff]  }
 0x18e   : > { %5717 = vmatpush3.bf16.msra.mxu1 %v6386_v0  ;;  %v2663_v0 = vrot.slane %v5169_v58, 2  ;;  %v2665_v3 = vcombine.low %v5167_v56, %v2661_v61  ;;  %v6361_v61 = vld [vmem:[%s7848_s2 + $0x2d0] sm:$0xff]  }
 0x18f   : > { %5718 = vmatprep.subr.bf16.mxu1 %v6388_v9  ;;  %v2703_v9 = vrot.slane %v2696_v4, %v6659_v14  ;;  %v2026_v4 = vcombine.high %v7129_v53, %v7129_v53  ;;  %v6387_v53 = vld [vmem:[%s7848_s2 + $0x390] sm:$0xff]  }
 0x190   : > { %v2672_v7 = vrot.slane %v2665_v3, %v6659_v14  ;;  %v2679_v8 = vrot.slane %v2663_v0, %v6659_v14  ;;  %v6370_v0 = vld [vmem:[%s7848_s2 + $0x2e8] sm:$0xff]   ;;  %v6378_v3 = vld [vmem:[%s7848_s2 + $0x2f8] sm:$0xff]  }
 0x192   : > { %5719 = vmatpush3.bf16.msra.mxu1 %v6389_v10  ;;  %v2710_v10 = vrot.slane %v2664_v2, %v6659_v14  ;;  %v2680_v13 = vcombine.low %v2672_v7, %v2679_v8  ;;  %v2681_v15 = vcombine.high %v2672_v7, %v2679_v8  ;;  %v6373_v2 = vld [vmem:[%s7848_s2 + $0x2f0] sm:$0xff]   ;;  %v6384_v7 = vld [vmem:[%s7848_s2 + $0x388] sm:$0xff]   ;;  %v6390_v8 = vld [vmem:[%s7848_s2 + $0x398] sm:$0xff]  }
 0x193   : > { %5720 = vmatprep.subr.bf16.mxu1 %v6391_v20 }
 0x194   : > { %v2711_v16 = vcombine.low %v2703_v9, %v2710_v10  ;;  %v2712_v17 = vcombine.high %v2703_v9, %v2710_v10  ;;  %v2695_v19 = vrot.slane %v2681_v15, %v6659_v14  ;;  %v6393_v9 = vld [vmem:[%s7848_s2 + $0x3a0] sm:$0xff]   ;;  %v6396_v10 = vld [vmem:[%s7848_s2 + $0x3a8] sm:$0xff]  }
 0x196   : > { %5721 = vmatpush3.bf16.msra.mxu1 %v6392_v22  ;;  %v2719_v20 = vrot.slane %v2711_v16, %v6659_v14  ;;  %v6407_v16 = vld [vmem:[%s7848_s2 + $0x440] sm:$0xff]  }
 0x197   : > { %5722 = vmatprep.subr.bf16.mxu1 %v6394_v37 }
 0x19a   : > { %5723 = vmatpush3.bf16.msra.mxu1 %v6395_v38 }
 0x19b   : > { %5724 = vmatprep.subr.bf16.mxu1 %v6397_v42  ;;  %v6424_v42 = vld [vmem:[%s7848_s2 + $0x3f8] sm:$0xff]  }
 0x19e   : > { %5725 = vmatpush3.bf16.msra.mxu1 %v6398_v44 }
 0x19f   : > { %5741 = vmatprep.subr.bf16.mxu1 %v6402_v47 }
 0x1d4   : > { %v613_v25 = vpop.f32.mrb[0].mxu1 }
 0x1d5   : > { %619 = vst [vmem:[#allocation2] sm:$0xf] %v613_v25  ;;  %v5939_v32 = vpop.f32.mrb[1].mxu1  ;;  %v2321_v25 = vrot.slane %v2313_v18, %v6659_v14  ;;  %v2688_v18 = vrot.slane %v2680_v13, %v6659_v14  ;;  %v6404_v13 = vld [vmem:[%s7848_s2 + $0x3b8] sm:$0xff]  }
 0x1d6   : > { %v616_v33 = vpop.f32.mrb[2].mxu1  ;;  %v2335_v32 = vshll.u32 %v2297_v24, 16 }
 0x1d7   : > { %v5940_v39 = vpop.f32.mrb[3].mxu1  ;;  %v2339_v33 = vshrl.u32 %v2321_v25, 16  ;;  %v2728_v11 = vshrl.u32 %v2688_v18, 16  ;;  %v6419_v18 = vld [vmem:[%s7848_s2 + $0x460] sm:$0xff]  }
 0x1d9   : > { %v2346_v39 = vsel %vm6680_vm15, %v2339_v33, %v2344_v34 }
 0x1f4   : > { %v986_v21 = vpop.f32.mrb[4].mxu1 }
 0x1f5   : > { %v987_v26 = vadd.f32 %v7023_v36, %v986_v21  ;;  %v5959_v29 = vpop.f32.mrb[5].mxu1  ;;  %v2337_v36 = vsel %vm6680_vm15, %v2330_v31, %v2335_v32  ;;  %v2726_v21 = vrot.slane %v2712_v17, %v6659_v14  ;;  %v6410_v17 = vld [vmem:[%s7848_s2 + $0x448] sm:$0xff]  }
 0x1f6   : > { %v989_v30 = vpop.f32.mrb[6].mxu1  ;;  %v2396_v40 = vcombine.low %v2337_v36, %v2346_v39  ;;  %v2737_v29 = vshrl.u32 %v2719_v20, 16  ;;  %v6423_v39 = vld [vmem:[%s7848_s2 + $0x438] sm:$0xff]   ;;  %v6427_v20 = vld [vmem:[%s7848_s2 + $0x470] sm:$0xff]  }
 0x1f7   : > { %992 = vst [vmem:[#allocation3] sm:$0xf] %v987_v26  ;;  %v5960_v35 = vpop.f32.mrb[7].mxu1  ;;  %v2733_v26 = vshll.u32 %v2695_v19, 16  ;;  %v2742_v32 = vshll.u32 %v2726_v21, 16  ;;  %v6422_v19 = vld [vmem:[%s7848_s2 + $0x468] sm:$0xff]  }
 0x1f8   : > { %v2403_v43 = vrot.slane %v2396_v40, %v6659_v14  ;;  %v6420_v35 = vld [vmem:[%s7848_s2 + $0x430] sm:$0xff]   ;;  %v6428_v21 = vld [vmem:[%s7848_s2 + $0x478] sm:$0xff]  }
 0x1f9   : > { %v2735_v37 = vsel %vm6680_vm15, %v2728_v11, %v2733_v26  ;;  %v2744_v38 = vsel %vm6680_vm15, %v2737_v29, %v2742_v32 }
 0x1fa   : > { %v2404_v45 = vcombine.high %v2403_v43, %v2403_v43  ;;  %v7198_v48 = vrot.slane %v2403_v43, %v6659_v14  ;;  %v2794_v36 = vcombine.low %v2735_v37, %v2744_v38  ;;  %v6431_v37 = vld [vmem:[%s7850_s4 + $0x90] sm:$0xff]  }
 0x1fc   : > { %v2418_v46 = vrot.slane %v2404_v45, %v6659_v14  ;;  %v2801_v40 = vrot.slane %v2794_v36, %v6659_v14  ;;  %v2419_v15 = vcombine.high %v7198_v48, %v7198_v48 }
 0x1fe   : > { %2599 = vmatprep.mubr.bf16.mxu1 %v2418_v46  ;;  %v1363_v30 = vld [vmem:[#allocation3] sm:$0xf]  ;;  %v2802_v43 = vcombine.high %v2801_v40, %v2801_v40  ;;  %v7264_v44 = vrot.slane %v2801_v40, %v6659_v14 }
 0x1ff   : > { %2600 = vmatmul.mubr.bf16.vlgmr.msra.gmra.mrb[20].mxu1 %v7198_v48  ;;  %v6413_v48 = vld [vmem:[%s7848_s2 + $0x450] sm:$0xff]  }
 0x200   : > { %5742 = vmatpush3.bf16.msra.mxu1 %v6403_v49  ;;  %v2816_v27 = vrot.slane %v2802_v43, %v6659_v14  ;;  %v6433_v43 = vld [vmem:[%s7850_s4 + $0xa0] sm:$0xff]  }
 0x201   : > { %5743 = vmatprep.subr.bf16.mxu1 %v6405_v51 }
 0x202   : > { %2997 = vmatprep.mubr.bf16.mxu1 %v2816_v27  ;;  %v6434_v27 = vld [vmem:[%s7850_s4 + $0xa8] sm:$0xff]  }
 0x204   : > { %5744 = vmatpush3.bf16.msra.mxu1 %v6406_v52 }
 0x205   : > { %5745 = vmatprep.subr.bf16.mxu1 %v6408_v54 }
 0x208   : > { %5746 = vmatpush3.bf16.msra.mxu1 %v6409_v55  ;;  %v4986_v55 = vld [vmem:[%s7851_s5 + $0x1] ss:$0 sm:$0xff] }
 0x209   : > { %5747 = vmatprep.subr.bf16.mxu1 %v6411_v60 }
 0x20c   : > { %5748 = vmatpush3.bf16.msra.mxu1 %v6412_v63  ;;  %v6367_v63 = vld [vmem:[%s7848_s2 + $0x2e0] sm:$0xff]  }
 0x20d   : > { %5749 = vmatprep.subr.bf16.mxu1 %v6414_v6  ;;  %v6381_v6 = vld [vmem:[%s7848_s2 + $0x380] sm:$0xff]  }
 0x210   : > { %5750 = vmatpush3.bf16.msra.mxu1 %v6415_v12  ;;  %v6399_v12 = vld [vmem:[%s7848_s2 + $0x3b0] sm:$0xff]  }
 0x211   : > { %5751 = vmatprep.subr.bf16.mxu1 %v6417_v28  ;;  %v6416_v28 = vld [vmem:[%s7848_s2 + $0x458] sm:$0xff]  }
 0x214   : > { %v1357_v22 = vpop.f32.mrb[8].mxu1  ;;  %5752 = vmatpush3.bf16.msra.mxu1 %v6418_v23 }
 0x215   : > { %v1358_v24 = vadd.f32 %v7025_v41, %v1357_v22  ;;  %v5979_v25 = vpop.f32.mrb[9].mxu1  ;;  %v6421_v41 = vld [vmem:[%s7848_s2 + $0x3f0] sm:$0xff]   ;;  %5753 = vmatprep.subr.bf16.mxu1 %v6420_v35  ;;  %v2817_v22 = vcombine.high %v7264_v44, %v7264_v44  ;;  %v6430_v35 = vld [vmem:[%s7850_s4 + $0x88] sm:$0xff]  }
 0x216   : > { %v1360_v31 = vpop.f32.mrb[10].mxu1 }
 0x217   : > { %v1364_v33 = vadd.f32 %v1363_v30, %v1358_v24  ;;  %v5980_v34 = vpop.f32.mrb[11].mxu1 }
 0x218   : > { %5754 = vmatpush3.bf16.msra.mxu1 %v6421_v41  ;;  %v6429_v34 = vld [vmem:[%s7850_s4 + $0x80] sm:$0xff]   ;;  %v6432_v41 = vld [vmem:[%s7850_s4 + $0x98] sm:$0xff]  }
 0x219   : > { %1365 = vst [vmem:[#allocation3] sm:$0xf] %v1364_v33  ;;  %5755 = vmatprep.subr.bf16.mxu1 %v6423_v39 }
 0x21c   : > { %5756 = vmatpush3.bf16.msra.mxu1 %v6424_v42 }
 0x21d   : > { %6081 = vmatprep.subr.bf16.mxu1 %v6563_v1 }
 0x21f   : > { %2998 = vmatmul.mubr.bf16.vlgmr.msra.gmra.mrb[24].mxu1 %v7264_v44  ;;  %v6436_v44 = vld [vmem:[%s7848_s2 + $0x4c0] sm:$0xff]  }
 0x220   : > { %6097 = vmatprep.mubr.msk.bf16.mxu1 %vm6564_vm0, %v6563_v1  ;;  %v1739_v49 = vld [vmem:[#allocation3] sm:$0xf]  ;;  %6082 = vmatpush3.bf16.msra.mxu1 %v6429_v34 }
 0x221   : > { %6083 = vmatprep.subr.bf16.mxu1 %v6563_v1 }
 0x224   : > { %6084 = vmatpush3.bf16.msra.mxu1 %v6430_v35  ;;  %v6457_v35 = vld [vmem:[%s7848_s2 + $0x4f8] sm:$0xff]  }
 0x225   : > { %6085 = vmatprep.subr.bf16.mxu1 %v6563_v1 }
 0x228   : > { %6086 = vmatpush3.bf16.msra.mxu1 %v6431_v37 }
 0x229   : > { %6087 = vmatprep.subr.bf16.mxu1 %v6563_v1 }
 0x22c   : > { %6088 = vmatpush3.bf16.msra.mxu1 %v6432_v41  ;;  %v6458_v41 = vld [vmem:[%s7848_s2 + $0x4b8] sm:$0xff]  }
 0x22d   : > { %6089 = vmatprep.subr.bf16.mxu1 %v6563_v1 }
 0x230   : > { %6090 = vmatpush3.bf16.msra.mxu1 %v6433_v43  ;;  %v6463_v43 = vld [vmem:[%s7848_s2 + $0x540] sm:$0xff]  }
 0x231   : > { %6091 = vmatprep.subr.bf16.mxu1 %v6563_v1 }
 0x234   : > { %v1733_v45 = vpop.f32.mrb[12].mxu1  ;;  %6092 = vmatpush3.bf16.msra.mxu1 %v6434_v27  ;;  %v6465_v27 = vld [vmem:[%s7848_s2 + $0x588] sm:$0xff]  }
 0x235   : > { %v1734_v46 = vadd.f32 %v7043_v50, %v1733_v45  ;;  %v5999_v47 = vpop.f32.mrb[13].mxu1  ;;  %v6358_v50 = vld [vmem:[%s7848_s2 + $0x2c8] sm:$0xff]   ;;  %v6437_v45 = vld [vmem:[%s7848_s2 + $0x480] sm:$0xff]   ;;  %6093 = vmatprep.subr.bf16.mxu1 %v6563_v1 }
 0x236   : > { %v1736_v51 = vpop.f32.mrb[14].mxu1  ;;  %v6435_v47 = vld [vmem:[%s7850_s4 + $0xb0] sm:$0xff]  }
 0x237   : > { %v1740_v52 = vadd.f32 %v1739_v49, %v1734_v46  ;;  %v6000_v54 = vpop.f32.mrb[15].mxu1  ;;  %v6439_v46 = vld [vmem:[%s7848_s2 + $0x4c8] sm:$0xff]   ;;  %v6438_v51 = vld [vmem:[%s7850_s4 + $0xb8] sm:$0xff]  }
 0x238   : > { %v6440_v49 = vld [vmem:[%s7848_s2 + $0x488] sm:$0xff]   ;;  %6094 = vmatpush3.bf16.msra.mxu1 %v6435_v47  ;;  %v6443_v54 = vld [vmem:[%s7848_s2 + $0x490] sm:$0xff]  }
 0x239   : > { %1741 = vst [vmem:[#allocation3] sm:$0xf] %v1740_v52  ;;  %6095 = vmatprep.subr.bf16.mxu1 %v6563_v1  ;;  %v6442_v52 = vld [vmem:[%s7848_s2 + $0x4d0] sm:$0xff]   ;;  %v5344_v47 = vld [vmem:[%s6648_s14 + $0xc] sm:$0xf] }
 0x23c   : > { %6096 = vmatpush3.bf16.msra.mxu1 %v6438_v51  ;;  %v5346_v51 = vcombine.low %v5344_v47, %v5344_v47 }
 0x23d   : > { %6101 = vmatprep.subr.bf16.mxu1 %v6563_v1 }
 0x240   : > { %v1742_v56 = vld [vmem:[#allocation3] sm:$0xf] }
 0x241   : > { %v1748_v57 = vadd.f32 %v4986_v55, %v1742_v56  ;;  %v3167_v55 = vld [vmem:[%s6648_s14] sm:$0xf]  ;;  %v3168_v56 = vld [vmem:[%s6648_s14 + $0x4] sm:$0xf] }
 0x243   : > { %v1749_v58 = vmax.f32 %v1748_v57, 0.0  ;;  %v5270_v57 = vcombine.low %v3167_v55, %v3167_v55 }
 0x245   : > { %v1751_v60 = vpack.c.bf16 %v1749_v58, %v1749_v58  ;;  %v5271_v58 = vcombine.low %v3168_v56, %v3168_v56 }
 0x247   : > { %6018 = vmatmul.mubr.bf16.vlgmr.msra.gmra.mrb[16].mxu0 %v1751_v60  ;;  %v3176_v60 = vshrl.u32 %v5270_v57, 16 }
 0x248   : > { %6022 = vmatpush3.bf16.msra.mxu0 %v6355_v59  ;;  %6037 = vmatprep.mubr.msk.bf16.mxu0 %vm6564_vm0, %v6563_v1  ;;  %v6445_v59 = vld [vmem:[%s7848_s2 + $0x4d8] sm:$0xff]  }
 0x249   : > { %6023 = vmatprep.subr.bf16.mxu0 %v6563_v1 }
 0x24c   : > { %6024 = vmatpush3.bf16.msra.mxu0 %v6358_v50  ;;  %v3179_v50 = vshll.u32 %v5270_v57, 16 }
 0x24d   : > { %6025 = vmatprep.subr.bf16.mxu0 %v6563_v1 }
 0x250   : > { %6026 = vmatpush3.bf16.msra.mxu0 %v6361_v61  ;;  %v3184_v61 = vshrl.u32 %v5271_v58, 16 }
 0x251   : > { %6027 = vmatprep.subr.bf16.mxu0 %v6563_v1 }
 0x254   : > { %6028 = vmatpush3.bf16.msra.mxu0 %v6364_v62  ;;  %v5695_v23 = vpop.f32.mrb[16].mxu1  ;;  %v3187_v62 = vshll.u32 %v5271_v58, 16 }
 0x255   : > { %6029 = vmatprep.subr.bf16.mxu0 %v6563_v1  ;;  %v5696_v24 = vpop.f32.mrb[17].mxu1 }
 0x256   : > { %v7381_v25 = vadd.f32 %v5696_v24, %v5695_v23  ;;  %v5698_v11 = vpop.f32.mrb[18].mxu1 }
 0x257   : > { %v5699_v26 = vpop.f32.mrb[19].mxu1 }
 0x258   : > { %6030 = vmatpush3.bf16.msra.mxu0 %v6367_v63  ;;  %v6446_v63 = vld [vmem:[%s7848_s2 + $0x498] sm:$0xff]  }
 0x259   : > { %6031 = vmatprep.subr.bf16.mxu0 %v6563_v1 }
 0x25c   : > { %6032 = vmatpush3.bf16.msra.mxu0 %v6370_v0  ;;  %v3178_v0 = vrot.slane %v3176_v60, 1 }
 0x25d   : > { %6033 = vmatprep.subr.bf16.mxu0 %v6563_v1 }
 0x260   : > { %6034 = vmatpush3.bf16.msra.mxu0 %v6373_v2  ;;  %v3181_v2 = vrot.slane %v3179_v50, 2 }
 0x261   : > { %6035 = vmatprep.subr.bf16.mxu0 %v6563_v1 }
 0x264   : > { %6036 = vmatpush3.bf16.msra.mxu0 %v6378_v3  ;;  %v3186_v3 = vrot.slane %v3184_v61, 1 }
 0x265   : > { %6041 = vmatprep.subr.bf16.mxu0 %v6563_v1 }
 0x267   : > { %6038 = vmatmul.mubr.bf16.vlgmr.msra.gmra.mrb[20].mxu0 %v2026_v4  ;;  %v3189_v4 = vrot.slane %v3187_v62, 2 }
 0x268   : > { %6042 = vmatpush3.bf16.msra.mxu0 %v6381_v6  ;;  %6057 = vmatprep.mubr.msk.bf16.mxu0 %vm6564_vm0, %v6563_v1  ;;  %v6448_v6 = vld [vmem:[%s7848_s2 + $0x4e0] sm:$0xff]  }
 0x269   : > { %6043 = vmatprep.subr.bf16.mxu0 %v6563_v1 }
 0x26c   : > { %6044 = vmatpush3.bf16.msra.mxu0 %v6384_v7  ;;  %v3182_v7 = vor.u32 %v3181_v2, %v3178_v0 }
 0x26d   : > { %6045 = vmatprep.subr.bf16.mxu0 %v6563_v1 }
 0x270   : > { %6046 = vmatpush3.bf16.msra.mxu0 %v6387_v53  ;;  %v3190_v53 = vor.u32 %v3189_v4, %v3186_v3  ;;  %v6475_v3 = vld [vmem:[%s7848_s2 + $0x560] sm:$0xff]   ;;  %v3564_v4 = vrot.slane %v5346_v51, 3 }
 0x271   : > { %6047 = vmatprep.subr.bf16.mxu0 %v6563_v1 }
 0x274   : > { %6048 = vmatpush3.bf16.msra.mxu0 %v6390_v8  ;;  %v6449_v8 = vld [vmem:[%s7848_s2 + $0x4a0] sm:$0xff]  }
 0x275   : > { %6049 = vmatprep.subr.bf16.mxu0 %v6563_v1 }
 0x278   : > { %6050 = vmatpush3.bf16.msra.mxu0 %v6393_v9  ;;  %v3191_v9 = vrot.slane %v5270_v57, 3 }
 0x279   : > { %6051 = vmatprep.subr.bf16.mxu0 %v6563_v1 }
 0x27c   : > { %6052 = vmatpush3.bf16.msra.mxu0 %v6396_v10  ;;  %v3192_v10 = vrot.slane %v5271_v58, 3 }
 0x27d   : > { %6053 = vmatprep.subr.bf16.mxu0 %v6563_v1 }
 0x280   : > { %6054 = vmatpush3.bf16.msra.mxu0 %v6399_v12  ;;  %v3193_v12 = vcombine.low %v3167_v55, %v3182_v7  ;;  %v3549_v55 = vshrl.u32 %v5346_v51, 16 }
 0x281   : > { %6055 = vmatprep.subr.bf16.mxu0 %v6563_v1 }
 0x282   : > { %v3551_v60 = vrot.slane %v3549_v55, 1 }
 0x284   : > { %6056 = vmatpush3.bf16.msra.mxu0 %v6404_v13  ;;  %v3216_v13 = vcombine.low %v3168_v56, %v3190_v53  ;;  %v3552_v56 = vshll.u32 %v5346_v51, 16  ;;  %v6497_v51 = vld [vmem:[%s7848_s2 + $0x658] sm:$0xff]  }
 0x285   : > { %6061 = vmatprep.subr.bf16.mxu0 %v6563_v1 }
 0x286   : > { %v3554_v50 = vrot.slane %v3552_v56, 2 }
 0x287   : > { %6058 = vmatmul.mubr.bf16.vlgmr.msra.gmra.mrb[24].mxu0 %v2419_v15  ;;  %v6451_v15 = vld [vmem:[%s7848_s2 + $0x4e8] sm:$0xff]  }
 0x288   : > { %6062 = vmatpush3.bf16.msra.mxu0 %v6407_v16  ;;  %6077 = vmatprep.mubr.msk.bf16.mxu0 %vm6564_vm0, %v6563_v1  ;;  %v3200_v16 = vrot.slane %v3193_v12, %v6659_v14  ;;  %v3555_v0 = vor.u32 %v3554_v50, %v3551_v60  ;;  %v6500_v60 = vld [vmem:[%s7848_s2 + $0x660] sm:$0xff]  }
 0x289   : > { %6063 = vmatprep.subr.bf16.mxu0 %v6563_v1  ;;  %v6501_v50 = vld [vmem:[%s7848_s2 + $0x620] sm:$0xff]  }
 0x28a   : > { %v3566_v7 = vcombine.low %v5344_v47, %v3555_v0 }
 0x28c   : > { %6064 = vmatpush3.bf16.msra.mxu0 %v6410_v17  ;;  %v3207_v17 = vrot.slane %v3191_v9, %v6659_v14  ;;  %v3573_v9 = vrot.slane %v3566_v7, %v6659_v14  ;;  %v6503_v7 = vld [vmem:[%s7848_s2 + $0x668] sm:$0xff]  }
 0x28d   : > { %6065 = vmatprep.subr.bf16.mxu0 %v6563_v1 }
 0x28e   : > { %v3208_v23 = vcombine.low %v3200_v16, %v3207_v17  ;;  %v6478_v16 = vld [vmem:[%s7848_s2 + $0x568] sm:$0xff]  }
 0x290   : > { %6066 = vmatpush3.bf16.msra.mxu0 %v6413_v48  ;;  %v3223_v48 = vrot.slane %v3216_v13, %v6659_v14 }
 0x291   : > { %6067 = vmatprep.subr.bf16.mxu0 %v6563_v1 }
 0x294   : > { %6068 = vmatpush3.bf16.msra.mxu0 %v6416_v28  ;;  %v3230_v28 = vrot.slane %v3192_v10, %v6659_v14  ;;  %v3580_v10 = vrot.slane %v3564_v4, %v6659_v14 }
 0x295   : > { %6069 = vmatprep.subr.bf16.mxu0 %v6563_v1 }
 0x296   : > { %v3231_v24 = vcombine.low %v3223_v48, %v3230_v28  ;;  %v3581_v28 = vcombine.low %v3573_v9, %v3580_v10 }
 0x298   : > { %6070 = vmatpush3.bf16.msra.mxu0 %v6419_v18  ;;  %v1750_v18 = vld [vmem:[#allocation2] sm:$0xf] }
 0x299   : > { %6071 = vmatprep.subr.bf16.mxu0 %v6563_v1 }
 0x29c   : > { %6072 = vmatpush3.bf16.msra.mxu0 %v6422_v19 }
 0x29d   : > { %6073 = vmatprep.subr.bf16.mxu0 %v6563_v1 }
 0x2a0   : > { %6074 = vmatpush3.bf16.msra.mxu0 %v6427_v20  ;;  %v6452_v20 = vld [vmem:[%s7848_s2 + $0x4a8] sm:$0xff]  }
 0x2a1   : > { %6075 = vmatprep.subr.bf16.mxu0 %v6563_v1 }
 0x2a4   : > { %6076 = vmatpush3.bf16.msra.mxu0 %v6428_v21 }
 0x2a5   : > { %5781 = vmatprep.subr.bf16.mxu0 %v6436_v44  ;;  %v6466_v44 = vld [vmem:[%s7848_s2 + $0x548] sm:$0xff]  }
 0x2a7   : > { %6078 = vmatmul.mubr.bf16.vlgmr.msra.gmra.mrb[28].mxu0 %v2817_v22 }
 0x2a8   : > { %5782 = vmatpush3.bf16.msra.mxu0 %v6437_v45  ;;  %v6468_v45 = vld [vmem:[%s7848_s2 + $0x590] sm:$0xff]  }
 0x2a9   : > { %5783 = vmatprep.subr.bf16.mxu0 %v6439_v46  ;;  %v6469_v46 = vld [vmem:[%s7848_s2 + $0x550] sm:$0xff]  }
 0x2ac   : > { %5784 = vmatpush3.bf16.msra.mxu0 %v6440_v49  ;;  %v5345_v49 = vld [vmem:[%s6648_s14 + $0x10] sm:$0xf] }
 0x2ad   : > { %5785 = vmatprep.subr.bf16.mxu0 %v6442_v52  ;;  %v5347_v52 = vcombine.low %v5345_v49, %v5345_v49 }
 0x2af   : > { %v3557_v57 = vshrl.u32 %v5347_v52, 16  ;;  %v3560_v58 = vshll.u32 %v5347_v52, 16 }
 0x2b0   : > { %5786 = vmatpush3.bf16.msra.mxu0 %v6443_v54  ;;  %v6471_v54 = vld [vmem:[%s7848_s2 + $0x598] sm:$0xff]  }
 0x2b1   : > { %5787 = vmatprep.subr.bf16.mxu0 %v6445_v59  ;;  %v6472_v59 = vld [vmem:[%s7848_s2 + $0x558] sm:$0xff]   ;;  %v3559_v61 = vrot.slane %v3557_v57, 1  ;;  %v3562_v62 = vrot.slane %v3560_v58, 2 }
 0x2b3   : > { %v3563_v2 = vor.u32 %v3562_v62, %v3559_v61 }
 0x2b4   : > { %5788 = vmatpush3.bf16.msra.mxu0 %v6446_v63  ;;  %v6474_v63 = vld [vmem:[%s7848_s2 + $0x5a0] sm:$0xff]  }
 0x2b5   : > { %5789 = vmatprep.subr.bf16.mxu0 %v6448_v6  ;;  %v3565_v6 = vrot.slane %v5347_v52, 3  ;;  %v3589_v53 = vcombine.low %v5345_v49, %v3563_v2  ;;  %v6498_v52 = vld [vmem:[%s7848_s2 + $0x618] sm:$0xff]  }
 0x2b7   : > { %v3596_v12 = vrot.slane %v3589_v53, %v6659_v14  ;;  %v3603_v13 = vrot.slane %v3565_v6, %v6659_v14 }
 0x2b8   : > { %5790 = vmatpush3.bf16.msra.mxu0 %v6449_v8  ;;  %v6477_v8 = vld [vmem:[%s7848_s2 + $0x5a8] sm:$0xff]  }
 0x2b9   : > { %5791 = vmatprep.subr.bf16.mxu0 %v6451_v15 }
 0x2bc   : > { %5792 = vmatpush3.bf16.msra.mxu0 %v6452_v20 }
 0x2d2   : > { %v5726_v29 = vpop.f32.mrb[20].mxu1 }
 0x2d3   : > { %v5727_v30 = vpop.f32.mrb[21].mxu1 }
 0x2d4   : > { %v7383_v31 = vadd.f32 %v5727_v30, %v5726_v29  ;;  %v5729_v32 = vpop.f32.mrb[22].mxu1  ;;  %v6454_v29 = vld [vmem:[%s7848_s2 + $0x4f0] sm:$0xff]   ;;  %v3215_v30 = vrot.slane %v3208_v23, %v6659_v14 }
 0x2d5   : > { %v5730_v33 = vpop.f32.mrb[23].mxu1  ;;  %v3238_v32 = vrot.slane %v3231_v24, %v6659_v14  ;;  %5793 = vmatprep.subr.bf16.mxu0 %v6454_v29  ;;  %v6484_v29 = vld [vmem:[%s7848_s2 + $0x578] sm:$0xff]  }
 0x2d6   : > { %v6455_v33 = vld [vmem:[%s7848_s2 + $0x4b0] sm:$0xff]  }
 0x2d7   : > { %v3288_v34 = vcombine.low %v3215_v30, %v3238_v32  ;;  %5794 = vmatpush3.bf16.msra.mxu0 %v6455_v33  ;;  %v6488_v33 = vld [vmem:[%s7848_s2 + $0x640] sm:$0xff]  }
 0x2d8   : > { %5795 = vmatprep.subr.bf16.mxu0 %v6457_v35  ;;  %v6489_v35 = vld [vmem:[%s7848_s2 + $0x600] sm:$0xff]  }
 0x2d9   : > { %v3295_v37 = vrot.slane %v3288_v34, %v6659_v14 }
 0x2db   : > { %5796 = vmatpush3.bf16.msra.mxu0 %v6458_v41  ;;  %v6492_v41 = vld [vmem:[%s7848_s2 + $0x608] sm:$0xff]  }
 0x2f2   : > { %v5757_v38 = vpop.f32.mrb[24].mxu1 }
 0x2f3   : > { %v5758_v36 = vpop.f32.mrb[25].mxu1 }
 0x2f4   : > { %v7401_v39 = vadd.f32 %v5758_v36, %v5757_v38  ;;  %v5760_v40 = vpop.f32.mrb[26].mxu1  ;;  %v3296_v38 = vcombine.high %v3295_v37, %v3295_v37 }
 0x2f5   : > { %v5761_v42 = vpop.f32.mrb[27].mxu1  ;;  %v6462_v40 = vld [vmem:[%s7848_s2 + $0x580] sm:$0xff]  }
 0x2f6   : > { %v3310_v36 = vrot.slane %v3296_v38, %v6659_v14  ;;  %v7481_v42 = vrot.slane %v3295_v37, %v6659_v14  ;;  %5812 = vmatprep.subr.bf16.mxu0 %v6462_v40  ;;  %v6491_v37 = vld [vmem:[%s7848_s2 + $0x648] sm:$0xff]   ;;  %v6494_v38 = vld [vmem:[%s7848_s2 + $0x650] sm:$0xff]   ;;  %v5421_v40 = vld [vmem:[%s6648_s14 + $0x1c] sm:$0xf] }
 0x2f8   : > { %3491 = vmatprep.mubr.bf16.mxu0 %v3310_v36  ;;  %v5420_v36 = vld [vmem:[%s6648_s14 + $0x18] sm:$0xf] }
 0x2f9   : > { %3492 = vmatmul.mubr.bf16.vlgmr.msra.gmra.mrb[32].mxu0 %v7481_v42 }
 0x2fa   : > { %5813 = vmatpush3.bf16.msra.mxu0 %v6463_v43  ;;  %v6495_v43 = vld [vmem:[%s7848_s2 + $0x610] sm:$0xff]  }
 0x2fb   : > { %5814 = vmatprep.subr.bf16.mxu0 %v6465_v27  ;;  %v5422_v27 = vcombine.low %v5420_v36, %v5420_v36 }
 0x2fd   : > { %v3942_v61 = vrot.slane %v5422_v27, 3 }
 0x2fe   : > { %5815 = vmatpush3.bf16.msra.mxu0 %v6466_v44  ;;  %v5423_v44 = vcombine.low %v5421_v40, %v5421_v40 }
 0x2ff   : > { %5816 = vmatprep.subr.bf16.mxu0 %v6468_v45  ;;  %v3927_v45 = vshrl.u32 %v5422_v27, 16 }
 0x300   : > { %v3935_v47 = vshrl.u32 %v5423_v44, 16  ;;  %v3938_v49 = vshll.u32 %v5423_v44, 16  ;;  %v3943_v62 = vrot.slane %v5423_v44, 3  ;;  %v6450_v44 = vld [vmem:[%s7848_s2 + $0x518] sm:$0xff]  }
 0x302   : > { %5817 = vmatpush3.bf16.msra.mxu0 %v6469_v46  ;;  %v3930_v46 = vshll.u32 %v5422_v27, 16  ;;  %v3937_v56 = vrot.slane %v3935_v47, 1  ;;  %v3940_v57 = vrot.slane %v3938_v49, 2  ;;  %v3981_v6 = vrot.slane %v3943_v62, %v6659_v14  ;;  %v6447_v27 = vld [vmem:[%s7848_s2 + $0x510] sm:$0xff]   ;;  %v6464_v49 = vld [vmem:[%s7848_s2 + $0x538] sm:$0xff]  }
 0x303   : > { %5818 = vmatprep.subr.bf16.mxu0 %v6471_v54  ;;  %v3929_v54 = vrot.slane %v3927_v45, 1  ;;  %v6453_v45 = vld [vmem:[%s7848_s2 + $0x520] sm:$0xff]   ;;  %v6459_v47 = vld [vmem:[%s7848_s2 + $0x530] sm:$0xff]   ;;  %v6502_v62 = vld [vmem:[%s7848_s2 + $0x698] sm:$0xff]  }
 0x304   : > { %v3932_v55 = vrot.slane %v3930_v46, 2  ;;  %v6456_v46 = vld [vmem:[%s7848_s2 + $0x528] sm:$0xff]  }
 0x306   : > { %5819 = vmatpush3.bf16.msra.mxu0 %v6472_v59  ;;  %v3933_v58 = vor.u32 %v3932_v55, %v3929_v54  ;;  %v3941_v59 = vor.u32 %v3940_v57, %v3937_v56  ;;  %v6470_v54 = vld [vmem:[%s7848_s2 + $0x5c8] sm:$0xff]   ;;  %v6476_v55 = vld [vmem:[%s7848_s2 + $0x5d8] sm:$0xff]   ;;  %v6479_v56 = vld [vmem:[%s7848_s2 + $0x5e0] sm:$0xff]  }
 0x307   : > { %5820 = vmatprep.subr.bf16.mxu0 %v6474_v63  ;;  %v6482_v57 = vld [vmem:[%s7848_s2 + $0x5e8] sm:$0xff]  }
 0x308   : > { %v3944_v63 = vcombine.low %v5420_v36, %v3933_v58  ;;  %v3967_v0 = vcombine.low %v5421_v40, %v3941_v59  ;;  %v6441_v40 = vld [vmem:[%s7848_s2 + $0x500] sm:$0xff]   ;;  %v6485_v58 = vld [vmem:[%s7848_s2 + $0x5f0] sm:$0xff]   ;;  %v6490_v59 = vld [vmem:[%s7848_s2 + $0x5f8] sm:$0xff]  }
 0x30a   : > { %5821 = vmatpush3.bf16.msra.mxu0 %v6475_v3  ;;  %v3951_v2 = vrot.slane %v3944_v63, %v6659_v14  ;;  %v3958_v3 = vrot.slane %v3942_v61, %v6659_v14  ;;  %v3974_v4 = vrot.slane %v3967_v0, %v6659_v14  ;;  %v6496_v61 = vld [vmem:[%s7848_s2 + $0x688] sm:$0xff]   ;;  %v5522_v0 = vld [vmem:[%s6648_s14 + $0x10] sm:$0x6] }
 0x30b   : > { %5822 = vmatprep.subr.bf16.mxu0 %v6477_v8  ;;  %v6504_v8 = vld [vmem:[%s7848_s2 + $0x628] sm:$0xff]  }
 0x30c   : > { %v3959_v9 = vcombine.low %v3951_v2, %v3958_v3  ;;  %v3982_v10 = vcombine.low %v3974_v4, %v3981_v6  ;;  %v5521_v63 = vld [vmem:[%s6648_s14 + $0xc] sm:$0x6]  ;;  %v6505_v2 = vld [vmem:[%s7848_s2 + $0x6a0] sm:$0xff]   ;;  %v4414_v4 = vunpack.c.l.bf16 %v5522_v0 }
 0x30d   : > { %v4413_v3 = vunpack.c.l.bf16 %v5521_v63  ;;  %v6508_v6 = vld [vmem:[%s7848_s2 + $0x6a8] sm:$0xff]  }
 0x30e   : > { %5823 = vmatpush3.bf16.msra.mxu0 %v6478_v16 }
 0x31a   : > { %v1851_v19 = vpop.f32.mrb[16].mxu0 }
 0x31b   : > { %v1857_v21 = vadd.f32 %v1851_v19, %v1750_v18  ;;  %v6019_v22 = vpop.f32.mrb[17].mxu0  ;;  %v3604_v18 = vcombine.low %v3596_v12, %v3603_v13 }
 0x31c   : > { %v1854_v11 = vpop.f32.mrb[18].mxu0  ;;  %v3588_v22 = vrot.slane %v3581_v28, %v6659_v14 }
 0x31d   : > { %1858 = vst [vmem:[#allocation2] sm:$0xf] %v1857_v21  ;;  %v6020_v26 = vpop.f32.mrb[19].mxu0  ;;  %v6480_v21 = vld [vmem:[%s7848_s2 + $0x5b0] sm:$0xff]   ;;  %v3611_v23 = vrot.slane %v3604_v18, %v6659_v14  ;;  %v6483_v11 = vld [vmem:[%s7848_s2 + $0x5b8] sm:$0xff]  }
 0x31e   : > { %5824 = vmatprep.subr.bf16.mxu0 %v6480_v21 }
 0x31f   : > { %v3661_v24 = vcombine.low %v3588_v22, %v3611_v23  ;;  %v6509_v22 = vld [vmem:[%s7848_s2 + $0x678] sm:$0xff]  }
 0x320   : > { %v6510_v23 = vld [vmem:[%s7848_s2 + $0x638] sm:$0xff]  }
 0x321   : > { %v3668_v26 = vrot.slane %v3661_v24, %v6659_v14 }
 0x323   : > { %v3669_v30 = vcombine.high %v3668_v26, %v3668_v26  ;;  %v7544_v34 = vrot.slane %v3668_v26, %v6659_v14 }
 0x325   : > { %v3683_v32 = vrot.slane %v3669_v30, %v6659_v14 }
 0x327   : > { %3864 = vmatprep.mubr.bf16.mxu0 %v3683_v32 }
 0x33a   : > { %v2248_v15 = vpop.f32.mrb[20].mxu0 }
 0x33b   : > { %v2249_v17 = vadd.f32 %v7381_v25, %v2248_v15  ;;  %v6039_v48 = vpop.f32.mrb[21].mxu0  ;;  %v6481_v25 = vld [vmem:[%s7848_s2 + $0x570] sm:$0xff]  }
 0x33c   : > { %v2251_v19 = vpop.f32.mrb[22].mxu0  ;;  %5825 = vmatpush3.bf16.msra.mxu0 %v6481_v25  ;;  %v3989_v48 = vrot.slane %v3982_v10, %v6659_v14  ;;  %v6514_v10 = vld [vmem:[%s7848_s2 + $0x6b8] sm:$0xff]  }
 0x33d   : > { %2254 = vst [vmem:[#allocation3] sm:$0xf] %v2249_v17  ;;  %v6040_v20 = vpop.f32.mrb[23].mxu0  ;;  %5826 = vmatprep.subr.bf16.mxu0 %v6483_v11  ;;  %v3966_v17 = vrot.slane %v3959_v9, %v6659_v14  ;;  %v6506_v19 = vld [vmem:[%s7848_s2 + $0x670] sm:$0xff]  }
 0x33e   : > { %v6507_v20 = vld [vmem:[%s7848_s2 + $0x630] sm:$0xff]  }
 0x340   : > { %5827 = vmatpush3.bf16.msra.mxu0 %v6484_v29 }
 0x341   : > { %5843 = vmatprep.subr.bf16.mxu0 %v6488_v33 }
 0x343   : > { %3865 = vmatmul.mubr.bf16.vlgmr.msra.gmra.mrb[36].mxu0 %v7544_v34 }
 0x344   : > { %5844 = vmatpush3.bf16.msra.mxu0 %v6489_v35  ;;  %v2647_v15 = vld [vmem:[#allocation3] sm:$0xf] }
 0x345   : > { %5845 = vmatprep.subr.bf16.mxu0 %v6491_v37 }
 0x348   : > { %5846 = vmatpush3.bf16.msra.mxu0 %v6492_v41 }
 0x349   : > { %5847 = vmatprep.subr.bf16.mxu0 %v6494_v38 }
 0x34c   : > { %5848 = vmatpush3.bf16.msra.mxu0 %v6495_v43 }
 0x34d   : > { %5849 = vmatprep.subr.bf16.mxu0 %v6497_v51  ;;  %v3311_v51 = vcombine.high %v7481_v42, %v7481_v42  ;;  %v6473_v42 = vld [vmem:[%s7848_s2 + $0x5d0] sm:$0xff]  }
 0x350   : > { %5850 = vmatpush3.bf16.msra.mxu0 %v6498_v52  ;;  %v6467_v52 = vld [vmem:[%s7848_s2 + $0x5c0] sm:$0xff]  }
 0x351   : > { %5851 = vmatprep.subr.bf16.mxu0 %v6500_v60  ;;  %v3684_v60 = vcombine.high %v7544_v34, %v7544_v34  ;;  %v6499_v34 = vld [vmem:[%s7848_s2 + $0x690] sm:$0xff]  }
 0x354   : > { %5852 = vmatpush3.bf16.msra.mxu0 %v6501_v50  ;;  %v6493_v50 = vld [vmem:[%s7848_s2 + $0x680] sm:$0xff]  }
 0x355   : > { %5853 = vmatprep.subr.bf16.mxu0 %v6503_v7  ;;  %v4416_v7 = vsel %vm4415_vm1, %v4413_v3, 0.0 }
 0x358   : > { %5854 = vmatpush3.bf16.msra.mxu0 %v6504_v8  ;;  %v6513_v8 = vld [vmem:[%s7848_s2 + $0x6b0] sm:$0xff]  }
 0x359   : > { %5855 = vmatprep.subr.bf16.mxu0 %v6506_v19 }
 0x35a   : > { %v2641_v53 = vpop.f32.mrb[24].mxu0 }
 0x35b   : > { %v2642_v12 = vadd.f32 %v7383_v31, %v2641_v53  ;;  %v6059_v13 = vpop.f32.mrb[25].mxu0  ;;  %v4039_v31 = vcombine.low %v3966_v17, %v3989_v48  ;;  %v4417_v53 = vsel %vm4415_vm1, %v4414_v4, 0.0  ;;  %v6516_v48 = vld [vmem:[%s7849_s3 + $0x8] sm:$0xff]  }
 0x35c   : > { %v2644_v16 = vpop.f32.mrb[26].mxu0  ;;  %5856 = vmatpush3.bf16.msra.mxu0 %v6507_v20  ;;  %v4418_v9 = vadd.f32 %v4417_v53, %v4416_v7  ;;  %v6518_v20 = vld [vmem:[%s7849_s3 + $0x18] sm:$0xff]  }
 0x35d   : > { %v2648_v28 = vadd.f32 %v2647_v15, %v2642_v12  ;;  %v6060_v18 = vpop.f32.mrb[27].mxu0  ;;  %v4046_v21 = vrot.slane %v4039_v31, %v6659_v14  ;;  %5857 = vmatprep.subr.bf16.mxu0 %v6509_v22  ;;  %v6515_v15 = vld [vmem:[%s7849_s3] sm:$0xff]  }
 0x35e   : > { %v4420_v12 = vrot.slane %v4418_v9, 3  ;;  %v6517_v18 = vld [vmem:[%s7849_s3 + $0x10] sm:$0xff]  }
 0x35f   : > { %2649 = vst [vmem:[#allocation3] sm:$0xf] %v2648_v28  ;;  %v4047_v25 = vcombine.high %v4046_v21, %v4046_v21  ;;  %v7604_v11 = vrot.slane %v4046_v21, %v6659_v14  ;;  %v6519_v21 = vld [vmem:[%s7849_s3 + $0x20] sm:$0xff]  }
 0x360   : > { %5858 = vmatpush3.bf16.msra.mxu0 %v6510_v23  ;;  %v4423_v16 = vsel %vm4422_vm2, %v4420_v12, 0.0 }
 0x361   : > { %v4061_v24 = vrot.slane %v4047_v25, %v6659_v14  ;;  %6161 = vmatprep.subr.bf16.mxu0 %v6563_v1  ;;  %v5245_v14 = vld [vmem:[%s7851_s5 + $0x2] ss:$0 sm:$0xff]  ;;  %v4062_v13 = vcombine.high %v7604_v11, %v7604_v11  ;;  %v4424_v17 = vrot.slane %v4423_v16, 4 }
 0x363   : > { %4242 = vmatprep.mubr.bf16.mxu0 %v4061_v24  ;;  %v4425_v28 = vadd.f32 %v4424_v17, %v4423_v16 }
 0x364   : > { %4243 = vmatmul.mubr.bf16.vlgmr.msra.gmra.mrb[40].mxu0 %v7604_v11 }
 0x365   : > { %6177 = vmatprep.mubr.msk.bf16.mxu0 %vm6564_vm0, %v6563_v1  ;;  %v4426_v19 = vrot.slane %v4425_v28, 2 }
 0x366   : > { %v3045_v32 = vld [vmem:[#allocation3] sm:$0xf] }
 0x367   : > { %v4427_v31 = vadd.f32 %v4426_v19, %v4425_v28 }
 0x369   : > { %v4428_v25 = vrot.slane %v4427_v31, 1 }
 0x37a   : > { %v3039_v26 = vpop.f32.mrb[28].mxu0 }
 0x37b   : > { %v3040_v29 = vadd.f32 %v7401_v39, %v3039_v26  ;;  %v6079_v30 = vpop.f32.mrb[29].mxu0  ;;  %v6444_v39 = vld [vmem:[%s7848_s2 + $0x508] sm:$0xff]  }
 0x37c   : > { %v3042_v33 = vpop.f32.mrb[30].mxu0  ;;  %v6520_v26 = vld [vmem:[%s7849_s3 + $0x28] sm:$0xff]   ;;  %v4429_v30 = vadd.f32 %v4428_v25, %v4427_v31  ;;  %v6535_v25 = vld [vmem:[%s7850_s4 + $0x120] sm:$0xff]  }
 0x37d   : > { %v3046_v35 = vadd.f32 %v3045_v32, %v3040_v29  ;;  %v6080_v37 = vpop.f32.mrb[31].mxu0  ;;  %v6521_v32 = vld [vmem:[%s7849_s3 + $0x30] sm:$0xff]  }
 0x37e   : > { %v4430_v33 = vmul.f32 0.25, %v4429_v30  ;;  %v6536_v30 = vld [vmem:[%s7850_s4 + $0x128] sm:$0xff]  }
 0x37f   : > { %3047 = vst [vmem:[#allocation3] sm:$0xf] %v3046_v35  ;;  %v6522_v35 = vld [vmem:[%s7849_s3 + $0x38] sm:$0xff]  }
 0x380   : > { %v4431_v37 = vpack.c.bf16 %v4430_v33, %v4430_v33 }
 0x386   : > { %v3048_v41 = vld [vmem:[#allocation3] sm:$0xf] }
 0x387   : > { %v3054_v38 = vadd.f32 %v5245_v14, %v3048_v41 }
 0x389   : > { %v3055_v36 = vmax.f32 %v3054_v38, 0.0 }
 0x38b   : > { %v3057_v43 = vpack.c.bf16 %v3055_v36, %v3055_v36 }
 0x38d   : > { %6098 = vmatmul.mubr.bf16.vlgmr.msra.gmra.mrb[28].mxu1 %v3057_v43  ;;  %v6523_v43 = vld [vmem:[%s7850_s4 + $0xc0] sm:$0xff]  }
 0x38e   : > { %6102 = vmatpush3.bf16.msra.mxu1 %v6441_v40  ;;  %6117 = vmatprep.mubr.msk.bf16.mxu1 %vm6564_vm0, %v6563_v1 }
 0x38f   : > { %6103 = vmatprep.subr.bf16.mxu1 %v6563_v1  ;;  %6162 = vmatpush3.bf16.msra.mxu0 %v6523_v43 }
 0x390   : > { %6163 = vmatprep.subr.bf16.mxu0 %v6563_v1 }
 0x392   : > { %6104 = vmatpush3.bf16.msra.mxu1 %v6444_v39  ;;  %v6524_v39 = vld [vmem:[%s7850_s4 + $0xc8] sm:$0xff]  }
 0x393   : > { %6105 = vmatprep.subr.bf16.mxu1 %v6563_v1  ;;  %6164 = vmatpush3.bf16.msra.mxu0 %v6524_v39 }
 0x394   : > { %6165 = vmatprep.subr.bf16.mxu0 %v6563_v1 }
 0x396   : > { %6106 = vmatpush3.bf16.msra.mxu1 %v6447_v27  ;;  %v6525_v27 = vld [vmem:[%s7850_s4 + $0xd0] sm:$0xff]  }
 0x397   : > { %6107 = vmatprep.subr.bf16.mxu1 %v6563_v1  ;;  %6166 = vmatpush3.bf16.msra.mxu0 %v6525_v27 }
 0x398   : > { %6167 = vmatprep.subr.bf16.mxu0 %v6563_v1 }
 0x39a   : > { %6108 = vmatpush3.bf16.msra.mxu1 %v6450_v44  ;;  %v6526_v44 = vld [vmem:[%s7850_s4 + $0xd8] sm:$0xff]  }
 0x39b   : > { %6109 = vmatprep.subr.bf16.mxu1 %v6563_v1  ;;  %6168 = vmatpush3.bf16.msra.mxu0 %v6526_v44  ;;  %v4647_v44 = vsub.s32 0, %v6650_v5 }
 0x39c   : > { %6169 = vmatprep.subr.bf16.mxu0 %v6563_v1 }
 0x39e   : > { %6110 = vmatpush3.bf16.msra.mxu1 %v6453_v45 }
 0x39f   : > { %6111 = vmatprep.subr.bf16.mxu1 %v6563_v1 }
 0x3a2   : > { %6112 = vmatpush3.bf16.msra.mxu1 %v6456_v46 }
 0x3a3   : > { %6113 = vmatprep.subr.bf16.mxu1 %v6563_v1 }
 0x3a6   : > { %6114 = vmatpush3.bf16.msra.mxu1 %v6459_v47 }
 0x3a7   : > { %6115 = vmatprep.subr.bf16.mxu1 %v6563_v1 }
 0x3aa   : > { %6116 = vmatpush3.bf16.msra.mxu1 %v6464_v49 }
 0x3ab   : > { %6121 = vmatprep.subr.bf16.mxu1 %v6563_v1 }
 0x3ad   : > { %6118 = vmatmul.mubr.bf16.vlgmr.msra.gmra.mrb[32].mxu1 %v3311_v51 }
 0x3ae   : > { %6122 = vmatpush3.bf16.msra.mxu1 %v6467_v52  ;;  %6137 = vmatprep.mubr.msk.bf16.mxu1 %vm6564_vm0, %v6563_v1  ;;  %v6527_v52 = vld [vmem:[%s7850_s4 + $0xe0] sm:$0xff]  }
 0x3af   : > { %6123 = vmatprep.subr.bf16.mxu1 %v6563_v1  ;;  %6170 = vmatpush3.bf16.msra.mxu0 %v6527_v52 }
 0x3b0   : > { %6171 = vmatprep.subr.bf16.mxu0 %v6563_v1 }
 0x3b2   : > { %6124 = vmatpush3.bf16.msra.mxu1 %v6470_v54  ;;  %v6528_v54 = vld [vmem:[%s7850_s4 + $0xe8] sm:$0xff]  }
 0x3b3   : > { %6125 = vmatprep.subr.bf16.mxu1 %v6563_v1  ;;  %6172 = vmatpush3.bf16.msra.mxu0 %v6528_v54  ;;  %v5555_v54 = vld [vmem:[%s7852_s6] ss:$0 sm:$0xff] }
 0x3b4   : > { %6173 = vmatprep.subr.bf16.mxu0 %v6563_v1 }
 0x3b6   : > { %6126 = vmatpush3.bf16.msra.mxu1 %v6473_v42  ;;  %v6529_v42 = vld [vmem:[%s7850_s4 + $0xf0] sm:$0xff]  }
 0x3b7   : > { %6127 = vmatprep.subr.bf16.mxu1 %v6563_v1  ;;  %6174 = vmatpush3.bf16.msra.mxu0 %v6529_v42 }
 0x3b8   : > { %6175 = vmatprep.subr.bf16.mxu0 %v6563_v1 }
 0x3ba   : > { %6128 = vmatpush3.bf16.msra.mxu1 %v6476_v55  ;;  %v6530_v55 = vld [vmem:[%s7850_s4 + $0xf8] sm:$0xff]  }
 0x3bb   : > { %6129 = vmatprep.subr.bf16.mxu1 %v6563_v1  ;;  %6176 = vmatpush3.bf16.msra.mxu0 %v6530_v55 }
 0x3bc   : > { %6201 = vmatprep.subr.bf16.mxu0 %v6563_v1 }
 0x3be   : > { %6130 = vmatpush3.bf16.msra.mxu1 %v6479_v56  ;;  %v3056_v56 = vld [vmem:[#allocation2] sm:$0xf] }
 0x3bf   : > { %6131 = vmatprep.subr.bf16.mxu1 %v6563_v1 }
 0x3c2   : > { %6132 = vmatpush3.bf16.msra.mxu1 %v6482_v57 }
 0x3c3   : > { %6133 = vmatprep.subr.bf16.mxu1 %v6563_v1 }
 0x3c6   : > { %6134 = vmatpush3.bf16.msra.mxu1 %v6485_v58 }
 0x3c7   : > { %6135 = vmatprep.subr.bf16.mxu1 %v6563_v1 }
 0x3ca   : > { %6136 = vmatpush3.bf16.msra.mxu1 %v6490_v59 }
 0x3cb   : > { %6141 = vmatprep.subr.bf16.mxu1 %v6563_v1 }
 0x3cc   : > { %v5797_v22 = vpop.f32.mrb[32].mxu0 }
 0x3cd   : > { %6138 = vmatmul.mubr.bf16.vlgmr.msra.gmra.mrb[36].mxu1 %v3684_v60  ;;  %v5798_v23 = vpop.f32.mrb[33].mxu0 }
 0x3ce   : > { %6142 = vmatpush3.bf16.msra.mxu1 %v6493_v50  ;;  %6157 = vmatprep.mubr.msk.bf16.mxu1 %vm6564_vm0, %v6563_v1  ;;  %v5799_v24 = vadd.f32 %v5798_v23, %v5797_v22  ;;  %v5800_v11 = vpop.f32.mrb[34].mxu0  ;;  %v6533_v22 = vld [vmem:[%s7850_s4 + $0x110] sm:$0xff]   ;;  %v6534_v23 = vld [vmem:[%s7850_s4 + $0x118] sm:$0xff]  }
 0x3cf   : > { %6143 = vmatprep.subr.bf16.mxu1 %v6563_v1  ;;  %v5801_v29 = vpop.f32.mrb[35].mxu0 }
 0x3d2   : > { %6144 = vmatpush3.bf16.msra.mxu1 %v6496_v61 }
 0x3d3   : > { %6145 = vmatprep.subr.bf16.mxu1 %v6563_v1 }
 0x3d6   : > { %6146 = vmatpush3.bf16.msra.mxu1 %v6499_v34 }
 0x3d7   : > { %6147 = vmatprep.subr.bf16.mxu1 %v6563_v1 }
 0x3da   : > { %6148 = vmatpush3.bf16.msra.mxu1 %v6502_v62 }
 0x3db   : > { %6149 = vmatprep.subr.bf16.mxu1 %v6563_v1 }
 0x3de   : > { %6150 = vmatpush3.bf16.msra.mxu1 %v6505_v2 }
 0x3df   : > { %6151 = vmatprep.subr.bf16.mxu1 %v6563_v1 }
 0x3e2   : > { %6152 = vmatpush3.bf16.msra.mxu1 %v6508_v6 }
 0x3e3   : > { %6153 = vmatprep.subr.bf16.mxu1 %v6563_v1 }
 0x3e6   : > { %6154 = vmatpush3.bf16.msra.mxu1 %v6513_v8 }
 0x3e7   : > { %6155 = vmatprep.subr.bf16.mxu1 %v6563_v1 }
 0x3ea   : > { %6156 = vmatpush3.bf16.msra.mxu1 %v6514_v10 }
 0x3eb   : > { %6181 = vmatprep.subr.bf16.mxu1 %v6563_v1 }
 0x3ed   : > { %6158 = vmatmul.mubr.bf16.vlgmr.msra.gmra.mrb[40].mxu1 %v4062_v13 }
 0x3ee   : > { %6182 = vmatpush3.bf16.msra.mxu1 %v6515_v15  ;;  %6197 = vmatprep.mubr.msk.bf16.mxu1 %vm6564_vm0, %v6563_v1 }
 0x3ef   : > { %6183 = vmatprep.subr.bf16.mxu1 %v6563_v1 }
 0x3f2   : > { %6184 = vmatpush3.bf16.msra.mxu1 %v6516_v48  ;;  %v5496_v48 = vld [vmem:[%s7851_s5 + $0x3] ss:$0 sm:$0xff] }
 0x3f3   : > { %6185 = vmatprep.subr.bf16.mxu1 %v6563_v1 }
 0x3f6   : > { %6186 = vmatpush3.bf16.msra.mxu1 %v6517_v18 }
 0x3f7   : > { %6187 = vmatprep.subr.bf16.mxu1 %v6563_v1 }
 0x3fa   : > { %6188 = vmatpush3.bf16.msra.mxu1 %v6518_v20  ;;  %v6531_v20 = vld [vmem:[%s7850_s4 + $0x100] sm:$0xff]  }
 0x3fb   : > { %6189 = vmatprep.subr.bf16.mxu1 %v6563_v1 }
 0x3fe   : > { %6190 = vmatpush3.bf16.msra.mxu1 %v6519_v21  ;;  %v6532_v21 = vld [vmem:[%s7850_s4 + $0x108] sm:$0xff]  }
 0x3ff   : > { %6191 = vmatprep.subr.bf16.mxu1 %v6563_v1 }
 0x402   : > { %6192 = vmatpush3.bf16.msra.mxu1 %v6520_v26 }
 0x403   : > { %6193 = vmatprep.subr.bf16.mxu1 %v6563_v1 }
 0x406   : > { %6194 = vmatpush3.bf16.msra.mxu1 %v6521_v32  ;;  %v4448_v32 = vld [vmem:[%s7851_s5 + $0x4] sm:$0x1] }
 0x407   : > { %6195 = vmatprep.subr.bf16.mxu1 %v6563_v1 }
 0x40a   : > { %6196 = vmatpush3.bf16.msra.mxu1 %v6522_v35  ;;  %v6537_v35 = vld [vmem:[%s7850_s4 + $0x130] sm:$0xff]  }
 0x40d   : > { %6198 = vmatmul.mubr.bf16.vlgmr.msra.gmra.mrb[44].mxu1 %v4431_v37 }
 0x416   : > { %v5828_v14 = vpop.f32.mrb[36].mxu0 }
 0x417   : > { %v5829_v41 = vpop.f32.mrb[37].mxu0 }
 0x418   : > { %v5830_v38 = vadd.f32 %v5829_v41, %v5828_v14  ;;  %v5831_v36 = vpop.f32.mrb[38].mxu0  ;;  %v6538_v14 = vld [vmem:[%s7850_s4 + $0x138] sm:$0xff]  }
 0x419   : > { %v5832_v40 = vpop.f32.mrb[39].mxu0 }
 0x437   : > { %v5859_v45 = vpop.f32.mrb[40].mxu0 }
 0x438   : > { %v5860_v46 = vpop.f32.mrb[41].mxu0 }
 0x439   : > { %v5861_v47 = vadd.f32 %v5860_v46, %v5859_v45  ;;  %v5862_v49 = vpop.f32.mrb[42].mxu0  ;;  %v6566_v45 = vmov 1983009808  }
 0x43a   : > { %v5863_v51 = vpop.f32.mrb[43].mxu0  ;;  %v4661_v46 = vunpack.c.l.s4 %v6566_v45 }
 0x43c   : > { %v4662_v51 = vunpack.c.0.s8 %v4661_v46 }
 0x460   : > { %v3157_v57 = vpop.f32.mrb[28].mxu1 }
 0x461   : > { %v3163_v58 = vadd.f32 %v3157_v57, %v3056_v56  ;;  %v6099_v59 = vpop.f32.mrb[29].mxu1 }
 0x462   : > { %v3160_v60 = vpop.f32.mrb[30].mxu1 }
 0x463   : > { %3164 = vst [vmem:[#allocation2] sm:$0xf] %v3163_v58  ;;  %v6100_v50 = vpop.f32.mrb[31].mxu1  ;;  %v4665_v58 = vsub.s32 %v4662_v51, %v6650_v5 }
 0x480   : > { %v3533_v61 = vpop.f32.mrb[32].mxu1 }
 0x481   : > { %v3534_v34 = vadd.f32 %v5799_v24, %v3533_v61  ;;  %v6119_v62 = vpop.f32.mrb[33].mxu1 }
 0x482   : > { %v3536_v63 = vpop.f32.mrb[34].mxu1 }
 0x483   : > { %3539 = vst [vmem:[#allocation3] sm:$0xf] %v3534_v34  ;;  %v6120_v0 = vpop.f32.mrb[35].mxu1 }
 0x48a   : > { %v3912_v6 = vld [vmem:[#allocation3] sm:$0xf] }
 0x4a0   : > { %v3906_v2 = vpop.f32.mrb[36].mxu1 }
 0x4a1   : > { %v3907_v3 = vadd.f32 %v5830_v38, %v3906_v2  ;;  %v6139_v4 = vpop.f32.mrb[37].mxu1  ;;  %v4301_v38 = vld [vmem:[#allocation2] sm:$0xf] }
 0x4a2   : > { %v3909_v7 = vpop.f32.mrb[38].mxu1 }
 0x4a3   : > { %v3913_v53 = vadd.f32 %v3912_v6, %v3907_v3  ;;  %v6140_v8 = vpop.f32.mrb[39].mxu1 }
 0x4a5   : > { %3914 = vst [vmem:[#allocation3] sm:$0xf] %v3913_v53 }
 0x4ac   : > { %v4290_v13 = vld [vmem:[#allocation3] sm:$0xf] }
 0x4c0   : > { %v4284_v9 = vpop.f32.mrb[40].mxu1 }
 0x4c1   : > { %v4285_v10 = vadd.f32 %v5861_v47, %v4284_v9  ;;  %v6159_v12 = vpop.f32.mrb[41].mxu1 }
 0x4c2   : > { %v4287_v15 = vpop.f32.mrb[42].mxu1 }
 0x4c3   : > { %v4291_v16 = vadd.f32 %v4290_v13, %v4285_v10  ;;  %v6160_v17 = vpop.f32.mrb[43].mxu1 }
 0x4c5   : > { %4292 = vst [vmem:[#allocation3] sm:$0xf] %v4291_v16 }
 0x4cc   : > { %v4293_v28 = vld [vmem:[#allocation3] sm:$0xf] }
 0x4cd   : > { %v4299_v18 = vadd.f32 %v5496_v48, %v4293_v28 }
 0x4cf   : > { %v4300_v19 = vmax.f32 %v4299_v18, 0.0 }
 0x4d1   : > { %v4302_v31 = vpack.c.bf16 %v4300_v19, %v4300_v19 }
 0x4d3   : > { %6178 = vmatmul.mubr.bf16.vlgmr.msra.gmra.mrb[44].mxu0 %v4302_v31 }
 0x4d4   : > { %6202 = vmatpush3.bf16.msra.mxu0 %v6531_v20  ;;  %6217 = vmatprep.mubr.msk.bf16.mxu0 %vm6564_vm0, %v6563_v1 }
 0x4d5   : > { %6203 = vmatprep.subr.bf16.mxu0 %v6563_v1 }
 0x4d8   : > { %6204 = vmatpush3.bf16.msra.mxu0 %v6532_v21 }
 0x4d9   : > { %6205 = vmatprep.subr.bf16.mxu0 %v6563_v1 }
 0x4dc   : > { %6206 = vmatpush3.bf16.msra.mxu0 %v6533_v22 }
 0x4dd   : > { %6207 = vmatprep.subr.bf16.mxu0 %v6563_v1 }
 0x4e0   : > { %6208 = vmatpush3.bf16.msra.mxu0 %v6534_v23  ;;  %v4531_v24 = vpop.f32.mrb[44].mxu1 }
 0x4e1   : > { %6209 = vmatprep.subr.bf16.mxu0 %v6563_v1  ;;  %v6199_v11 = vpop.f32.mrb[45].mxu1  ;;  %v4532_v33 = vadd.f32 %v4531_v24, %v4448_v32 }
 0x4e2   : > { %v4534_v26 = vpop.f32.mrb[46].mxu1 }
 0x4e3   : > { %v6200_v29 = vpop.f32.mrb[47].mxu1  ;;  %v4537_v37 = vmax.f32 %v4532_v33, 0.0 }
 0x4e4   : > { %6210 = vmatpush3.bf16.msra.mxu0 %v6535_v25 }
 0x4e5   : > { %6211 = vmatprep.subr.bf16.mxu0 %v6563_v1  ;;  %v4538_v41 = vpack.c.bf16 %v4537_v37, %v4537_v37 }
 0x4e8   : > { %6212 = vmatpush3.bf16.msra.mxu0 %v6536_v30 }
 0x4e9   : > { %6213 = vmatprep.subr.bf16.mxu0 %v6563_v1 }
 0x4ec   : > { %6214 = vmatpush3.bf16.msra.mxu0 %v6537_v35 }
 0x4ed   : > { %6215 = vmatprep.subr.bf16.mxu0 %v6563_v1 }
 0x4f0   : > { %6216 = vmatpush3.bf16.msra.mxu0 %v6538_v14 }
 0x4f3   : > { %6218 = vmatmul.mubr.bf16.vlgmr.msra.gmra.mrb[48].mxu0 %v4538_v41 }
 0x5a6   : > { %v4402_v36 = vpop.f32.mrb[44].mxu0 }
 0x5a7   : > { %v4408_v40 = vadd.f32 %v4402_v36, %v4301_v38  ;;  %v6179_v43 = vpop.f32.mrb[45].mxu0 }
 0x5a8   : > { %v4405_v39 = vpop.f32.mrb[46].mxu0 }
 0x5a9   : > { %4409 = vst [vmem:[#allocation2] sm:$0xf] %v4408_v40  ;;  %v6180_v27 = vpop.f32.mrb[47].mxu0 }
 0x5b0   : > { %v4644_v1 = vld [vmem:[#allocation2] sm:$0xf] }
 0x5c6   : > { %v4638_v47 = vpop.f32.mrb[48].mxu0 }
 0x5c7   : > { %v4648_v49 = vrot.slane %v4638_v47, %v4647_v44  ;;  %v6219_v52 = vpop.f32.mrb[49].mxu0 }
 0x5c8   : > { %v4641_v42 = vpop.f32.mrb[50].mxu0 }
 0x5c9   : > { %v4649_v55 = vadd.f32 %v4648_v49, %v4644_v1  ;;  %v6220_v56 = vpop.f32.mrb[51].mxu0 }
 0x5cb   : > { %v4657_v57 = vadd.f32 %v5555_v54, %v4649_v55 }
 0x5cd   : > { %v4658_v59 = vmax.f32 %v4657_v57, 0.0 }
 0x5cf   : > { %v4666_v60 = vrot.slane %v4658_v59, %v4665_v58 }
 0x5d1   : > { %v4667_v50 = vcombine.high %v4666_v60, %v4666_v60  ;;  %v4670_v61 = vpack.c.bf16 %v4666_v60, %v4666_v60 }
 0x5d3   : > { %v4671_v34 = vpack.c.bf16 %v4667_v50, %v4667_v50  ;;  %4672 = vst [vmem:[%s298_s28] sm:$0x1] %v4670_v61 }
 0x5d5   : > { %4673 = vst [vmem:[%s298_s28 + $0x1] sm:$0x1] %v4671_v34 }
 0x5d6 PF: > { %s17_s26 = sadd.s32 1, %s6561_s26   ;;  %s7856_s24 = smov %s6557_s25 }
 0x5d7   : > { %p14_p5 = scmp.ge.s32.totalorder %s17_s26, 4   ;;  %s7857_s25 = smov %s7859_s27 }
 0x5d9   :  { %16 = sbr.rel (!%p14_p5) target bundleno = 2 (0x2), region = 98 }

</bundles_post_ra>
